<compile_context>
chip_gen: v7x
topology: tpu7x:2x2x1
jax: 0.10.0
libtpu: 0.0.40
codegen_flags: <defaults>
</compile_context>

<pallas_src>
import functools

import jax
import jax.numpy as jnp
from jax import lax
from jax.experimental import pallas as pl
from jax.experimental.pallas import tpu as pltpu


def _round_up(a: int, b: int) -> int:
    return (a + b - 1) // b * b


def _vmem_capacity_bytes() -> int:
    # Capability probe only (never wraps kernel errors); conservative default.
    try:
        return int(pltpu.get_tpu_info().vmem_capacity_bytes)
    except Exception:
        return 64 << 20        # v7x-sized fallback


def _ffn_kernel(x_hbm, w1_ref, b1_ref, w2_ref, b2_ref, g_ref, beta_ref,
                o_ref, x_win, sem, *, k0, k1, t_tile, d_in, seq_len, eps,
                compute_dtype):
    b = pl.program_id(0)
    t = pl.program_id(1)
    n_t = pl.num_programs(1)

    pad0 = (k0 - 1) // 2
    pad1 = (k1 - 1) // 2
    halo = pad0 + pad1
    win = t_tile + 2 * halo          # rows of (padded) x needed for this tile
    h_len = t_tile + 2 * pad1        # rows of hidden needed by conv #2

    slot = t % 2                     # double-buffer slot for the x window

    def issue(bb, tt, ss):
        start = pl.multiple_of(tt * t_tile, t_tile)
        pltpu.make_async_copy(x_hbm.at[bb, pl.ds(start, win), :],
                              x_win.at[ss], sem.at[ss]).start()

    # First tile of each batch row: fetch the current window (exposed once/row).
    @pl.when(t == 0)
    def _():
        issue(b, t, slot)

    # Prefetch the next tile's window into the other slot while computing.
    @pl.when(t + 1 < n_t)
    def _():
        issue(b, t + 1, 1 - slot)

    # Wait for the current window (wait descriptor only needs the dst shape).
    pltpu.make_async_copy(x_hbm.at[b, pl.ds(0, win), :], x_win.at[slot],
                          sem.at[slot]).wait()

    xw = x_win[slot]                                  # (win, d_in_p) input dtype
    x_op = xw.astype(compute_dtype)                   # MXU operand dtype

    # ---- Conv1d #1 (d_in -> d_hid, kernel k0): fused-tap single MXU matmul ----
    if k0 == 1:
        u1 = x_op
    else:
        u1 = jnp.concatenate([x_op[j:j + h_len, :] for j in range(k0)], axis=-1)
    h = jnp.dot(u1, w1_ref[...], preferred_element_type=jnp.float32)
    h = jnp.maximum(h + b1_ref[...].astype(jnp.float32), 0.0)      # ReLU in f32

    # PyTorch zero-pads the ReLU output before conv #2: hidden rows whose
    # global time index lies outside [0, T) must be exactly zero (boundary
    # fix for k1 > 1), not relu(b1 + partial taps) recomputed from padded x.
    if pad1 > 0:
        row = lax.broadcasted_iota(jnp.int32, (h_len, 1), 0)
        g = t * t_tile - pad1 + row
        h = jnp.where((g >= 0) & (g < seq_len), h, 0.0)
    h = h.astype(compute_dtype)

    # ---- Conv1d #2 (d_hid -> d_in, kernel k1): fused-tap single MXU matmul ----
    # TODO(synk): per-tap accumulation variant (no unfold buffer) would save
    # VMEM on v7x when k1*d_hid is very large.
    if k1 == 1:
        u2 = h
    else:
        u2 = jnp.concatenate([h[j:j + t_tile, :] for j in range(k1)], axis=-1)
    y = jnp.dot(u2, w2_ref[...], preferred_element_type=jnp.float32)
    y = y + b2_ref[...].astype(jnp.float32)

    # TODO(synk): dropout is identity (eval mode); training-mode dropout would
    # use pltpu.prng_seed / pltpu.prng_random_bits and rescale by 1/(1-p).

    # ---- residual add + LayerNorm (single-pass stats, all f32) ----
    y = y + xw[halo:halo + t_tile, :].astype(jnp.float32)
    inv_n = 1.0 / d_in                                # padded lanes of y are 0
    mean = jnp.sum(y, axis=-1, keepdims=True) * inv_n
    msq = jnp.sum(y * y, axis=-1, keepdims=True) * inv_n
    var = jnp.maximum(msq - mean * mean, 0.0)
    out = (y - mean) * lax.rsqrt(var + eps)
    out = out * g_ref[...].astype(jnp.float32) + beta_ref[...].astype(jnp.float32)

    o_ref[0] = out.astype(o_ref.dtype)


def positionwise_feed_forward(x, w1, b1, w2, b2, gamma, beta, *, eps=1e-5,
                              t_tile=256, compute_dtype=jnp.bfloat16):
    """x: (B, T, d_in); w1: (k0, d_in, d_hid); w2: (k1, d_hid, d_in);
    b1: (d_hid,); b2/gamma/beta: (d_in,).  Eval-mode forward (dropout = id).

    MXU operands (x window, weights, hidden) are cast to `compute_dtype`
    (default bf16); accumulation, bias/ReLU, residual and LayerNorm are f32."""
    B, T, d_in = x.shape
    k0, _, d_hid = w1.shape
    k1 = w2.shape[0]
    assert k0 % 2 == 1 and k1 % 2 == 1, "only odd kernel sizes ('same' padding)"

    pad0 = (k0 - 1) // 2
    pad1 = (k1 - 1) // 2
    halo = pad0 + pad1

    d_in_p = _round_up(d_in, 128)
    d_hid_p = _round_up(d_hid, 128)
    x_isz = jnp.dtype(x.dtype).itemsize
    c_isz = jnp.dtype(compute_dtype).itemsize

    def working_set(tt):
        winb = tt + 2 * halo
        hlen = tt + 2 * pad1
        wbytes = (k0 * d_in_p * d_hid_p + k1 * d_hid_p * d_in_p) * c_isz
        vbytes = (2 * d_hid_p + 6 * d_in_p) * 4
        return (2 * (wbytes + vbytes)              # grid-constant inputs (<=2 bufs)
                + 2 * tt * d_in_p * x_isz          # double-buffered output tile
                + 2 * winb * d_in_p * x_isz        # double-buffered x-window scratch
                + hlen * k0 * d_in_p * c_isz       # unfolded conv-1 operand
                + hlen * d_hid_p * (4 + c_isz)     # f32 hidden + compute-dtype copy
                + tt * k1 * d_hid_p * c_isz        # unfolded conv-2 operand
                + 4 * tt * d_in_p * 4)             # y / LayerNorm temporaries

    def balanced_tile(pref):
        # Largest (8-aligned) tile <= pref that balances T across its tiles.
        tt = max(8, min(_round_up(pref, 8), _round_up(T, 8)))
        n = -(-T // tt)
        return max(8, _round_up(-(-T // n), 8))

    vmem_cap = _vmem_capacity_bytes()
    budget = vmem_cap - (8 << 20)
    tt = balanced_tile(t_tile)
    for pref in (t_tile, 128, 64, 32):
        tt = balanced_tile(pref)
        if working_set(tt) <= budget:
            break
    t_tile = tt
    nT = -(-T // t_tile)
    T_pad = nT * t_tile
    win = t_tile + 2 * halo

    # Pad operands once in HBM: zeros are transparent to conv #1 / residual / LN.
    # TODO(synk): when d_in % 128 == 0 the channel pad + final slice could be
    # skipped (and the time halo handled with clamped DMAs) to save one input
    # and one output HBM round trip in the memory-bound regime.
    xp = jnp.pad(x, ((0, 0), (halo, T_pad - T + halo), (0, d_in_p - d_in)))
    w1f = jnp.pad(w1, ((0, 0), (0, d_in_p - d_in), (0, d_hid_p - d_hid))
                  ).astype(compute_dtype).reshape(k0 * d_in_p, d_hid_p)
    w2f = jnp.pad(w2, ((0, 0), (0, d_hid_p - d_hid), (0, d_in_p - d_in))
                  ).astype(compute_dtype).reshape(k1 * d_hid_p, d_in_p)
    b1p = jnp.pad(b1.astype(jnp.float32).reshape(1, d_hid),
                  ((0, 0), (0, d_hid_p - d_hid)))
    b2p = jnp.pad(b2.astype(jnp.float32).reshape(1, d_in),
                  ((0, 0), (0, d_in_p - d_in)))
    gp = jnp.pad(gamma.astype(jnp.float32).reshape(1, d_in),
                 ((0, 0), (0, d_in_p - d_in)))
    bp = jnp.pad(beta.astype(jnp.float32).reshape(1, d_in),
                 ((0, 0), (0, d_in_p - d_in)))

    kernel = functools.partial(_ffn_kernel, k0=k0, k1=k1, t_tile=t_tile,
                               d_in=d_in, seq_len=T, eps=eps,
                               compute_dtype=compute_dtype)

    est = working_set(t_tile)
    vmem_limit = int(min(max(est + (16 << 20), 32 << 20), vmem_cap))

    cost = pl.CostEstimate(
        flops=int(2 * B * T * (k0 * d_in * d_hid + k1 * d_hid * d_in)
                  + 10 * B * T * d_in),
        transcendentals=int(B * T),
        bytes_accessed=int(2 * B * T * d_in * x_isz
                           + (k0 * d_in_p * d_hid_p + k1 * d_hid_p * d_in_p) * c_isz))

    grid_spec = pltpu.PrefetchScalarGridSpec(
        num_scalar_prefetch=0,
        grid=(B, nT),
        in_specs=[
            pl.BlockSpec(memory_space=pl.ANY),                          # x (HBM)
            pl.BlockSpec((k0 * d_in_p, d_hid_p), lambda b, t: (0, 0)),  # w1
            pl.BlockSpec((1, d_hid_p), lambda b, t: (0, 0)),            # b1
            pl.BlockSpec((k1 * d_hid_p, d_in_p), lambda b, t: (0, 0)),  # w2
            pl.BlockSpec((1, d_in_p), lambda b, t: (0, 0)),             # b2
            pl.BlockSpec((1, d_in_p), lambda b, t: (0, 0)),             # gamma
            pl.BlockSpec((1, d_in_p), lambda b, t: (0, 0)),             # beta
        ],
        out_specs=pl.BlockSpec((1, t_tile, d_in_p), lambda b, t: (b, t, 0)),
        scratch_shapes=[
            pltpu.VMEM((2, win, d_in_p), x.dtype),   # double-buffered x window
            pltpu.SemaphoreType.DMA((2,)),           # one DMA sem per slot
        ],
    )

    out_p = pl.pallas_call(
        kernel,
        out_shape=jax.ShapeDtypeStruct((B, T_pad, d_in_p), x.dtype),
        grid_spec=grid_spec,
        compiler_params=pltpu.CompilerParams(
            # Batch axis may be split across cores; the time axis carries the
            # manual window-prefetch chain, so it must run in order per core.
            dimension_semantics=("parallel", "arbitrary"),
            vmem_limit_bytes=vmem_limit),
        cost_estimate=cost,
    )(xp, w1f, b1p, w2f, b2p, gp, bp)

    return out_p[:, :T, :d_in]


def _reference(x, w1, b1, w2, b2, gamma, beta, eps=1e-5,
               compute_dtype=jnp.float32):
    """Pure-JAX reference mirroring the PyTorch forward (eval mode).
    Matmul operands are rounded to compute_dtype; accumulation is f32."""
    B, T, d_in = x.shape
    k0 = w1.shape[0]
    k1 = w2.shape[0]

    def conv1d(inp, w, b, k):
        pad = (k - 1) // 2
        ip = jnp.pad(inp, ((0, 0), (pad, pad), (0, 0)))
        ip = ip.astype(compute_dtype).astype(jnp.float32)
        wf = w.astype(compute_dtype).astype(jnp.float32)
        out = jnp.zeros((B, T, w.shape[-1]), jnp.float32) + b.astype(jnp.float32)
        for j in range(k):
            out = out + jnp.einsum('btc,cd->btd', ip[:, j:j + T, :], wf[j],
                                   precision=lax.Precision.HIGHEST)
        return out

    h = jax.nn.relu(conv1d(x, w1, b1, k0))
    y = conv1d(h, w2, b2, k1) + x.astype(jnp.float32)
    mean = jnp.mean(y, axis=-1, keepdims=True)
    var = jnp.mean((y - mean) ** 2, axis=-1, keepdims=True)
    return ((y - mean) * lax.rsqrt(var + eps)) * gamma + beta


if __name__ == "__main__":
    key = jax.random.PRNGKey(0)

    def make_params(k, d_in, d_hid, k0, k1):
        kw1, kb1, kw2, kb2 = jax.random.split(k, 4)
        w1 = 0.1 * jax.random.normal(kw1, (k0, d_in, d_hid), jnp.float32)
        b1 = 0.1 * jax.random.normal(kb1, (d_hid,), jnp.float32)
        w2 = 0.1 * jax.random.normal(kw2, (k1, d_hid, d_in), jnp.float32)
        b2 = 0.1 * jax.random.normal(kb2, (d_in,), jnp.float32)
        gamma = jnp.ones((d_in,), jnp.float32)
        beta = jnp.zeros((d_in,), jnp.float32)
        return w1, b1, w2, b2, gamma, beta

    # Tolerance absorbs MXU f32 pass-decomposition / bf16 operand rounding but
    # is ~15x tighter than the old conv-2 boundary bug (max err ~0.3).
    TOL = dict(atol=2e-2, rtol=2e-2)

    # Config 1: FastSpeech-style kernel_size=(9, 1), lane-dense channels;
    # exercises time tiling (2 balanced tiles) and the fused 9-tap matmul.
    ka, kb = jax.random.split(key)
    B, T, d_in, d_hid = 2, 384, 128, 384
    x1 = jax.random.normal(ka, (B, T, d_in), dtype=jnp.float32)
    p1 = make_params(kb, d_in, d_hid, 9, 1)
    out = jax.block_until_ready(
        positionwise_feed_forward(x1, *p1, compute_dtype=jnp.float32))
    ref = _reference(x1, *p1, compute_dtype=jnp.float32)
    assert out.shape == (B, T, d_in)
    assert jnp.allclose(out, ref, **TOL), float(jnp.max(jnp.abs(out - ref)))

    # Config 2: tiny awkward shapes (d_in=8, d_hid=32, kernel=(3, 3), T=20);
    # exercises channel/time padding AND the conv-2 zero-padded-hidden boundary.
    kc, kd = jax.random.split(ka)
    B, T, d_in, d_hid = 2, 20, 8, 32
    x2 = jax.random.normal(kc, (B, T, d_in), dtype=jnp.float32)
    p2 = make_params(kd, d_in, d_hid, 3, 3)
    out = jax.block_until_ready(
        positionwise_feed_forward(x2, *p2, compute_dtype=jnp.float32))
    ref = _reference(x2, *p2, compute_dtype=jnp.float32)
    assert out.shape == (B, T, d_in)
    assert jnp.allclose(out, ref, **TOL), float(jnp.max(jnp.abs(out - ref)))

    # Config 3: default bf16 MXU operands (config-1 shapes) vs a reference that
    # mirrors the bf16-operand / f32-accumulate numerics.
    out = jax.block_until_ready(positionwise_feed_forward(x1, *p1))
    ref = _reference(x1, *p1, compute_dtype=jnp.bfloat16)
    assert out.shape == x1.shape
    assert jnp.allclose(out, ref, **TOL), float(jnp.max(jnp.abs(out - ref)))

    print("KERNEL_OK")
</pallas_src>

<mosaic_0001>
module attributes {stable_mosaic.version = 11 : i64} {
  func.func @_ffn_kernel(%arg0: i32, %arg1: i32, %arg2: memref<2x392x128xf32, #tpu.memory_space<any>>, %arg3: memref<1152x384xf32, #tpu.memory_space<vmem>>, %arg4: memref<1x384xf32, #tpu.memory_space<vmem>>, %arg5: memref<384x128xf32, #tpu.memory_space<vmem>>, %arg6: memref<1x128xf32, #tpu.memory_space<vmem>>, %arg7: memref<1x128xf32, #tpu.memory_space<vmem>>, %arg8: memref<1x128xf32, #tpu.memory_space<vmem>>, %arg9: memref<1x192x128xf32, #tpu.memory_space<vmem>>, %arg10: memref<2x200x128xf32, #tpu.memory_space<vmem>>, %arg11: memref<2x!tpu.dma_semaphore, #tpu.memory_space<semaphore_mem>>) attributes {dimension_semantics = [#tpu.dimension_semantics<parallel>, #tpu.dimension_semantics<arbitrary>], iteration_bounds = array<i64: 2, 2>, scalar_prefetch = 0 : i64, scratch_operands = 2 : i64, tpu.core_type = #tpu.core_type<tc>, window_params = [{}, {pipeline_mode = #tpu.pipeline_mode<synchronous>, transform_indices = @transform_1, window_bounds = array<i64: 1152, 384>}, {pipeline_mode = #tpu.pipeline_mode<synchronous>, transform_indices = @transform_2, window_bounds = array<i64: 1, 384>}, {pipeline_mode = #tpu.pipeline_mode<synchronous>, transform_indices = @transform_3, window_bounds = array<i64: 384, 128>}, {pipeline_mode = #tpu.pipeline_mode<synchronous>, transform_indices = @transform_4, window_bounds = array<i64: 1, 128>}, {pipeline_mode = #tpu.pipeline_mode<synchronous>, transform_indices = @transform_5, window_bounds = array<i64: 1, 128>}, {pipeline_mode = #tpu.pipeline_mode<synchronous>, transform_indices = @transform_6, window_bounds = array<i64: 1, 128>}, {transform_indices = @transform_7, window_bounds = array<i64: 1, 192, 128>}]} {
    %c2_i32 = arith.constant 2 : i32
    %c0_i32 = arith.constant 0 : i32
    %0 = arith.cmpi eq, %c2_i32, %c0_i32 : i32
    %c1_i32 = arith.constant 1 : i32
    %1 = arith.select %0, %c1_i32, %c2_i32 : i32
    %2 = arith.remsi %arg1, %1 : i32
    %c0_i32_0 = arith.constant 0 : i32
    %3 = arith.cmpi ne, %2, %c0_i32_0 : i32
    %c0_i32_1 = arith.constant 0 : i32
    %4 = arith.cmpi slt, %2, %c0_i32_1 : i32
    %c0_i32_2 = arith.constant 0 : i32
    %5 = arith.cmpi slt, %1, %c0_i32_2 : i32
    %6 = arith.xori %4, %5 : i1
    %7 = arith.andi %6, %3 : i1
    %8 = arith.addi %2, %1 : i32
    %9 = arith.select %7, %8, %2 : i32
    %c0_i32_3 = arith.constant 0 : i32
    %10 = arith.cmpi eq, %arg1, %c0_i32_3 : i32
    %11 = arith.extui %10 : i1 to i32
    %c0_i32_4 = arith.constant 0 : i32
    %12 = arith.cmpi ne, %11, %c0_i32_4 : i32
    scf.if %12 {
      %c192_i32 = arith.constant 192 : i32
      %79 = arith.muli %arg1, %c192_i32 : i32
      %80 = tpu.assume_multiple %79, 192 : i32
      %c0_i32_36 = arith.constant 0 : i32
      %81 = tpu.memref_slice %arg2[%arg0, %80, %c0_i32_36] : memref<2x392x128xf32, #tpu.memory_space<any>> -> memref<1x200x128xf32, #tpu.memory_space<any>>
      %82 = tpu.memref_squeeze %81 : memref<1x200x128xf32, #tpu.memory_space<any>> -> memref<200x128xf32, #tpu.memory_space<any>>
      %c0_i32_37 = arith.constant 0 : i32
      %c0_i32_38 = arith.constant 0 : i32
      %83 = tpu.memref_slice %arg10[%9, %c0_i32_37, %c0_i32_38] : memref<2x200x128xf32, #tpu.memory_space<vmem>> -> memref<1x200x128xf32, #tpu.memory_space<vmem>>
      %84 = tpu.memref_squeeze %83 : memref<1x200x128xf32, #tpu.memory_space<vmem>> -> memref<200x128xf32, #tpu.memory_space<vmem>>
      %85 = tpu.memref_slice %arg11[%9] : memref<2x!tpu.dma_semaphore, #tpu.memory_space<semaphore_mem>> -> memref<1x!tpu.dma_semaphore, #tpu.memory_space<semaphore_mem>>
      %86 = tpu.memref_squeeze %85 : memref<1x!tpu.dma_semaphore, #tpu.memory_space<semaphore_mem>> -> memref<!tpu.dma_semaphore, #tpu.memory_space<semaphore_mem>>
      tpu.enqueue_dma source(%82 : memref<200x128xf32, #tpu.memory_space<any>>) target(%84 : memref<200x128xf32, #tpu.memory_space<vmem>>) target_semaphore(%86 : memref<!tpu.dma_semaphore, #tpu.memory_space<semaphore_mem>>)
    } else {
    }
    %c1_i32_5 = arith.constant 1 : i32
    %13 = arith.addi %arg1, %c1_i32_5 : i32
    %c2_i32_6 = arith.constant 2 : i32
    %14 = arith.cmpi slt, %13, %c2_i32_6 : i32
    %15 = arith.extui %14 : i1 to i32
    %c0_i32_7 = arith.constant 0 : i32
    %16 = arith.cmpi ne, %15, %c0_i32_7 : i32
    scf.if %16 {
      %c1_i32_36 = arith.constant 1 : i32
      %79 = arith.addi %arg1, %c1_i32_36 : i32
      %c1_i32_37 = arith.constant 1 : i32
      %80 = arith.subi %c1_i32_37, %9 : i32
      %c192_i32 = arith.constant 192 : i32
      %81 = arith.muli %79, %c192_i32 : i32
      %82 = tpu.assume_multiple %81, 192 : i32
      %c0_i32_38 = arith.constant 0 : i32
      %83 = tpu.memref_slice %arg2[%arg0, %82, %c0_i32_38] : memref<2x392x128xf32, #tpu.memory_space<any>> -> memref<1x200x128xf32, #tpu.memory_space<any>>
      %84 = tpu.memref_squeeze %83 : memref<1x200x128xf32, #tpu.memory_space<any>> -> memref<200x128xf32, #tpu.memory_space<any>>
      %c0_i32_39 = arith.constant 0 : i32
      %c0_i32_40 = arith.constant 0 : i32
      %85 = tpu.memref_slice %arg10[%80, %c0_i32_39, %c0_i32_40] : memref<2x200x128xf32, #tpu.memory_space<vmem>> -> memref<1x200x128xf32, #tpu.memory_space<vmem>>
      %86 = tpu.memref_squeeze %85 : memref<1x200x128xf32, #tpu.memory_space<vmem>> -> memref<200x128xf32, #tpu.memory_space<vmem>>
      %87 = tpu.memref_slice %arg11[%80] : memref<2x!tpu.dma_semaphore, #tpu.memory_space<semaphore_mem>> -> memref<1x!tpu.dma_semaphore, #tpu.memory_space<semaphore_mem>>
      %88 = tpu.memref_squeeze %87 : memref<1x!tpu.dma_semaphore, #tpu.memory_space<semaphore_mem>> -> memref<!tpu.dma_semaphore, #tpu.memory_space<semaphore_mem>>
      tpu.enqueue_dma source(%84 : memref<200x128xf32, #tpu.memory_space<any>>) target(%86 : memref<200x128xf32, #tpu.memory_space<vmem>>) target_semaphore(%88 : memref<!tpu.dma_semaphore, #tpu.memory_space<semaphore_mem>>)
    } else {
    }
    %c0_i32_8 = arith.constant 0 : i32
    %c0_i32_9 = arith.constant 0 : i32
    %17 = tpu.memref_slice %arg2[%arg0, %c0_i32_8, %c0_i32_9] : memref<2x392x128xf32, #tpu.memory_space<any>> -> memref<1x200x128xf32, #tpu.memory_space<any>>
    %18 = tpu.memref_squeeze %17 : memref<1x200x128xf32, #tpu.memory_space<any>> -> memref<200x128xf32, #tpu.memory_space<any>>
    %c0_i32_10 = arith.constant 0 : i32
    %c0_i32_11 = arith.constant 0 : i32
    %19 = tpu.memref_slice %arg10[%9, %c0_i32_10, %c0_i32_11] : memref<2x200x128xf32, #tpu.memory_space<vmem>> -> memref<1x200x128xf32, #tpu.memory_space<vmem>>
    %20 = tpu.memref_squeeze %19 : memref<1x200x128xf32, #tpu.memory_space<vmem>> -> memref<200x128xf32, #tpu.memory_space<vmem>>
    %21 = tpu.memref_slice %arg11[%9] : memref<2x!tpu.dma_semaphore, #tpu.memory_space<semaphore_mem>> -> memref<1x!tpu.dma_semaphore, #tpu.memory_space<semaphore_mem>>
    %22 = tpu.memref_squeeze %21 : memref<1x!tpu.dma_semaphore, #tpu.memory_space<semaphore_mem>> -> memref<!tpu.dma_semaphore, #tpu.memory_space<semaphore_mem>>
    tpu.wait_dma2 semaphore(%22 : memref<!tpu.dma_semaphore, #tpu.memory_space<semaphore_mem>>) src(%18 : memref<200x128xf32, #tpu.memory_space<any>>) dst(%20 : memref<200x128xf32, #tpu.memory_space<vmem>>)
    %23 = arith.index_cast %9 : i32 to index
    %c0 = arith.constant 0 : index
    %c0_12 = arith.constant 0 : index
    %24 = vector.load %arg10[%23, %c0, %c0_12] : memref<2x200x128xf32, #tpu.memory_space<vmem>>, vector<1x200x128xf32>
    %25 = vector.shape_cast %24 : vector<1x200x128xf32> to vector<200x128xf32>
    %26 = vector.extract_strided_slice %25 {offsets = [0, 0], sizes = [192, 128], strides = [1, 1]} : vector<200x128xf32> to vector<192x128xf32>
    %27 = vector.extract_strided_slice %25 {offsets = [1, 0], sizes = [192, 128], strides = [1, 1]} : vector<200x128xf32> to vector<192x128xf32>
    %28 = vector.extract_strided_slice %25 {offsets = [2, 0], sizes = [192, 128], strides = [1, 1]} : vector<200x128xf32> to vector<192x128xf32>
    %29 = vector.extract_strided_slice %25 {offsets = [3, 0], sizes = [192, 128], strides = [1, 1]} : vector<200x128xf32> to vector<192x128xf32>
    %30 = vector.extract_strided_slice %25 {offsets = [4, 0], sizes = [192, 128], strides = [1, 1]} : vector<200x128xf32> to vector<192x128xf32>
    %31 = vector.extract_strided_slice %25 {offsets = [5, 0], sizes = [192, 128], strides = [1, 1]} : vector<200x128xf32> to vector<192x128xf32>
    %32 = vector.extract_strided_slice %25 {offsets = [6, 0], sizes = [192, 128], strides = [1, 1]} : vector<200x128xf32> to vector<192x128xf32>
    %33 = vector.extract_strided_slice %25 {offsets = [7, 0], sizes = [192, 128], strides = [1, 1]} : vector<200x128xf32> to vector<192x128xf32>
    %34 = vector.extract_strided_slice %25 {offsets = [8, 0], sizes = [192, 128], strides = [1, 1]} : vector<200x128xf32> to vector<192x128xf32>
    %35 = tpu.concatenate %26, %27, %28, %29, %30, %31, %32, %33, %34 in 1 : vector<192x128xf32>, vector<192x128xf32>, vector<192x128xf32>, vector<192x128xf32>, vector<192x128xf32>, vector<192x128xf32>, vector<192x128xf32>, vector<192x128xf32>, vector<192x128xf32> -> vector<192x1152xf32>
    %c0_13 = arith.constant 0 : index
    %c0_14 = arith.constant 0 : index
    %36 = vector.load %arg3[%c0_13, %c0_14] : memref<1152x384xf32, #tpu.memory_space<vmem>>, vector<1152x384xf32>
    %cst = arith.constant dense<0.000000e+00> : vector<192x384xf32>
    %37 = tpu.matmul %35, %36, %cst {dimension_numbers = #tpu.dot_dimension_numbers<[1], [0], [0], [1], [0, 0, 1, 1], [], []>} : vector<192x1152xf32>, vector<1152x384xf32>, vector<192x384xf32> -> vector<192x384xf32>
    %c0_15 = arith.constant 0 : index
    %c0_16 = arith.constant 0 : index
    %38 = vector.load %arg4[%c0_15, %c0_16] : memref<1x384xf32, #tpu.memory_space<vmem>>, vector<1x384xf32>
    %39 = vector.broadcast %38 : vector<1x384xf32> to vector<192x384xf32>
    %40 = arith.addf %37, %39 : vector<192x384xf32>
    %cst_17 = arith.constant 0.000000e+00 : f32
    %41 = vector.broadcast %cst_17 : f32 to vector<192x384xf32>
    %42 = arith.maximumf %40, %41 : vector<192x384xf32>
    %c0_18 = arith.constant 0 : index
    %c0_19 = arith.constant 0 : index
    %43 = vector.load %arg5[%c0_18, %c0_19] : memref<384x128xf32, #tpu.memory_space<vmem>>, vector<384x128xf32>
    %cst_20 = arith.constant dense<0.000000e+00> : vector<192x128xf32>
    %44 = tpu.matmul %42, %43, %cst_20 {dimension_numbers = #tpu.dot_dimension_numbers<[1], [0], [0], [1], [0, 0, 1, 1], [], []>} : vector<192x384xf32>, vector<384x128xf32>, vector<192x128xf32> -> vector<192x128xf32>
    %c0_21 = arith.constant 0 : index
    %c0_22 = arith.constant 0 : index
    %45 = vector.load %arg6[%c0_21, %c0_22] : memref<1x128xf32, #tpu.memory_space<vmem>>, vector<1x128xf32>
    %46 = vector.broadcast %45 : vector<1x128xf32> to vector<192x128xf32>
    %47 = arith.addf %44, %46 : vector<192x128xf32>
    %48 = vector.extract_strided_slice %25 {offsets = [4, 0], sizes = [192, 128], strides = [1, 1]} : vector<200x128xf32> to vector<192x128xf32>
    %49 = arith.addf %47, %48 : vector<192x128xf32>
    %cst_23 = arith.constant dense<0.000000e+00> : vector<192xf32>
    %50 = vector.multi_reduction <add>, %49, %cst_23 [1] : vector<192x128xf32> to vector<192xf32>
    %51 = vector.shape_cast %50 : vector<192xf32> to vector<192x1xf32>
    %cst_24 = arith.constant 7.812500e-03 : f32
    %52 = vector.broadcast %cst_24 : f32 to vector<192x1xf32>
    %53 = arith.mulf %51, %52 : vector<192x1xf32>
    %54 = arith.mulf %49, %49 : vector<192x128xf32>
    %cst_25 = arith.constant dense<0.000000e+00> : vector<192xf32>
    %55 = vector.multi_reduction <add>, %54, %cst_25 [1] : vector<192x128xf32> to vector<192xf32>
    %56 = vector.shape_cast %55 : vector<192xf32> to vector<192x1xf32>
    %cst_26 = arith.constant 7.812500e-03 : f32
    %57 = vector.broadcast %cst_26 : f32 to vector<192x1xf32>
    %58 = arith.mulf %56, %57 : vector<192x1xf32>
    %59 = arith.mulf %53, %53 : vector<192x1xf32>
    %60 = arith.subf %58, %59 : vector<192x1xf32>
    %cst_27 = arith.constant 0.000000e+00 : f32
    %61 = vector.broadcast %cst_27 : f32 to vector<192x1xf32>
    %62 = arith.maximumf %60, %61 : vector<192x1xf32>
    %63 = vector.broadcast %53 : vector<192x1xf32> to vector<192x128xf32>
    %64 = arith.subf %49, %63 : vector<192x128xf32>
    %cst_28 = arith.constant 9.99999974E-6 : f32
    %65 = vector.broadcast %cst_28 : f32 to vector<192x1xf32>
    %66 = arith.addf %62, %65 : vector<192x1xf32>
    %67 = math.rsqrt %66 : vector<192x1xf32>
    %68 = vector.broadcast %67 : vector<192x1xf32> to vector<192x128xf32>
    %69 = arith.mulf %64, %68 : vector<192x128xf32>
    %c0_29 = arith.constant 0 : index
    %c0_30 = arith.constant 0 : index
    %70 = vector.load %arg7[%c0_29, %c0_30] : memref<1x128xf32, #tpu.memory_space<vmem>>, vector<1x128xf32>
    %71 = vector.broadcast %70 : vector<1x128xf32> to vector<192x128xf32>
    %72 = arith.mulf %69, %71 : vector<192x128xf32>
    %c0_31 = arith.constant 0 : index
    %c0_32 = arith.constant 0 : index
    %73 = vector.load %arg8[%c0_31, %c0_32] : memref<1x128xf32, #tpu.memory_space<vmem>>, vector<1x128xf32>
    %74 = vector.broadcast %73 : vector<1x128xf32> to vector<192x128xf32>
    %75 = arith.addf %72, %74 : vector<192x128xf32>
    %c0_33 = arith.constant 0 : index
    %c0_34 = arith.constant 0 : index
    %c0_35 = arith.constant 0 : index
    %76 = vector.load %arg9[%c0_33, %c0_34, %c0_35] : memref<1x192x128xf32, #tpu.memory_space<vmem>>, vector<1x192x128xf32>
    %77 = vector.shape_cast %76 : vector<1x192x128xf32> to vector<192x128xf32>
    %78 = vector.shape_cast %75 : vector<192x128xf32> to vector<1x192x128xf32>
    tpu.vector_store %arg9[%c0_33, %c0_34, %c0_35], %78 {strides = array<i32>} : memref<1x192x128xf32, #tpu.memory_space<vmem>>, vector<1x192x128xf32>,
    return
  }
  func.func @transform_1(%arg0: i32, %arg1: i32) -> (i32, i32) {
    %c0_i32 = arith.constant 0 : i32
    %c0_i32_0 = arith.constant 0 : i32
    %c0_i32_1 = arith.constant 0 : i32
    return %c0_i32, %c0_i32_0 : i32, i32
  }
  func.func @transform_2(%arg0: i32, %arg1: i32) -> (i32, i32) {
    %c0_i32 = arith.constant 0 : i32
    %c0_i32_0 = arith.constant 0 : i32
    %c0_i32_1 = arith.constant 0 : i32
    return %c0_i32, %c0_i32_0 : i32, i32
  }
  func.func @transform_3(%arg0: i32, %arg1: i32) -> (i32, i32) {
    %c0_i32 = arith.constant 0 : i32
    %c0_i32_0 = arith.constant 0 : i32
    %c0_i32_1 = arith.constant 0 : i32
    return %c0_i32, %c0_i32_0 : i32, i32
  }
  func.func @transform_4(%arg0: i32, %arg1: i32) -> (i32, i32) {
    %c0_i32 = arith.constant 0 : i32
    %c0_i32_0 = arith.constant 0 : i32
    %c0_i32_1 = arith.constant 0 : i32
    return %c0_i32, %c0_i32_0 : i32, i32
  }
  func.func @transform_5(%arg0: i32, %arg1: i32) -> (i32, i32) {
    %c0_i32 = arith.constant 0 : i32
    %c0_i32_0 = arith.constant 0 : i32
    %c0_i32_1 = arith.constant 0 : i32
    return %c0_i32, %c0_i32_0 : i32, i32
  }
  func.func @transform_6(%arg0: i32, %arg1: i32) -> (i32, i32) {
    %c0_i32 = arith.constant 0 : i32
    %c0_i32_0 = arith.constant 0 : i32
    %c0_i32_1 = arith.constant 0 : i32
    return %c0_i32, %c0_i32_0 : i32, i32
  }
  func.func @transform_7(%arg0: i32, %arg1: i32) -> (i32, i32, i32) {
    %c0_i32 = arith.constant 0 : i32
    %c0_i32_0 = arith.constant 0 : i32
    return %arg0, %arg1, %c0_i32 : i32, i32, i32
  }
}

</mosaic_0001>

<bundles_post_ra>
// kernel: tpu_custom_call.1
= control target key start
LH: loop header
LB: loop body
LE: loop exit
PB: predicated region body
PF: predicated region fallthrough
CT: control target
= control target key end

     0   :  { %s8088_s0 = inlined_call_operand.hbm [shape: f32[2,392,128], index: 0, kind: input, shape index: {}]   ;;  %s8089_s1 = inlined_call_operand.hbm [shape: f32[1152,384], index: 1, kind: input, shape index: {}]   ;;  %s8090_s2 = inlined_call_operand.hbm [shape: f32[1,384], index: 2, kind: input, shape index: {}]   ;;  %s8091_s3 = inlined_call_operand.hbm [shape: f32[384,128], index: 3, kind: input, shape index: {}]   ;;  %s8092_s4 = inlined_call_operand.hbm [shape: f32[1,128], index: 4, kind: input, shape index: {}]   ;;  %s8093_s5 = inlined_call_operand.hbm [shape: f32[1,128], index: 5, kind: input, shape index: {}]   ;;  %s8094_s6 = inlined_call_operand.hbm [shape: f32[1,128], index: 6, kind: input, shape index: {}]   ;;  %s8095_s7 = inlined_call_operand.hbm [shape: f32[2,384,128], index: 7, kind: output, shape index: {}]  }
   0x1   :  { %8118 = sst [smem:[#allocation43_spill]] %s8089_s1 }
   0x2   :  { %8119 = sst [smem:[#allocation44_spill]] %s8090_s2 }
   0x3   :  { %8120 = sst [smem:[#allocation45_spill]] %s8091_s3 }
   0x4   :  { %8121 = sst [smem:[#allocation46_spill]] %s8092_s4 }
   0x5   :  { %12 = vsyncpa [#allocation5], 0 }
   0x6   :  { %13 = vsyncpa [#allocation8], 0 }
   0x7   :  { %14 = vsyncpa [#allocation11], 0 }
   0x8   :  { %15 = vsyncpa [#allocation14], 0 }
   0x9   :  { %16 = vsyncpa [#allocation6], 0 }
   0xa   :  { %18 = vsyncpa [#allocation6 + $0x1], 0  ;;  %s6376_s24 = smov 0   ;;  %s6378_s25 = smov 0  }
   0xb   :  { %s6380_s26 = smov 0   ;;  %s6382_s27 = smov 0  }
   0xc   :  { %s6384_s28 = smov 0   ;;  %s6386_s29 = smov 0  }
   0xd   :  { %s6388_s30 = smov 0   ;;  %s6390_s8 = smov 0  }
   0xe LB: > { %8122 = sst [smem:[#allocation28_spill]] %s6298_s26  ;;  %s4495_s9 = sadd.s32 4294967295, %s6318_s8   ;;  %s6318_s8 = sphi %s6390_s8, %s24_s8   ;;  %s6314_s30 = sphi %s6388_s30, %s8169_s30   ;;  %s6310_s29 = sphi %s6386_s29, %s8168_s29   ;;  %s6306_s28 = sphi %s6384_s28, %s8167_s28   ;;  %s6302_s27 = sphi %s6382_s27, %s8173_s27   ;;  %s6298_s26 = sphi %s6380_s26, %s8172_s26   ;;  %s6294_s25 = sphi %s6378_s25, %s8171_s25   ;;  %s6290_s24 = sphi %s6376_s24, %s8170_s24  }
   0xf   : > { %8123 = sst [smem:[#allocation29_spill]] %s6310_s29  ;;  %s4496_s10 = sadd.s32 4294967294, %s6318_s8  }
  0x10   : > { %8124 = sst [smem:[#allocation30_spill]] %s6314_s30  ;;  %s33_s11 = sadd.s32 1, %s6310_s29 }
  0x11   : > { %s36_s12 = sadd.s32 1, %s6314_s30  ;;  %p34_p0 = scmp.ge.s32.totalorder %s33_s11, 2 }
  0x12   : > { %s171_s13 = sadd.s32 1, %s6298_s26  ;;  %p181_p1 = scmp.ne.s32.totalorder %s6298_s26, %s6294_s25 }
  0x13   : > { %p182_p2 = scmp.eq.s32.totalorder %s4495_s9, 3  ;;  %s8175_s11 = smov (%p34_p0, %s33_s11), 0 }
  0x14   : > { %8125 = sst [smem:[#allocation31_spill]] %s8175_s11  ;;  %s8177_s12 = smov (!%p34_p0, %s36_s12), %s6314_s30 }
  0x15   : > { %s167_s14 = ssub.s32 %s6310_s29, %s8175_s11  ;;  %p6428_p3 = por %p182_p2, %p181_p1 }
  0x16   : > { %p38_p4 = scmp.ge.s32.totalorder %s8177_s12, 2  ;;  %p187_p5 = scmp.ne.s32.totalorder %s6294_s25, %s6290_s24 }
  0x17   : > { %s8126_s15 = scalar_select %p6428_p3, 1, 0 }
  0x18   : > { %p188_p6 = scmp.eq.s32.totalorder %s4496_s10, 3  ;;  %p4497_p7 = scmp.ge.s32.totalorder %s6318_s8, 1 }
  0x19   : > { %s8179_s12 = smov (%p38_p4, %s8177_s12), 0  ;;  %p195_p9 = scmp.lt.s32.totalorder %s6318_s8, 5 }
  0x1a   : > { %8127 = sst [smem:[#allocation32_spill]] %s8179_s12  ;;  %p6437_p8 = por %p188_p6, %p187_p5 }
  0x1b   : > { %s166_s17 = ssub.s32 %s6314_s30, %s8179_s12  ;;  %p6444_p10 = pnand %p4497_p7, %p195_p9 }
  0x1c   : > { %s8128_s16 = scalar_select %p6437_p8, 1, 0 }
  0x1d   : > { %s168_s18 = sor.u32 %s167_s14, %s166_s17  ;;  %p6448_p12 = scmp.eq.s32.totalorder %s4495_s9, 0 }
  0x1e   : > { %8129 = sst [smem:[#allocation33_spill]] %s8128_s16  ;;  %p169_p11 = scmp.eq.s32.totalorder %s168_s18, 0 }
  0x1f   : > { %s8130_s19 = scalar_select %p6444_p10, 1, 0 }
  0x20   : > { %s8131_s20 = scalar_select %p6448_p12, 1, 0 }
  0x21   : > { %p5774_p13 = pneg %p6444_p10  ;;  %s6320_s23 = smov [#allocation7]  }
  0x22   : > { %s6455_s21 = scalar_select %p169_p11, %s6298_s26, %s171_s13  }
  0x23   : > { %p6459_p0 = pnand %p6448_p12, %p5774_p13  ;;  %s221_s10 = sshll.u32 %s6320_s23, 4  ;;  %s222_s10 = int_to_ptr.vmem [resolvable:$true] %s221_s10 }
  0x24   : > { %8132 = sst [smem:[#allocation34_spill]] %s6455_s21  ;;  %s6321_s14 = smov [#allocation10]  }
  0x25   : > { %s245_s17 = sshll.u32 %s6321_s14, 4  ;;  %s8134_s2 = sld [smem:[#allocation44_spill]]  ;;  %s246_s17 = int_to_ptr.vmem [resolvable:$true] %s245_s17 }
  0x26   : > { %p6471_p2 = pneg %p6459_p0 }
  0x2b   : > { %s5981_s12 = scalar_lea.hbm %s8134_s2, 48 }
  0x2c   : > { %p5982_p1 = scmp.ne.s32.totalorder %s8134_s2, %s5981_s12  ;;  %p5988_p6 = scmp.lt.u32.totalorder %s5981_s12, %s8134_s2 }
  0x2e   : > { %p5984_p4 = pnand %p6471_p2, %p5982_p1 }
  0x30   : > { %p5985_p5 = pneg %p5984_p4 }
  0x32   : > { %p5990_p7 = pnand %p5988_p6, %p5985_p5 }
  0x34   : > { %5993 = shalt.err (!%p5990_p7)
}
  0x35   : > { %s5994_s14 = scalar_lea.vmem %s222_s10, 48  ;;  %s6001_s30 = scalar_lea.vmem %s222_s10, 64 }
  0x36   : > { %p5995_p9 = scmp.ne.s32.totalorder %s222_s10, %s5994_s14  ;;  %p6002_p8 = scmp.lt.s32.totalorder %s222_s10, %s222_s10 }
  0x37   : > { %p6003_p3 = scmp.lt.s32.totalorder %s6001_s30, %s5994_s14 }
  0x38   : > { %p5997_p11 = pnand %p5995_p9, %p6471_p2 }
  0x39   : > { %p6004_p12 = por %p6003_p3, %p6002_p8 }
  0x3a   : > { %p5998_p13 = pneg %p5997_p11 }
  0x3c   : > { %p6005_p10 = pnand %p6004_p12, %p5998_p13 }
  0x3e   : > { %6008 = shalt.err (!%p6005_p10)
}
  0x3f   : > { %5780 = dma.hbm_to_vmem [thread:$0]  (!%p6459_p0), %s8134_s2, 48, %s222_s10, [#allocation8]  }
  0x40   : > { %s8136_s4 = sld [smem:[#allocation46_spill]] }
  0x46   : > { %s6009_s18 = scalar_lea.hbm %s8136_s4, 16 }
  0x47   : > { %p6010_p1 = scmp.ne.s32.totalorder %s8136_s4, %s6009_s18  ;;  %p6016_p10 = scmp.lt.u32.totalorder %s6009_s18, %s8136_s4 }
  0x49   : > { %p6012_p3 = pnand %p6010_p1, %p6471_p2 }
  0x4b   : > { %p6013_p8 = pneg %p6012_p3 }
  0x4d   : > { %p6018_p12 = pnand %p6016_p10, %p6013_p8 }
  0x4f   : > { %6021 = shalt.err (!%p6018_p12)
}
  0x50   : > { %s6022_s11 = scalar_lea.vmem %s246_s17, 16  ;;  %s6029_s10 = scalar_lea.vmem %s246_s17, 32 }
  0x51   : > { %p6023_p4 = scmp.ne.s32.totalorder %s246_s17, %s6022_s11  ;;  %p6030_p7 = scmp.lt.s32.totalorder %s246_s17, %s246_s17 }
  0x52   : > { %p6031_p9 = scmp.lt.s32.totalorder %s6029_s10, %s6022_s11 }
  0x53   : > { %p6025_p5 = pnand %p6023_p4, %p6471_p2 }
  0x54   : > { %p6032_p11 = por %p6031_p9, %p6030_p7 }
  0x55   : > { %p6026_p6 = pneg %p6025_p5 }
  0x57   : > { %p6033_p13 = pnand %p6032_p11, %p6026_p6 }
  0x59   : > { %6036 = shalt.err (!%p6033_p13)
}
  0x5a   : > { %5786 = dma.hbm_to_vmem [thread:$0]  (!%p6459_p0), %s8136_s4, 16, %s246_s17, [#allocation11]  }
  0x5b   : > { %s6322_s29 = smov [#allocation4]   ;;  %s8137_s1 = sld [smem:[#allocation43_spill]] }
  0x5c   : > { %s207_s12 = sshll.u32 %s6322_s29, 4  ;;  %s208_s12 = int_to_ptr.vmem [resolvable:$true] %s207_s12 }
  0x61   : > { %s6037_s14 = scalar_lea.hbm %s8137_s1, 55296 }
  0x62   : > { %p6038_p1 = scmp.ne.s32.totalorder %s8137_s1, %s6037_s14  ;;  %p6044_p10 = scmp.lt.u32.totalorder %s6037_s14, %s8137_s1 }
  0x64   : > { %p6040_p3 = pnand %p6038_p1, %p6471_p2 }
  0x66   : > { %p6041_p8 = pneg %p6040_p3 }
  0x68   : > { %p6046_p12 = pnand %p6044_p10, %p6041_p8 }
  0x6a   : > { %6049 = shalt.err (!%p6046_p12)
}
  0x6b   : > { %s6050_s17 = scalar_lea.vmem %s208_s12, 55296  ;;  %p6058_p7 = scmp.lt.s32.totalorder %s208_s12, %s208_s12 }
  0x6c   : > { %p6051_p4 = scmp.ne.s32.totalorder %s208_s12, %s6050_s17  ;;  %p6059_p9 = scmp.lt.s32.totalorder %s6050_s17, %s6050_s17 }
  0x6e   : > { %p6053_p5 = pnand %p6051_p4, %p6471_p2  ;;  %p6060_p11 = por %p6059_p9, %p6058_p7 }
  0x70   : > { %p6054_p6 = pneg %p6053_p5 }
  0x72   : > { %p6061_p13 = pnand %p6060_p11, %p6054_p6 }
  0x74   : > { %6064 = shalt.err (!%p6061_p13)
}
  0x75   : > { %s6323_s2 = smov 384   ;;  %s6324_s21 = smov 24  }
  0x76   : > { %5777 = dma.hbm_to_vmem [thread:$0]  (!%p6459_p0), %s8137_s1, 55296, %s208_s12, [#allocation5], %s6323_s2, %s6323_s2, %s6324_s21  }
  0x77   : > { %s6325_s18 = smov [#allocation9]   ;;  %s8138_s3 = sld [smem:[#allocation45_spill]] }
  0x78   : > { %s231_s23 = sshll.u32 %s6325_s18, 4  ;;  %s232_s23 = int_to_ptr.vmem [resolvable:$true] %s231_s23 }
  0x7d   : > { %s6065_s11 = scalar_lea.hbm %s8138_s3, 6144 }
  0x7e   : > { %p6066_p1 = scmp.ne.s32.totalorder %s8138_s3, %s6065_s11  ;;  %p6072_p10 = scmp.lt.u32.totalorder %s6065_s11, %s8138_s3 }
  0x80   : > { %p6068_p3 = pnand %p6066_p1, %p6471_p2 }
  0x82   : > { %p6069_p8 = pneg %p6068_p3 }
  0x84   : > { %p6074_p12 = pnand %p6072_p10, %p6069_p8 }
  0x86   : > { %6077 = shalt.err (!%p6074_p12)
}
  0x87   : > { %s6078_s12 = scalar_lea.vmem %s232_s23, 6144  ;;  %p6086_p7 = scmp.lt.s32.totalorder %s232_s23, %s232_s23 }
  0x88   : > { %p6079_p4 = scmp.ne.s32.totalorder %s232_s23, %s6078_s12  ;;  %p6087_p9 = scmp.lt.s32.totalorder %s6078_s12, %s6078_s12 }
  0x8a   : > { %p6081_p5 = pnand %p6079_p4, %p6471_p2  ;;  %p6088_p11 = por %p6087_p9, %p6086_p7 }
  0x8c   : > { %p6082_p6 = pneg %p6081_p5 }
  0x8e   : > { %p6089_p13 = pnand %p6088_p11, %p6082_p6 }
  0x90   : > { %6092 = shalt.err (!%p6089_p13)
}
  0x91   : > { %s6326_s2 = smov 128   ;;  %s6327_s21 = smov 8  }
  0x92   : > { %5783 = dma.hbm_to_vmem [thread:$0]  (!%p6459_p0), %s8138_s3, 6144, %s232_s23, [#allocation8], %s6326_s2, %s6326_s2, %s6327_s21  }
  0x93   : > { %s6328_s9 = smov [#allocation12]   ;;  %s6329_s18 = smov [#allocation13]  }
  0x94   : > { %s256_s29 = sshll.u32 %s6328_s9, 4  ;;  %s267_s14 = sshll.u32 %s6329_s18, 4  ;;  %s257_s29 = int_to_ptr.vmem [resolvable:$true] %s256_s29  ;;  %s268_s14 = int_to_ptr.vmem [resolvable:$true] %s267_s14 }
  0x95   : > { %s6093_s10 = scalar_lea.hbm %s8093_s5, 16 }
  0x96   : > { %p6094_p1 = scmp.ne.s32.totalorder %s8093_s5, %s6093_s10  ;;  %p6100_p10 = scmp.lt.u32.totalorder %s6093_s10, %s8093_s5 }
  0x98   : > { %p6096_p3 = pnand %p6094_p1, %p6471_p2 }
  0x9a   : > { %p6097_p8 = pneg %p6096_p3 }
  0x9c   : > { %p6102_p12 = pnand %p6100_p10, %p6097_p8 }
  0x9e   : > { %6105 = shalt.err (!%p6102_p12)
}
  0x9f   : > { %s6106_s23 = scalar_lea.vmem %s257_s29, 16  ;;  %s6113_s2 = scalar_lea.vmem %s257_s29, 32 }
  0xa0   : > { %p6107_p4 = scmp.ne.s32.totalorder %s257_s29, %s6106_s23  ;;  %p6114_p7 = scmp.lt.s32.totalorder %s257_s29, %s257_s29 }
  0xa1   : > { %p6115_p9 = scmp.lt.s32.totalorder %s6113_s2, %s6106_s23 }
  0xa2   : > { %p6109_p5 = pnand %p6107_p4, %p6471_p2 }
  0xa3   : > { %p6116_p11 = por %p6115_p9, %p6114_p7 }
  0xa4   : > { %p6110_p6 = pneg %p6109_p5 }
  0xa6   : > { %p6117_p13 = pnand %p6116_p11, %p6110_p6 }
  0xa8   : > { %6120 = shalt.err (!%p6117_p13)
}
  0xa9   : > { %5789 = dma.hbm_to_vmem [thread:$0]  (!%p6459_p0), %s8093_s5, 16, %s257_s29, [#allocation11]  }
  0xaa   : > { %s6121_s26 = scalar_lea.hbm %s8094_s6, 16 }
  0xab   : > { %p6122_p1 = scmp.ne.s32.totalorder %s8094_s6, %s6121_s26  ;;  %p6128_p10 = scmp.lt.u32.totalorder %s6121_s26, %s8094_s6 }
  0xad   : > { %p6124_p3 = pnand %p6122_p1, %p6471_p2 }
  0xaf   : > { %p6125_p8 = pneg %p6124_p3 }
  0xb1   : > { %p6130_p12 = pnand %p6128_p10, %p6125_p8 }
  0xb3   : > { %6133 = shalt.err (!%p6130_p12)
}
  0xb4   : > { %s6134_s10 = scalar_lea.vmem %s268_s14, 16  ;;  %s6141_s29 = scalar_lea.vmem %s268_s14, 32 }
  0xb5   : > { %p6135_p4 = scmp.ne.s32.totalorder %s268_s14, %s6134_s10  ;;  %p6142_p7 = scmp.lt.s32.totalorder %s268_s14, %s268_s14 }
  0xb6   : > { %p6143_p9 = scmp.lt.s32.totalorder %s6141_s29, %s6134_s10 }
  0xb7   : > { %p6137_p5 = pnand %p6135_p4, %p6471_p2 }
  0xb8   : > { %p6144_p11 = por %p6143_p9, %p6142_p7 }
  0xb9   : > { %p6138_p6 = pneg %p6137_p5 }
  0xbb   : > { %p6145_p13 = pnand %p6144_p11, %p6138_p6 }
  0xbd   : > { %6148 = shalt.err (!%p6145_p13)
}
  0xbe   : > { %5792 = dma.hbm_to_vmem [thread:$0]  (!%p6459_p0), %s8094_s6, 16, %s268_s14, [#allocation14]  }
  0xbf   : > { %p8139_p1 = scmp.ne.s32.totalorder %s8130_s19, 0 }
  0xc1   : > { %280 = sbr.rel (%p8139_p1) target bundleno = 1438 (0x59e), region = 44 }
  0xc8   : > { %p8140_p3 = scmp.ne.s32.totalorder %s8131_s20, 0 }
  0xca   : > { %6267 = dma.done.wait (%p8140_p3), [#allocation5], 55296  }
  0xcb   : > { %6269 = vsyncadd (%p8140_p3), [#allocation5], 4294912000 }
  0xcc   : > { %6271 = dma.done.wait (%p8140_p3), [#allocation8], 6192  }
  0xcd   : > { %6273 = vsyncadd (%p8140_p3), [#allocation8], 4294961104 }
  0xce   : > { %6275 = dma.done.wait (%p8140_p3), [#allocation11], 32  }
  0xcf   : > { %6277 = vsyncadd (%p8140_p3), [#allocation11], 4294967264 }
  0xd0   : > { %6279 = dma.done.wait (%p8140_p3), [#allocation14], 16  }
  0xd1   : > { %6281 = vsyncadd (%p8140_p3), [#allocation14], 4294967280  ;;  %s8106_s19 = sand.u32 1, %s6294_s25   ;;  %p326_p0 = scmp.lt.s32.totalorder %s6302_s27, 0 }
  0xd2   : > { %s6599_s22 = smul.u32 192, %s8106_s19  ;;  %s327_s13 = ssub.s32 0, %s6302_s27 }
  0xd3   : > { %s4511_s14 = smin.u32 %s6302_s27, %s327_s13  ;;  %p5809_p2 = scmp.eq.s32.totalorder %s6302_s27, 0 }
  0xd4   : > { %s329_s23 = sand.u32 1, %s4511_s14   ;;  %s342_s20 = smul.u32 192, %s6302_s27 }
  0xd5   : > { %s330_s2 = ssub.s32 0, %s329_s23  ;;  %s361_s21 = sadd.s32 1, %s6302_s27 }
  0xd6   : > { %s8181_s2 = smov (!%p326_p0, %s330_s2), %s329_s23  ;;  %s343_s1 = smul.u32 392, %s6306_s28 }
  0xd7   : > { %p4513_p8 = scmp.lt.s32.totalorder %s8181_s2, 0  ;;  %s336_s4 = sadd.s32 2, %s8181_s2 }
  0xd8   : > { %s344_s16 = sadd.s32 %s343_s1, %s342_s20  ;;  %p6609_p10 = scmp.lt.s32.totalorder %s361_s21, 2 }
  0xd9   : > { %s8183_s4 = smov (!%p4513_p8, %s336_s4), %s8181_s2  ;;  %s4515_s9 = sshll.u32 %s344_s16, 4 }
  0xda   : > { %s347_s18 = smul.u32 200, %s8183_s4  ;;  %s6617_s10 = scalar_lea.hbm %s8088_s0, %s4515_s9 }
  0xdb   : > { %s6620_s29 = scalar_lea.hbm %s6617_s10, 3072  ;;  %s366_s13 = ssub.s32 1, %s8183_s4 }
  0xdc   : > { %s6622_s17 = scalar_lea.vmem [#allocation2], %s347_s18  ;;  %s6630_s14 = smul.u32 200, %s366_s13 }
  0xdd   : > { %s357_s12 = sshll.u32 %s6622_s17, 4  ;;  %s6633_s23 = scalar_lea.sflag [#allocation3], %s8183_s4  ;;  %s6626_s12 = int_to_ptr.vmem [resolvable:$true] %s357_s12 }
  0xde   : > { %s6149_s2 = scalar_lea.hbm %s6617_s10, 3200  ;;  %s8107_s1 = scalar_lea.hbm %s8088_s0, 12544 }
  0xdf   : > { %p6150_p12 = scmp.ne.s32.totalorder %s6617_s10, %s6149_s2  ;;  %p6154_p6 = scmp.lt.u32.totalorder %s6617_s10, %s8088_s0 }
  0xe0   : > { %p6155_p7 = scmp.lt.u32.totalorder %s8107_s1, %s6149_s2  ;;  %p6157_p11 = scmp.lt.u32.totalorder %s6149_s2, %s6617_s10 }
  0xe1   : > { %p6151_p4 = pnand %p6150_p12, %p5809_p2 }
  0xe2   : > { %p6156_p9 = por %p6155_p7, %p6154_p6 }
  0xe3   : > { %p6152_p5 = pneg %p6151_p4 }
  0xe4   : > { %p6158_p13 = por %p6157_p11, %p6156_p9 }
  0xe6   : > { %p6159_p1 = pnand %p6158_p13, %p6152_p5 }
  0xe8   : > { %6162 = shalt.err (!%p6159_p1)  }
  0xe9   : > { %s6163_s11 = scalar_lea.vmem %s6626_s12, 3200  ;;  %s6330_s20 = smov [#allocation2]  }
  0xea   : > { %p6164_p3 = scmp.ne.s32.totalorder %s6626_s12, %s6163_s11  ;;  %s6167_s21 = sshll.u32 %s6330_s20, 4  ;;  %s6655_s21 = int_to_ptr.vmem [resolvable:$false] %s6167_s21 }
  0xeb   : > { %s6169_s16 = scalar_lea.vmem %s6655_s21, 6400  ;;  %p6170_p12 = scmp.lt.s32.totalorder %s6626_s12, %s6655_s21 }
  0xec   : > { %p6165_p0 = pnand %p6164_p3, %p5809_p2  ;;  %p6171_p4 = scmp.lt.s32.totalorder %s6169_s16, %s6163_s11 }
  0xee   : > { %p6166_p8 = pneg %p6165_p0  ;;  %p6172_p5 = por %p6171_p4, %p6170_p12 }
  0xf0   : > { %p6173_p6 = pnand %p6172_p5, %p6166_p8 }
  0xf2   : > { %6176 = shalt.err (!%p6173_p6)  }
  0xf3   : > { %5769 = dma.hbm_to_vmem [thread:$0]  (%p5809_p2), %s6617_s10, 3200, %s6626_s12, %s6633_s23 }
  0xf4   : > { %s373_s2 = scalar_lea.vmem [#allocation2], %s6630_s14  ;;  %s374_s18 = scalar_lea.sflag [#allocation3], %s366_s13 }
  0xf5   : > { %s382_s9 = sshll.u32 %s373_s2, 4  ;;  %s6205_s30 = scalar_lea.hbm %s6617_s10, 6272  ;;  %s383_s9 = int_to_ptr.vmem [resolvable:$true] %s382_s9 }
  0xf6   : > { %p6178_p7 = scmp.ne.s32.totalorder %s6620_s29, %s6205_s30  ;;  %p6182_p13 = scmp.lt.u32.totalorder %s6620_s29, %s8088_s0 }
  0xf7   : > { %s8142_s3 = scalar_lea.hbm %s8088_s0, 12544  ;;  %p6185_p3 = scmp.lt.u32.totalorder %s6205_s30, %s6620_s29 }
  0xf8   : > { %p6179_p9 = pnand %p6178_p7, %p6609_p10  ;;  %p6183_p1 = scmp.lt.u32.totalorder %s8142_s3, %s6205_s30 }
  0xfa   : > { %p6180_p11 = pneg %p6179_p9  ;;  %p6184_p2 = por %p6183_p1, %p6182_p13 }
  0xfc   : > { %p6186_p0 = por %p6185_p3, %p6184_p2 }
  0xfe   : > { %p6187_p8 = pnand %p6186_p0, %p6180_p11 }
 0x100   : > { %6190 = shalt.err (!%p6187_p8)  }
 0x101   : > { %s6191_s4 = scalar_lea.vmem %s383_s9, 3200  ;;  %p6198_p6 = scmp.lt.s32.totalorder %s383_s9, %s6655_s21 }
 0x102   : > { %p6192_p12 = scmp.ne.s32.totalorder %s383_s9, %s6191_s4  ;;  %p6199_p7 = scmp.lt.s32.totalorder %s6169_s16, %s6191_s4 }
 0x104   : > { %p6193_p4 = pnand %p6192_p12, %p6609_p10  ;;  %p6200_p9 = por %p6199_p7, %p6198_p6 }
 0x106   : > { %p6194_p5 = pneg %p6193_p4 }
 0x108   : > { %p6201_p1 = pnand %p6200_p9, %p6194_p5 }
 0x10a   : > { %6204 = shalt.err (!%p6201_p1)  }
 0x10b   : > { %5771 = dma.hbm_to_vmem [thread:$0]  (%p6609_p10), %s6620_s29, 3200, %s383_s9, %s374_s18 }
 0x10c   : > { %s6688_s3 = scalar_lea.vmem [#allocation15], %s6599_s22 }
 0x10d   : > { %6282 = dma.done.wait %s6633_s23, 3200 }
 0x10e   : > { %6283 = vsyncadd %s6633_s23, 4294964096  ;;  %v8108_v0 = vmov 0.0|0.0   ;;  %v961_v1 = vld [vmem:[#allocation4 + $0x8] sm:$0xff]  ;;  %v964_v2 = vld [vmem:[#allocation4 + $0x20] sm:$0xff]  ;;  %vm442_vm0 = vcmask 1046528   ;;  %vm590_vm1 = vcmask 1044480  }
 0x10f   : > { %5030 = vmatprep.subr.bf16.mxu1 %v8108_v0  ;;  %v962_v3 = vld [vmem:[#allocation4 + $0x10] sm:$0xff]  ;;  %v4742_v4 = vpack.c.bf16 %v964_v2, %v961_v1  ;;  %v965_v5 = vld [vmem:[#allocation4 + $0x28] sm:$0xff]  ;;  %v960_v6 = vld [vmem:[#allocation4] sm:$0xff]  ;;  %vm516_vm2 = vcmask 1045504   ;;  %vm738_vm3 = vcmask 1042432   ;;  %vm664_vm4 = vcmask 1043456  }
 0x110   : > { %v963_v7 = vld [vmem:[#allocation4 + $0x18] sm:$0xff]  ;;  %v5031_v8 = vpack.c.bf16 %v965_v5, %v962_v3  ;;  %v970_v11 = vld [vmem:[#allocation4 + $0x50] sm:$0xff]  ;;  %v968_v12 = vld [vmem:[#allocation4 + $0x40] sm:$0xff]  ;;  %vm886_vm5 = vcmask 1040384   ;;  %vm812_vm6 = vcmask 1041408   ;;  %s4330_s19 = smul.u32 24, %s6302_s27 }
 0x111   : > { %v4744_v9 = vpack.c.bf16 %v963_v7, %v960_v6  ;;  %v967_v10 = vld [vmem:[#allocation4 + $0x38] sm:$0xff]  ;;  %4743 = vmatprep.subr.bf16.mxu0 %v4742_v4  ;;  %v966_v15 = vld [vmem:[#allocation4 + $0x30] sm:$0xff]  ;;  %v969_v16 = vld [vmem:[#allocation4 + $0x48] sm:$0xff]  ;;  %s5743_s22 = smul.u32 48, %s6306_s28  ;;  %s4338_s28 = sshll.u32 %s6688_s3, 4  ;;  %s8030_s28 = int_to_ptr.vmem [resolvable:$true] %s4338_s28 }
 0x112   : > { %v4746_v13 = vpack.c.bf16 %v970_v11, %v967_v10  ;;  %v971_v14 = vld [vmem:[#allocation4 + $0x58] sm:$0xff]  ;;  %5032 = vmatpush1.bf16.msra.mxu1 %v5031_v8  ;;  %v4748_v18 = vpack.c.bf16 %v969_v16, %v966_v15  ;;  %v973_v19 = vld [vmem:[#allocation4 + $0x68] sm:$0xff]  ;;  %v976_v20 = vld [vmem:[#allocation4 + $0x80] sm:$0xff]  ;;  %s8160_s12 = sand.u32 1, %s6294_s25   ;;  %s6206_s14 = scalar_lea.vmem %s8030_s28, 3072 }
 0x113   : > { %4745 = vmatpush1.bf16.msra.mxu0 %v4744_v9  ;;  %v5034_v17 = vpack.c.bf16 %v971_v14, %v968_v12  ;;  %v974_v21 = vld [vmem:[#allocation4 + $0x70] sm:$0xff]  ;;  %5033 = vmatprep.subr.bf16.mxu1 %v8108_v0  ;;  %v4750_v22 = vpack.c.bf16 %v976_v20, %v973_v19  ;;  %v977_v23 = vld [vmem:[#allocation4 + $0x88] sm:$0xff]  ;;  %v972_v24 = vld [vmem:[#allocation4 + $0x60] sm:$0xff]  ;;  %s4335_s26 = sadd.s32 %s5743_s22, %s4330_s19  ;;  %s8036_s13 = scalar_lea.sflag [#allocation6], %s8160_s12 }
 0x114   : > { %4747 = vmatprep.subr.bf16.mxu0 %v4746_v13  ;;  %v975_v25 = vld [vmem:[#allocation4 + $0x78] sm:$0xff]  ;;  %v982_v27 = vld [vmem:[#allocation4 + $0xb0] sm:$0xff]  ;;  %v5037_v28 = vpack.c.bf16 %v977_v23, %v974_v21  ;;  %v980_v30 = vld [vmem:[#allocation4 + $0xa0] sm:$0xff]  ;;  %s4521_s27 = sshll.u32 %s4335_s26, 7  ;;  %p6207_p10 = scmp.ne.s32.totalorder %s8030_s28, %s6206_s14 }
 0x115   : > { %v979_v26 = vld [vmem:[#allocation4 + $0x98] sm:$0xff]  ;;  %v4752_v29 = vpack.c.bf16 %v975_v25, %v972_v24  ;;  %v978_v33 = vld [vmem:[#allocation4 + $0x90] sm:$0xff]  ;;  %v981_v34 = vld [vmem:[#allocation4 + $0xa8] sm:$0xff]  ;;  %p8161_p11 = scmp.ne.s32.totalorder %s8126_s15, 0  ;;  %s6333_s23 = smov [#allocation15]  }
 0x116   : > { %5035 = vmatpush1.bf16.msra.mxu1 %v5034_v17  ;;  %v4754_v31 = vpack.c.bf16 %v982_v27, %v979_v26  ;;  %v983_v32 = vld [vmem:[#allocation4 + $0xb8] sm:$0xff]  ;;  %v985_v35 = vld [vmem:[#allocation4 + $0xc8] sm:$0xff]  ;;  %v988_v36 = vld [vmem:[#allocation4 + $0xe0] sm:$0xff]  ;;  %v4756_v38 = vpack.c.bf16 %v981_v34, %v978_v33  ;;  %s6210_s1 = sshll.u32 %s6333_s23, 4  ;;  %s6211_s1 = int_to_ptr.vmem [resolvable:$false] %s6210_s1 }
 0x117   : > { %4749 = vmatpush1.bf16.msra.mxu0 %v4748_v18  ;;  %5036 = vmatprep.subr.bf16.mxu1 %v8108_v0  ;;  %v5040_v37 = vpack.c.bf16 %v983_v32, %v980_v30  ;;  %v986_v39 = vld [vmem:[#allocation4 + $0xd0] sm:$0xff]  ;;  %v4758_v40 = vpack.c.bf16 %v988_v36, %v985_v35  ;;  %v989_v41 = vld [vmem:[#allocation4 + $0xe8] sm:$0xff]  ;;  %v984_v42 = vld [vmem:[#allocation4 + $0xc0] sm:$0xff]  ;;  %p6208_p13 = pnand %p6207_p10, %p8161_p11  ;;  %s6212_s21 = scalar_lea.vmem %s6211_s1, 6144 }
 0x118   : > { %4751 = vmatprep.subr.bf16.mxu0 %v4750_v22  ;;  %v987_v43 = vld [vmem:[#allocation4 + $0xd8] sm:$0xff]  ;;  %v994_v45 = vld [vmem:[#allocation4 + $0x110] sm:$0xff]  ;;  %v5043_v46 = vpack.c.bf16 %v989_v41, %v986_v39  ;;  %v992_v48 = vld [vmem:[#allocation4 + $0x100] sm:$0xff]  ;;  %p6213_p3 = scmp.lt.s32.totalorder %s8030_s28, %s6211_s1  ;;  %p6214_p0 = scmp.lt.s32.totalorder %s6212_s21, %s6206_s14 }
 0x119   : > { %v991_v44 = vld [vmem:[#allocation4 + $0xf8] sm:$0xff]  ;;  %v4760_v47 = vpack.c.bf16 %v987_v43, %v984_v42  ;;  %v990_v51 = vld [vmem:[#allocation4 + $0xf0] sm:$0xff]  ;;  %v993_v52 = vld [vmem:[#allocation4 + $0x108] sm:$0xff]  ;;  %p6209_p2 = pneg %p6208_p13 }
 0x11a   : > { %5038 = vmatpush1.bf16.msra.mxu1 %v5037_v28  ;;  %v4762_v49 = vpack.c.bf16 %v994_v45, %v991_v44  ;;  %v995_v50 = vld [vmem:[#allocation4 + $0x118] sm:$0xff]  ;;  %v997_v53 = vld [vmem:[#allocation4 + $0x128] sm:$0xff]  ;;  %v1000_v54 = vld [vmem:[#allocation4 + $0x140] sm:$0xff]  ;;  %v4764_v56 = vpack.c.bf16 %v993_v52, %v990_v51  ;;  %p6215_p8 = por %p6214_p0, %p6213_p3 }
 0x11b   : > { %4753 = vmatpush1.bf16.msra.mxu0 %v4752_v29  ;;  %5039 = vmatprep.subr.bf16.mxu1 %v8108_v0  ;;  %v5046_v55 = vpack.c.bf16 %v995_v50, %v992_v48  ;;  %v998_v57 = vld [vmem:[#allocation4 + $0x130] sm:$0xff]  ;;  %v4766_v58 = vpack.c.bf16 %v1000_v54, %v997_v53  ;;  %v1001_v59 = vld [vmem:[#allocation4 + $0x148] sm:$0xff]  ;;  %v996_v60 = vld [vmem:[#allocation4 + $0x120] sm:$0xff] }
 0x11c   : > { %4755 = vmatprep.subr.bf16.mxu0 %v4754_v31  ;;  %v999_v61 = vld [vmem:[#allocation4 + $0x138] sm:$0xff]  ;;  %v1006_v63 = vld [vmem:[#allocation4 + $0x170] sm:$0xff]  ;;  %v5049_v1 = vpack.c.bf16 %v1001_v59, %v998_v57  ;;  %v1004_v3 = vld [vmem:[#allocation4 + $0x160] sm:$0xff]  ;;  %p6216_p12 = pnand %p6215_p8, %p6209_p2 }
 0x11d   : > { %v1003_v62 = vld [vmem:[#allocation4 + $0x158] sm:$0xff]  ;;  %v4768_v2 = vpack.c.bf16 %v999_v61, %v996_v60  ;;  %v1002_v6 = vld [vmem:[#allocation4 + $0x150] sm:$0xff]  ;;  %v1005_v7 = vld [vmem:[#allocation4 + $0x168] sm:$0xff] }
 0x11e   : > { %5041 = vmatpush1.bf16.msra.mxu1 %v5040_v37  ;;  %v4770_v4 = vpack.c.bf16 %v1006_v63, %v1003_v62  ;;  %v1007_v5 = vld [vmem:[#allocation4 + $0x178] sm:$0xff]  ;;  %v1009_v8 = vld [vmem:[#allocation4 + $0x188] sm:$0xff]  ;;  %v1012_v9 = vld [vmem:[#allocation4 + $0x1a0] sm:$0xff]  ;;  %v4772_v11 = vpack.c.bf16 %v1005_v7, %v1002_v6 }
 0x11f   : > { %4757 = vmatpush1.bf16.msra.mxu0 %v4756_v38  ;;  %5042 = vmatprep.subr.bf16.mxu1 %v8108_v0  ;;  %v5052_v10 = vpack.c.bf16 %v1007_v5, %v1004_v3  ;;  %v1010_v12 = vld [vmem:[#allocation4 + $0x190] sm:$0xff]  ;;  %v4774_v13 = vpack.c.bf16 %v1012_v9, %v1009_v8  ;;  %v1013_v14 = vld [vmem:[#allocation4 + $0x1a8] sm:$0xff]  ;;  %v1008_v15 = vld [vmem:[#allocation4 + $0x180] sm:$0xff] }
 0x120   : > { %4759 = vmatprep.subr.bf16.mxu0 %v4758_v40  ;;  %v1011_v16 = vld [vmem:[#allocation4 + $0x198] sm:$0xff]  ;;  %v1018_v18 = vld [vmem:[#allocation4 + $0x1d0] sm:$0xff]  ;;  %v5055_v19 = vpack.c.bf16 %v1013_v14, %v1010_v12  ;;  %v1016_v21 = vld [vmem:[#allocation4 + $0x1c0] sm:$0xff] }
 0x121   : > { %v1015_v17 = vld [vmem:[#allocation4 + $0x1b8] sm:$0xff]  ;;  %v4776_v20 = vpack.c.bf16 %v1011_v16, %v1008_v15  ;;  %v1014_v26 = vld [vmem:[#allocation4 + $0x1b0] sm:$0xff]  ;;  %v1017_v27 = vld [vmem:[#allocation4 + $0x1c8] sm:$0xff] }
 0x122   : > { %5044 = vmatpush1.bf16.msra.mxu1 %v5043_v46  ;;  %v6701_v22 = vld [vmem:[%s6622_s17] sm:$0xff]  ;;  %v6704_v23 = vld [vmem:[%s6622_s17 + $0x8] sm:$0xff]  ;;  %v4778_v24 = vpack.c.bf16 %v1018_v18, %v1015_v17  ;;  %v1021_v30 = vld [vmem:[#allocation4 + $0x1e8] sm:$0xff]  ;;  %v4780_v34 = vpack.c.bf16 %v1017_v27, %v1014_v26 }
 0x123   : > { %4761 = vmatpush1.bf16.msra.mxu0 %v4760_v47  ;;  %5045 = vmatprep.subr.bf16.mxu1 %v8108_v0  ;;  %v1019_v25 = vld [vmem:[#allocation4 + $0x1d8] sm:$0xff]  ;;  %v443_v28 = vrot.slane %v6701_v22, 1  ;;  %v444_v29 = vrot.slane %v6704_v23, 1  ;;  %v1024_v31 = vld [vmem:[#allocation4 + $0x200] sm:$0xff]  ;;  %v1022_v35 = vld [vmem:[#allocation4 + $0x1f0] sm:$0xff] }
 0x124   : > { %4763 = vmatprep.subr.bf16.mxu0 %v4762_v49  ;;  %v5058_v33 = vpack.c.bf16 %v1019_v25, %v1016_v21  ;;  %v4782_v36 = vpack.c.bf16 %v1024_v31, %v1021_v30  ;;  %v1025_v37 = vld [vmem:[#allocation4 + $0x208] sm:$0xff]  ;;  %v1020_v38 = vld [vmem:[#allocation4 + $0x1e0] sm:$0xff]  ;;  %v1023_v39 = vld [vmem:[#allocation4 + $0x1f8] sm:$0xff] }
 0x125   : > { %v445_v32 = vsel %vm442_vm0, %v443_v28, %v444_v29  ;;  %v1027_v40 = vld [vmem:[#allocation4 + $0x218] sm:$0xff]  ;;  %v1030_v41 = vld [vmem:[#allocation4 + $0x230] sm:$0xff]  ;;  %v5061_v42 = vpack.c.bf16 %v1025_v37, %v1022_v35  ;;  %v4784_v43 = vpack.c.bf16 %v1023_v39, %v1020_v38  ;;  %v1028_v44 = vld [vmem:[#allocation4 + $0x220] sm:$0xff] }
 0x126   : > { %5047 = vmatpush1.bf16.msra.mxu1 %v5046_v55  ;;  %2518 = vmatprep.mubr.f32.mxu1 %v445_v32  ;;  %v4786_v45 = vpack.c.bf16 %v1030_v41, %v1027_v40  ;;  %v1031_v46 = vld [vmem:[#allocation4 + $0x238] sm:$0xff]  ;;  %v1026_v47 = vld [vmem:[#allocation4 + $0x210] sm:$0xff]  ;;  %v1029_v48 = vld [vmem:[#allocation4 + $0x228] sm:$0xff] }
 0x127   : > { %4765 = vmatpush1.bf16.msra.mxu0 %v4764_v56  ;;  %5048 = vmatprep.subr.bf16.mxu1 %v8108_v0  ;;  %v1033_v49 = vld [vmem:[#allocation4 + $0x248] sm:$0xff]  ;;  %v1036_v50 = vld [vmem:[#allocation4 + $0x260] sm:$0xff]  ;;  %v5064_v51 = vpack.c.bf16 %v1031_v46, %v1028_v44  ;;  %v4788_v52 = vpack.c.bf16 %v1029_v48, %v1026_v47  ;;  %v1034_v53 = vld [vmem:[#allocation4 + $0x250] sm:$0xff] }
 0x128   : > { %4767 = vmatprep.subr.bf16.mxu0 %v4766_v58  ;;  %1473 = vmatprep.mubr.f32.mxu0 %v445_v32  ;;  %v4790_v54 = vpack.c.bf16 %v1036_v50, %v1033_v49  ;;  %v1037_v55 = vld [vmem:[#allocation4 + $0x268] sm:$0xff]  ;;  %v1032_v56 = vld [vmem:[#allocation4 + $0x240] sm:$0xff]  ;;  %v1035_v57 = vld [vmem:[#allocation4 + $0x258] sm:$0xff] }
 0x129   : > { %v1039_v58 = vld [vmem:[#allocation4 + $0x278] sm:$0xff]  ;;  %v1042_v59 = vld [vmem:[#allocation4 + $0x290] sm:$0xff]  ;;  %v5067_v60 = vpack.c.bf16 %v1037_v55, %v1034_v53  ;;  %v4792_v61 = vpack.c.bf16 %v1035_v57, %v1032_v56  ;;  %v1040_v62 = vld [vmem:[#allocation4 + $0x280] sm:$0xff] }
 0x12a   : > { %5050 = vmatpush1.bf16.msra.mxu1 %v5049_v1  ;;  %v4794_v63 = vpack.c.bf16 %v1042_v59, %v1039_v58  ;;  %v1043_v1 = vld [vmem:[#allocation4 + $0x298] sm:$0xff]  ;;  %v1041_v3 = vld [vmem:[#allocation4 + $0x288] sm:$0xff]  ;;  %v1048_v5 = vld [vmem:[#allocation4 + $0x2c0] sm:$0xff] }
 0x12b   : > { %4769 = vmatpush1.bf16.msra.mxu0 %v4768_v2  ;;  %5051 = vmatprep.subr.bf16.mxu1 %v8108_v0  ;;  %v1038_v2 = vld [vmem:[#allocation4 + $0x270] sm:$0xff]  ;;  %v5070_v6 = vpack.c.bf16 %v1043_v1, %v1040_v62  ;;  %v1047_v12 = vld [vmem:[#allocation4 + $0x2b8] sm:$0xff]  ;;  %v1052_v17 = vld [vmem:[#allocation4 + $0x2e0] sm:$0xff] }
 0x12c   : > { %4771 = vmatprep.subr.bf16.mxu0 %v4770_v4  ;;  %v1045_v4 = vld [vmem:[#allocation4 + $0x2a8] sm:$0xff]  ;;  %v4796_v7 = vpack.c.bf16 %v1041_v3, %v1038_v2  ;;  %v1046_v8 = vld [vmem:[#allocation4 + $0x2b0] sm:$0xff]  ;;  %v1060_v25 = vld [vmem:[#allocation4 + $0x320] sm:$0xff] }
 0x12d   : > { %v4798_v9 = vpack.c.bf16 %v1048_v5, %v1045_v4  ;;  %v1054_v14 = vld [vmem:[#allocation4 + $0x2f0] sm:$0xff]  ;;  %v1053_v21 = vld [vmem:[#allocation4 + $0x2e8] sm:$0xff]  ;;  %v1056_v31 = vld [vmem:[#allocation4 + $0x300] sm:$0xff] }
 0x12e   : > { %5053 = vmatpush1.bf16.msra.mxu1 %v5052_v10  ;;  %v1049_v10 = vld [vmem:[#allocation4 + $0x2c8] sm:$0xff]  ;;  %v1059_v32 = vld [vmem:[#allocation4 + $0x318] sm:$0xff]  ;;  %v1066_v35 = vld [vmem:[#allocation4 + $0x350] sm:$0xff] }
 0x12f   : > { %4773 = vmatpush1.bf16.msra.mxu0 %v4772_v11  ;;  %5054 = vmatprep.subr.bf16.mxu1 %v8108_v0  ;;  %v1044_v11 = vld [vmem:[#allocation4 + $0x2a0] sm:$0xff]  ;;  %v5073_v15 = vpack.c.bf16 %v1049_v10, %v1046_v8  ;;  %v1058_v37 = vld [vmem:[#allocation4 + $0x310] sm:$0xff]  ;;  %v1061_v38 = vld [vmem:[#allocation4 + $0x328] sm:$0xff]  ;;  %v4808_v39 = vpack.c.bf16 %v1059_v32, %v1056_v31 }
 0x130   : > { %4775 = vmatprep.subr.bf16.mxu0 %v4774_v13  ;;  %v1051_v13 = vld [vmem:[#allocation4 + $0x2d8] sm:$0xff]  ;;  %v4800_v16 = vpack.c.bf16 %v1047_v12, %v1044_v11  ;;  %v6719_v26 = vld [vmem:[%s6622_s17 + $0x10] sm:$0xff]  ;;  %v1078_v59 = vld [vmem:[#allocation4 + $0x3b0] sm:$0xff] }
 0x131   : > { %v4802_v18 = vpack.c.bf16 %v1054_v14, %v1051_v13  ;;  %v1065_v44 = vld [vmem:[#allocation4 + $0x348] sm:$0xff]  ;;  %v6732_v46 = vld [vmem:[%s6622_s17 + $0x20] sm:$0xff]  ;;  %v1072_v48 = vld [vmem:[#allocation4 + $0x380] sm:$0xff] }
 0x132   : > { %5056 = vmatpush1.bf16.msra.mxu1 %v5055_v19  ;;  %v1055_v19 = vld [vmem:[#allocation4 + $0x2f8] sm:$0xff]  ;;  %v1069_v47 = vld [vmem:[#allocation4 + $0x368] sm:$0xff]  ;;  %v1064_v49 = vld [vmem:[#allocation4 + $0x340] sm:$0xff] }
 0x133   : > { %4777 = vmatpush1.bf16.msra.mxu0 %v4776_v20  ;;  %5057 = vmatprep.subr.bf16.mxu1 %v8108_v0  ;;  %v1050_v20 = vld [vmem:[#allocation4 + $0x2d0] sm:$0xff]  ;;  %v5076_v27 = vpack.c.bf16 %v1055_v19, %v1052_v17  ;;  %v1067_v50 = vld [vmem:[#allocation4 + $0x358] sm:$0xff]  ;;  %v1068_v53 = vld [vmem:[#allocation4 + $0x360] sm:$0xff] }
 0x134   : > { %4779 = vmatprep.subr.bf16.mxu0 %v4778_v24  ;;  %v1057_v24 = vld [vmem:[#allocation4 + $0x308] sm:$0xff]  ;;  %v4804_v28 = vpack.c.bf16 %v1053_v21, %v1050_v20  ;;  %v1071_v55 = vld [vmem:[#allocation4 + $0x378] sm:$0xff]  ;;  %v5082_v56 = vpack.c.bf16 %v1067_v50, %v1064_v49  ;;  %v1074_v4 = vld [vmem:[#allocation4 + $0x390] sm:$0xff] }
 0x135   : > { %v4806_v30 = vpack.c.bf16 %v1060_v25, %v1057_v24  ;;  %v6739_v57 = vld [vmem:[%s6622_s17 + $0x28] sm:$0xff]  ;;  %v6747_v2 = vld [vmem:[%s6622_s17 + $0x30] sm:$0xff]  ;;  %v6755_v14 = vld [vmem:[%s6622_s17 + $0x38] sm:$0xff] }
 0x136   : > { %5059 = vmatpush1.bf16.msra.mxu1 %v5058_v33  ;;  %v446_v33 = vrot.slane %v6719_v26, 1  ;;  %v1075_v58 = vld [vmem:[#allocation4 + $0x398] sm:$0xff]  ;;  %v452_v1 = vrot.slane %v6739_v57, 1  ;;  %v1077_v5 = vld [vmem:[#allocation4 + $0x3a8] sm:$0xff]  ;;  %v1084_v8 = vld [vmem:[#allocation4 + $0x3e0] sm:$0xff]  ;;  %v454_v12 = vrot.slane %v6747_v2, 1 }
 0x137   : > { %4781 = vmatpush1.bf16.msra.mxu0 %v4780_v34  ;;  %5060 = vmatprep.subr.bf16.mxu1 %v8108_v0  ;;  %v1063_v34 = vld [vmem:[#allocation4 + $0x338] sm:$0xff]  ;;  %v4818_v3 = vpack.c.bf16 %v1078_v59, %v1075_v58  ;;  %v4820_v13 = vpack.c.bf16 %v1077_v5, %v1074_v4  ;;  %v1090_v20 = vld [vmem:[#allocation4 + $0x410] sm:$0xff]  ;;  %v1085_v24 = vld [vmem:[#allocation4 + $0x3e8] sm:$0xff] }
 0x138   : > { %4783 = vmatprep.subr.bf16.mxu0 %v4782_v36  ;;  %v6724_v36 = vld [vmem:[%s6622_s17 + $0x18] sm:$0xff]  ;;  %v447_v40 = vsel %vm442_vm0, %v444_v29, %v446_v33  ;;  %v4810_v41 = vpack.c.bf16 %v1066_v35, %v1063_v34  ;;  %v1079_v10 = vld [vmem:[#allocation4 + $0x3b8] sm:$0xff]  ;;  %v455_v25 = vsel %vm442_vm0, %v452_v1, %v454_v12 }
 0x139   : > { %v1083_v17 = vld [vmem:[#allocation4 + $0x3d8] sm:$0xff]  ;;  %v1082_v21 = vld [vmem:[#allocation4 + $0x3d0] sm:$0xff]  ;;  %v1093_v35 = vld [vmem:[#allocation4 + $0x428] sm:$0xff] }
 0x13a   : > { %5062 = vmatpush1.bf16.msra.mxu1 %v5061_v42  ;;  %v448_v42 = vrot.slane %v6724_v36, 1  ;;  %v1087_v19 = vld [vmem:[#allocation4 + $0x3f8] sm:$0xff]  ;;  %v1086_v32 = vld [vmem:[#allocation4 + $0x3f0] sm:$0xff]  ;;  %v5091_v34 = vpack.c.bf16 %v1085_v24, %v1082_v21  ;;  %v1101_v59 = vld [vmem:[#allocation4 + $0x468] sm:$0xff] }
 0x13b   : > { %4785 = vmatpush1.bf16.msra.mxu0 %v4784_v43  ;;  %5063 = vmatprep.subr.bf16.mxu1 %v8108_v0  ;;  %v1062_v43 = vld [vmem:[#allocation4 + $0x330] sm:$0xff]  ;;  %v4826_v31 = vpack.c.bf16 %v1090_v20, %v1087_v19  ;;  %v1099_v49 = vld [vmem:[#allocation4 + $0x458] sm:$0xff]  ;;  %v1113_v24 = vld [vmem:[#allocation4 + $0x4c8] sm:$0xff] }
 0x13c   : > { %4787 = vmatprep.subr.bf16.mxu0 %v4786_v45  ;;  %v5079_v45 = vpack.c.bf16 %v1061_v38, %v1058_v37  ;;  %v449_v29 = vsel %vm442_vm0, %v446_v33, %v448_v42  ;;  %v1089_v33 = vld [vmem:[#allocation4 + $0x408] sm:$0xff]  ;;  %v1096_v37 = vld [vmem:[#allocation4 + $0x440] sm:$0xff]  ;;  %v1102_v50 = vld [vmem:[#allocation4 + $0x470] sm:$0xff] }
 0x13d   : > { %v1088_v38 = vld [vmem:[#allocation4 + $0x400] sm:$0xff]  ;;  %v1098_v58 = vld [vmem:[#allocation4 + $0x450] sm:$0xff] }
 0x13e   : > { %5065 = vmatpush1.bf16.msra.mxu1 %v5064_v51  ;;  %v4812_v51 = vpack.c.bf16 %v1065_v44, %v1062_v43  ;;  %v4828_v43 = vpack.c.bf16 %v1089_v33, %v1086_v32  ;;  %v4830_v44 = vpack.c.bf16 %v1096_v37, %v1093_v35  ;;  %v6786_v5 = vld [vmem:[%s6622_s17 + $0x58] sm:$0xff]  ;;  %v1115_v32 = vld [vmem:[#allocation4 + $0x4d8] sm:$0xff] }
 0x13f   : > { %4789 = vmatpush1.bf16.msra.mxu0 %v4788_v52  ;;  %5066 = vmatprep.subr.bf16.mxu1 %v8108_v0  ;;  %v450_v52 = vrot.slane %v6732_v46, 1  ;;  %v1110_v21 = vld [vmem:[#allocation4 + $0x4b0] sm:$0xff]  ;;  %v6802_v35 = vld [vmem:[%s6622_s17 + $0x68] sm:$0xff] }
 0x140   : > { %4791 = vmatprep.subr.bf16.mxu0 %v4790_v54  ;;  %v4814_v54 = vpack.c.bf16 %v1072_v48, %v1069_v47  ;;  %v1095_v47 = vld [vmem:[#allocation4 + $0x438] sm:$0xff]  ;;  %v4844_v37 = vpack.c.bf16 %v1113_v24, %v1110_v21  ;;  %v1141_v24 = vld [vmem:[#allocation4 + $0x5a8] sm:$0xff] }
 0x141   : > { %v451_v62 = vsel %vm442_vm0, %v448_v42, %v450_v52  ;;  %v453_v11 = vsel %vm442_vm0, %v450_v52, %v452_v1  ;;  %v6770_v42 = vld [vmem:[%s6622_s17 + $0x48] sm:$0xff] }
 0x142   : > { %5068 = vmatpush1.bf16.msra.mxu1 %v5067_v60  ;;  %v1070_v60 = vld [vmem:[#allocation4 + $0x370] sm:$0xff]  ;;  %v1103_v1 = vld [vmem:[#allocation4 + $0x478] sm:$0xff] }
 0x143   : > { %4793 = vmatpush1.bf16.msra.mxu0 %v4792_v61  ;;  %5069 = vmatprep.subr.bf16.mxu1 %v8108_v0  ;;  %v1073_v61 = vld [vmem:[#allocation4 + $0x388] sm:$0xff] }
 0x144   : > { %4795 = vmatprep.subr.bf16.mxu0 %v4794_v63  ;;  %v4816_v63 = vpack.c.bf16 %v1071_v55, %v1068_v53  ;;  %v460_v53 = vrot.slane %v6770_v42, 1 }
 0x146   : > { %5071 = vmatpush1.bf16.msra.mxu1 %v5070_v6  ;;  %v5085_v6 = vpack.c.bf16 %v1073_v61, %v1070_v60  ;;  %v1105_v61 = vld [vmem:[#allocation4 + $0x488] sm:$0xff] }
 0x147   : > { %4797 = vmatpush1.bf16.msra.mxu0 %v4796_v7  ;;  %5072 = vmatprep.subr.bf16.mxu1 %v8108_v0  ;;  %v1081_v7 = vld [vmem:[#allocation4 + $0x3c8] sm:$0xff] }
 0x148   : > { %4799 = vmatprep.subr.bf16.mxu0 %v4798_v9  ;;  %v1076_v9 = vld [vmem:[#allocation4 + $0x3a0] sm:$0xff] }
 0x14a   : > { %5074 = vmatpush1.bf16.msra.mxu1 %v5073_v15  ;;  %v4822_v15 = vpack.c.bf16 %v1084_v8, %v1081_v7  ;;  %v1104_v8 = vld [vmem:[#allocation4 + $0x480] sm:$0xff] }
 0x14b   : > { %4801 = vmatpush1.bf16.msra.mxu0 %v4800_v16  ;;  %5075 = vmatprep.subr.bf16.mxu1 %v8108_v0  ;;  %v1080_v16 = vld [vmem:[#allocation4 + $0x3c0] sm:$0xff] }
 0x14c   : > { %4803 = vmatprep.subr.bf16.mxu0 %v4802_v18  ;;  %v5088_v18 = vpack.c.bf16 %v1079_v10, %v1076_v9  ;;  %v1107_v9 = vld [vmem:[#allocation4 + $0x498] sm:$0xff] }
 0x14d   : > { %v4840_v19 = vpack.c.bf16 %v1107_v9, %v1104_v8  ;;  %v1135_v8 = vld [vmem:[#allocation4 + $0x578] sm:$0xff]  ;;  %v1138_v9 = vld [vmem:[#allocation4 + $0x590] sm:$0xff] }
 0x14e   : > { %5077 = vmatpush1.bf16.msra.mxu1 %v5076_v27  ;;  %v456_v27 = vrot.slane %v6755_v14, 1 }
 0x14f   : > { %4805 = vmatpush1.bf16.msra.mxu0 %v4804_v28  ;;  %5078 = vmatprep.subr.bf16.mxu1 %v8108_v0  ;;  %v4824_v28 = vpack.c.bf16 %v1083_v17, %v1080_v16  ;;  %v464_v17 = vrot.slane %v6786_v5, 1 }
 0x150   : > { %4807 = vmatprep.subr.bf16.mxu0 %v4806_v30  ;;  %v6763_v30 = vld [vmem:[%s6622_s17 + $0x40] sm:$0xff] }
 0x151   : > { %2519 = vmatmul.mubr.f32.vlgmr.msra.gmra.mrb[0].mxu1 %v6701_v22 }
 0x152   : > { %1474 = vmatmul.mubr.f32.vlgmr.msra.gmra.mrb[0].mxu0 %v6701_v22  ;;  %2523 = vmatprep.mubr.f32.mxu1 %v447_v40 }
 0x153   : > { %4809 = vmatpush1.bf16.msra.mxu0 %v4808_v39  ;;  %1479 = vmatprep.mubr.f32.mxu0 %v447_v40  ;;  %v1091_v39 = vld [vmem:[#allocation4 + $0x418] sm:$0xff]  ;;  %v457_v40 = vsel %vm442_vm0, %v454_v12, %v456_v27  ;;  %v1114_v12 = vld [vmem:[#allocation4 + $0x4d0] sm:$0xff] }
 0x154   : > { %4811 = vmatprep.subr.bf16.mxu0 %v4810_v41  ;;  %5080 = vmatpush1.bf16.msra.mxu1 %v5079_v45  ;;  %v458_v41 = vrot.slane %v6763_v30, 1  ;;  %v1092_v45 = vld [vmem:[#allocation4 + $0x420] sm:$0xff]  ;;  %v5094_v48 = vpack.c.bf16 %v1091_v39, %v1088_v38 }
 0x155   : > { %2524 = vmatmul.mubr.f32.gmra.mrb[2].mxu1 %v6704_v23  ;;  %5081 = vmatprep.subr.bf16.mxu1 %v8108_v0  ;;  %v4832_v55 = vpack.c.bf16 %v1095_v47, %v1092_v45  ;;  %v1116_v39 = vld [vmem:[#allocation4 + $0x4e0] sm:$0xff]  ;;  %v1118_v45 = vld [vmem:[#allocation4 + $0x4f0] sm:$0xff]  ;;  %v1121_v47 = vld [vmem:[#allocation4 + $0x508] sm:$0xff] }
 0x156   : > { %1480 = vmatmul.mubr.f32.gmra.mrb[2].mxu0 %v6704_v23  ;;  %2528 = vmatprep.mubr.f32.mxu1 %v449_v29  ;;  %v459_v52 = vsel %vm442_vm0, %v456_v27, %v458_v41  ;;  %v1117_v27 = vld [vmem:[#allocation4 + $0x4e8] sm:$0xff] }
 0x157   : > { %1485 = vmatprep.mubr.f32.mxu0 %v449_v29  ;;  %4813 = vmatpush1.bf16.msra.mxu0 %v4812_v51  ;;  %v1094_v29 = vld [vmem:[#allocation4 + $0x430] sm:$0xff]  ;;  %v1097_v51 = vld [vmem:[#allocation4 + $0x448] sm:$0xff] }
 0x158   : > { %4815 = vmatprep.subr.bf16.mxu0 %v4814_v54  ;;  %5083 = vmatpush1.bf16.msra.mxu1 %v5082_v56  ;;  %v6778_v54 = vld [vmem:[%s6622_s17 + $0x50] sm:$0xff]  ;;  %v4834_v56 = vpack.c.bf16 %v1102_v50, %v1099_v49  ;;  %v5097_v60 = vpack.c.bf16 %v1097_v51, %v1094_v29  ;;  %v468_v49 = vrot.slane %v6802_v35, 1 }
 0x159   : > { %2529 = vmatmul.mubr.f32.gmra.mrb[4].mxu1 %v6719_v26  ;;  %5084 = vmatprep.subr.bf16.mxu1 %v8108_v0  ;;  %v462_v4 = vrot.slane %v6778_v54, 1  ;;  %v6810_v50 = vld [vmem:[%s6622_s17 + $0x70] sm:$0xff] }
 0x15a   : > { %1486 = vmatmul.mubr.f32.gmra.mrb[4].mxu0 %v6719_v26  ;;  %2533 = vmatprep.mubr.f32.mxu1 %v451_v62 }
 0x15b   : > { %1491 = vmatprep.mubr.f32.mxu0 %v451_v62  ;;  %4817 = vmatpush1.bf16.msra.mxu0 %v4816_v63  ;;  %v1108_v62 = vld [vmem:[#allocation4 + $0x4a0] sm:$0xff]  ;;  %v463_v16 = vsel %vm442_vm0, %v460_v53, %v462_v4  ;;  %v465_v33 = vsel %vm442_vm0, %v462_v4, %v464_v17 }
 0x15c   : > { %4819 = vmatprep.subr.bf16.mxu0 %v4818_v3  ;;  %5086 = vmatpush1.bf16.msra.mxu1 %v5085_v6  ;;  %v1100_v63 = vld [vmem:[#allocation4 + $0x460] sm:$0xff]  ;;  %v461_v3 = vsel %vm442_vm0, %v458_v41, %v460_v53  ;;  %v4836_v6 = vpack.c.bf16 %v1101_v59, %v1098_v58  ;;  %v4838_v7 = vpack.c.bf16 %v1108_v62, %v1105_v61  ;;  %v1125_v53 = vld [vmem:[#allocation4 + $0x528] sm:$0xff]  ;;  %v470_v62 = vrot.slane %v6810_v50, 1 }
 0x15d   : > { %2534 = vmatmul.mubr.f32.gmra.mrb[6].mxu1 %v6724_v36  ;;  %5087 = vmatprep.subr.bf16.mxu1 %v8108_v0  ;;  %v5100_v10 = vpack.c.bf16 %v1103_v1, %v1100_v63  ;;  %v1132_v58 = vld [vmem:[#allocation4 + $0x560] sm:$0xff]  ;;  %v6818_v63 = vld [vmem:[%s6622_s17 + $0x78] sm:$0xff] }
 0x15e   : > { %1492 = vmatmul.mubr.f32.gmra.mrb[6].mxu0 %v6724_v36  ;;  %2538 = vmatprep.mubr.f32.mxu1 %v453_v11  ;;  %v1124_v59 = vld [vmem:[#allocation4 + $0x520] sm:$0xff] }
 0x15f   : > { %1497 = vmatprep.mubr.f32.mxu0 %v453_v11  ;;  %4821 = vmatpush1.bf16.msra.mxu0 %v4820_v13  ;;  %v1111_v11 = vld [vmem:[#allocation4 + $0x4b8] sm:$0xff]  ;;  %v1106_v13 = vld [vmem:[#allocation4 + $0x490] sm:$0xff]  ;;  %v1128_v4 = vld [vmem:[#allocation4 + $0x540] sm:$0xff] }
 0x160   : > { %4823 = vmatprep.subr.bf16.mxu0 %v4822_v15  ;;  %5089 = vmatpush1.bf16.msra.mxu1 %v5088_v18  ;;  %v1109_v15 = vld [vmem:[#allocation4 + $0x4a8] sm:$0xff]  ;;  %v6794_v18 = vld [vmem:[%s6622_s17 + $0x60] sm:$0xff]  ;;  %v4842_v20 = vpack.c.bf16 %v1114_v12, %v1111_v11  ;;  %v471_v12 = vsel %vm442_vm0, %v468_v49, %v470_v62 }
 0x161   : > { %2539 = vmatmul.mubr.f32.gmra.mrb[8].mxu1 %v6732_v46  ;;  %5090 = vmatprep.subr.bf16.mxu1 %v8108_v0  ;;  %v1133_v11 = vld [vmem:[#allocation4 + $0x568] sm:$0xff] }
 0x162   : > { %1498 = vmatmul.mubr.f32.gmra.mrb[8].mxu0 %v6732_v46  ;;  %2543 = vmatprep.mubr.f32.mxu1 %v455_v25 }
 0x163   : > { %1503 = vmatprep.mubr.f32.mxu0 %v455_v25  ;;  %4825 = vmatpush1.bf16.msra.mxu0 %v4824_v28  ;;  %v5103_v25 = vpack.c.bf16 %v1109_v15, %v1106_v13  ;;  %v1120_v28 = vld [vmem:[#allocation4 + $0x500] sm:$0xff]  ;;  %v472_v13 = vrot.slane %v6818_v63, 1  ;;  %v6826_v15 = vld [vmem:[%s6622_s17 + $0x80] sm:$0xff] }
 0x164   : > { %4827 = vmatprep.subr.bf16.mxu0 %v4826_v31  ;;  %5092 = vmatpush1.bf16.msra.mxu1 %v5091_v34  ;;  %v1112_v31 = vld [vmem:[#allocation4 + $0x4c0] sm:$0xff]  ;;  %v466_v34 = vrot.slane %v6794_v18, 1  ;;  %v4846_v38 = vpack.c.bf16 %v1120_v28, %v1117_v27  ;;  %v1139_v28 = vld [vmem:[#allocation4 + $0x598] sm:$0xff] }
 0x165   : > { %2544 = vmatmul.mubr.f32.gmra.mrb[10].mxu1 %v6739_v57  ;;  %5093 = vmatprep.subr.bf16.mxu1 %v8108_v0  ;;  %v5106_v41 = vpack.c.bf16 %v1115_v32, %v1112_v31  ;;  %v1136_v27 = vld [vmem:[#allocation4 + $0x580] sm:$0xff]  ;;  %v473_v31 = vsel %vm442_vm0, %v470_v62, %v472_v13  ;;  %v474_v32 = vrot.slane %v6826_v15, 1 }
 0x166   : > { %1504 = vmatmul.mubr.f32.gmra.mrb[10].mxu0 %v6739_v57  ;;  %2548 = vmatprep.mubr.f32.mxu1 %v457_v40  ;;  %v469_v61 = vsel %vm442_vm0, %v466_v34, %v468_v49  ;;  %v6842_v49 = vld [vmem:[%s6622_s17 + $0x90] sm:$0xff] }
 0x167   : > { %1509 = vmatprep.mubr.f32.mxu0 %v457_v40  ;;  %4829 = vmatpush1.bf16.msra.mxu0 %v4828_v43  ;;  %v1119_v40 = vld [vmem:[#allocation4 + $0x4f8] sm:$0xff]  ;;  %v478_v62 = vrot.slane %v6842_v49, 1 }
 0x168   : > { %4831 = vmatprep.subr.bf16.mxu0 %v4830_v44  ;;  %5095 = vmatpush1.bf16.msra.mxu1 %v5094_v48  ;;  %v1123_v43 = vld [vmem:[#allocation4 + $0x518] sm:$0xff]  ;;  %v1126_v44 = vld [vmem:[#allocation4 + $0x530] sm:$0xff]  ;;  %v467_v48 = vsel %vm442_vm0, %v464_v17, %v466_v34  ;;  %v4848_v29 = vpack.c.bf16 %v1119_v40, %v1116_v39  ;;  %v4858_v17 = vpack.c.bf16 %v1138_v9, %v1135_v8  ;;  %v1140_v39 = vld [vmem:[#allocation4 + $0x5a0] sm:$0xff] }
 0x169   : > { %2549 = vmatmul.mubr.f32.gmra.mrb[12].mxu1 %v6747_v2  ;;  %5096 = vmatprep.subr.bf16.mxu1 %v8108_v0  ;;  %v4850_v51 = vpack.c.bf16 %v1126_v44, %v1123_v43  ;;  %v1143_v40 = vld [vmem:[#allocation4 + $0x5b8] sm:$0xff]  ;;  %v1145_v43 = vld [vmem:[#allocation4 + $0x5c8] sm:$0xff] }
 0x16a   : > { %1510 = vmatmul.mubr.f32.gmra.mrb[12].mxu0 %v6747_v2  ;;  %2553 = vmatprep.mubr.f32.mxu1 %v459_v52  ;;  %v1147_v44 = vld [vmem:[#allocation4 + $0x5d8] sm:$0xff] }
 0x16b   : > { %1515 = vmatprep.mubr.f32.mxu0 %v459_v52  ;;  %4833 = vmatpush1.bf16.msra.mxu0 %v4832_v55  ;;  %v1122_v52 = vld [vmem:[#allocation4 + $0x510] sm:$0xff]  ;;  %v5109_v55 = vpack.c.bf16 %v1121_v47, %v1118_v45  ;;  %v475_v47 = vsel %vm442_vm0, %v472_v13, %v474_v32 }
 0x16c   : > { %4835 = vmatprep.subr.bf16.mxu0 %v4834_v56  ;;  %5098 = vmatpush1.bf16.msra.mxu1 %v5097_v60  ;;  %v1129_v56 = vld [vmem:[#allocation4 + $0x548] sm:$0xff]  ;;  %v1127_v60 = vld [vmem:[#allocation4 + $0x538] sm:$0xff]  ;;  %v4852_v1 = vpack.c.bf16 %v1125_v53, %v1122_v52  ;;  %v1150_v45 = vld [vmem:[#allocation4 + $0x5f0] sm:$0xff] }
 0x16d   : > { %2554 = vmatmul.mubr.f32.gmra.mrb[14].mxu1 %v6755_v14  ;;  %5099 = vmatprep.subr.bf16.mxu1 %v8108_v0  ;;  %v4866_v52 = vpack.c.bf16 %v1150_v45, %v1147_v44  ;;  %v1146_v53 = vld [vmem:[#allocation4 + $0x5d0] sm:$0xff]  ;;  %v594_v44 = vrot.slane %v6719_v26, 3  ;;  %v1159_v45 = vld [vmem:[#allocation4 + $0x638] sm:$0xff] }
 0x16e   : > { %1516 = vmatmul.mubr.f32.gmra.mrb[14].mxu0 %v6755_v14  ;;  %2558 = vmatprep.mubr.f32.mxu1 %v461_v3  ;;  %v6859_v9 = vld [vmem:[%s6622_s17 + $0xa0] sm:$0xff] }
 0x16f   : > { %1521 = vmatprep.mubr.f32.mxu0 %v461_v3  ;;  %4837 = vmatpush1.bf16.msra.mxu0 %v4836_v6  ;;  %v4854_v3 = vpack.c.bf16 %v1132_v58, %v1129_v56  ;;  %v1131_v6 = vld [vmem:[#allocation4 + $0x558] sm:$0xff]  ;;  %v1148_v56 = vld [vmem:[#allocation4 + $0x5e0] sm:$0xff] }
 0x170   : > { %4839 = vmatprep.subr.bf16.mxu0 %v4838_v7  ;;  %5101 = vmatpush1.bf16.msra.mxu1 %v5100_v10  ;;  %v5112_v7 = vpack.c.bf16 %v1127_v60, %v1124_v59  ;;  %v1130_v10 = vld [vmem:[#allocation4 + $0x550] sm:$0xff]  ;;  %v1151_v58 = vld [vmem:[#allocation4 + $0x5f8] sm:$0xff]  ;;  %v1153_v59 = vld [vmem:[#allocation4 + $0x608] sm:$0xff] }
 0x171   : > { %2559 = vmatmul.mubr.f32.gmra.mrb[16].mxu1 %v6763_v30  ;;  %5102 = vmatprep.subr.bf16.mxu1 %v8108_v0  ;;  %v5115_v21 = vpack.c.bf16 %v1133_v11, %v1130_v10  ;;  %v1156_v60 = vld [vmem:[#allocation4 + $0x620] sm:$0xff]  ;;  %v482_v11 = vrot.slane %v6859_v9, 1 }
 0x172   : > { %1522 = vmatmul.mubr.f32.gmra.mrb[16].mxu0 %v6763_v30  ;;  %2563 = vmatprep.mubr.f32.mxu1 %v463_v16 }
 0x173   : > { %1527 = vmatprep.mubr.f32.mxu0 %v463_v16  ;;  %4841 = vmatpush1.bf16.msra.mxu0 %v4840_v19  ;;  %v4856_v16 = vpack.c.bf16 %v1131_v6, %v1128_v4  ;;  %v1134_v19 = vld [vmem:[#allocation4 + $0x570] sm:$0xff]  ;;  %v5124_v4 = vpack.c.bf16 %v1151_v58, %v1148_v56  ;;  %v4870_v6 = vpack.c.bf16 %v1156_v60, %v1153_v59  ;;  %v1161_v58 = vld [vmem:[#allocation4 + $0x648] sm:$0xff] }
 0x174   : > { %4843 = vmatprep.subr.bf16.mxu0 %v4842_v20  ;;  %5104 = vmatpush1.bf16.msra.mxu1 %v5103_v25  ;;  %v1137_v20 = vld [vmem:[#allocation4 + $0x588] sm:$0xff]  ;;  %v1144_v25 = vld [vmem:[#allocation4 + $0x5c0] sm:$0xff]  ;;  %v1158_v56 = vld [vmem:[#allocation4 + $0x630] sm:$0xff] }
 0x175   : > { %2564 = vmatmul.mubr.f32.gmra.mrb[18].mxu1 %v6770_v42  ;;  %5105 = vmatprep.subr.bf16.mxu1 %v8108_v0  ;;  %v4860_v34 = vpack.c.bf16 %v1137_v20, %v1134_v19  ;;  %v1165_v60 = vld [vmem:[#allocation4 + $0x668] sm:$0xff] }
 0x176   : > { %1528 = vmatmul.mubr.f32.gmra.mrb[18].mxu0 %v6770_v42  ;;  %2568 = vmatprep.mubr.f32.mxu1 %v465_v33 }
 0x177   : > { %1533 = vmatprep.mubr.f32.mxu0 %v465_v33  ;;  %4845 = vmatpush1.bf16.msra.mxu0 %v4844_v37  ;;  %v6834_v33 = vld [vmem:[%s6622_s17 + $0x88] sm:$0xff]  ;;  %v4862_v37 = vpack.c.bf16 %v1144_v25, %v1141_v24 }
 0x178   : > { %4847 = vmatprep.subr.bf16.mxu0 %v4846_v38  ;;  %5107 = vmatpush1.bf16.msra.mxu1 %v5106_v41  ;;  %v5118_v38 = vpack.c.bf16 %v1139_v28, %v1136_v27  ;;  %v1142_v41 = vld [vmem:[#allocation4 + $0x5b0] sm:$0xff] }
 0x179   : > { %2569 = vmatmul.mubr.f32.gmra.mrb[20].mxu1 %v6778_v54  ;;  %5108 = vmatprep.subr.bf16.mxu1 %v8108_v0  ;;  %v6888_v27 = vld [vmem:[%s6622_s17 + $0xc0] sm:$0xff] }
 0x17a   : > { %1534 = vmatmul.mubr.f32.gmra.mrb[20].mxu0 %v6778_v54  ;;  %2573 = vmatprep.mubr.f32.mxu1 %v467_v48 }
 0x17b   : > { %1539 = vmatprep.mubr.f32.mxu0 %v467_v48  ;;  %4849 = vmatpush1.bf16.msra.mxu0 %v4848_v29  ;;  %v476_v48 = vrot.slane %v6834_v33, 1  ;;  %v4864_v29 = vpack.c.bf16 %v1143_v40, %v1140_v39  ;;  %v518_v39 = vrot.slane %v6704_v23, 2 }
 0x17c   : > { %4851 = vmatprep.subr.bf16.mxu0 %v4850_v51  ;;  %5110 = vmatpush1.bf16.msra.mxu1 %v5109_v55  ;;  %v5121_v51 = vpack.c.bf16 %v1145_v43, %v1142_v41  ;;  %v1149_v55 = vld [vmem:[#allocation4 + $0x5e8] sm:$0xff]  ;;  %v1152_v41 = vld [vmem:[#allocation4 + $0x600] sm:$0xff]  ;;  %v1155_v43 = vld [vmem:[#allocation4 + $0x618] sm:$0xff] }
 0x17d   : > { %2574 = vmatmul.mubr.f32.gmra.mrb[22].mxu1 %v6786_v5  ;;  %5111 = vmatprep.subr.bf16.mxu1 %v8108_v0 }
 0x17e   : > { %1540 = vmatmul.mubr.f32.gmra.mrb[22].mxu0 %v6786_v5  ;;  %2578 = vmatprep.mubr.f32.mxu1 %v469_v61 }
 0x17f   : > { %1545 = vmatprep.mubr.f32.mxu0 %v469_v61  ;;  %4853 = vmatpush1.bf16.msra.mxu0 %v4852_v1  ;;  %v477_v61 = vsel %vm442_vm0, %v474_v32, %v476_v48  ;;  %v4868_v1 = vpack.c.bf16 %v1149_v55, %v1146_v53  ;;  %v596_v55 = vrot.slane %v6724_v36, 3 }
 0x180   : > { %4855 = vmatprep.subr.bf16.mxu0 %v4854_v3  ;;  %5113 = vmatpush1.bf16.msra.mxu1 %v5112_v7  ;;  %v6851_v3 = vld [vmem:[%s6622_s17 + $0x98] sm:$0xff]  ;;  %v479_v7 = vsel %vm442_vm0, %v476_v48, %v478_v62 }
 0x181   : > { %2579 = vmatmul.mubr.f32.gmra.mrb[24].mxu1 %v6794_v18  ;;  %5114 = vmatprep.subr.bf16.mxu1 %v8108_v0  ;;  %v480_v8 = vrot.slane %v6851_v3, 1  ;;  %v1154_v48 = vld [vmem:[#allocation4 + $0x610] sm:$0xff] }
 0x182   : > { %1546 = vmatmul.mubr.f32.gmra.mrb[24].mxu0 %v6794_v18  ;;  %2583 = vmatprep.mubr.f32.mxu1 %v471_v12 }
 0x183   : > { %1551 = vmatprep.mubr.f32.mxu0 %v471_v12  ;;  %4857 = vmatpush1.bf16.msra.mxu0 %v4856_v16  ;;  %v481_v10 = vsel %vm442_vm0, %v478_v62, %v480_v8  ;;  %v6867_v12 = vld [vmem:[%s6622_s17 + $0xa8] sm:$0xff]  ;;  %v483_v13 = vsel %vm442_vm0, %v480_v8, %v482_v11  ;;  %v598_v8 = vrot.slane %v6732_v46, 3 }
 0x184   : > { %4859 = vmatprep.subr.bf16.mxu0 %v4858_v17  ;;  %5116 = vmatpush1.bf16.msra.mxu1 %v5115_v21  ;;  %v484_v16 = vrot.slane %v6867_v12, 1  ;;  %v6874_v17 = vld [vmem:[%s6622_s17 + $0xb0] sm:$0xff]  ;;  %v6881_v21 = vld [vmem:[%s6622_s17 + $0xb8] sm:$0xff] }
 0x185   : > { %2584 = vmatmul.mubr.f32.gmra.mrb[26].mxu1 %v6802_v35  ;;  %5117 = vmatprep.subr.bf16.mxu1 %v8108_v0  ;;  %v486_v20 = vrot.slane %v6874_v17, 1  ;;  %v488_v25 = vrot.slane %v6881_v21, 1  ;;  %v1160_v62 = vld [vmem:[#allocation4 + $0x640] sm:$0xff] }
 0x186   : > { %1552 = vmatmul.mubr.f32.gmra.mrb[26].mxu0 %v6802_v35  ;;  %2588 = vmatprep.mubr.f32.mxu1 %v473_v31  ;;  %v485_v19 = vsel %vm442_vm0, %v482_v11, %v484_v16  ;;  %v1164_v11 = vld [vmem:[#allocation4 + $0x660] sm:$0xff] }
 0x187   : > { %1557 = vmatprep.mubr.f32.mxu0 %v473_v31  ;;  %4861 = vmatpush1.bf16.msra.mxu0 %v4860_v34  ;;  %v487_v24 = vsel %vm442_vm0, %v484_v16, %v486_v20  ;;  %v489_v28 = vsel %vm442_vm0, %v486_v20, %v488_v25  ;;  %v490_v31 = vrot.slane %v6888_v27, 1  ;;  %v591_v34 = vrot.slane %v6701_v22, 3  ;;  %v1174_v20 = vld [vmem:[#allocation4 + $0x6b0] sm:$0xff] }
 0x188   : > { %4863 = vmatprep.subr.bf16.mxu0 %v4862_v37  ;;  %5119 = vmatpush1.bf16.msra.mxu1 %v5118_v38  ;;  %v592_v37 = vrot.slane %v6704_v23, 3  ;;  %v517_v38 = vrot.slane %v6701_v22, 2  ;;  %v4872_v23 = vpack.c.bf16 %v1155_v43, %v1152_v41  ;;  %v1177_v41 = vld [vmem:[#allocation4 + $0x6c8] sm:$0xff]  ;;  %v1180_v43 = vld [vmem:[#allocation4 + $0x6e0] sm:$0xff] }
 0x189   : > { %2589 = vmatmul.mubr.f32.gmra.mrb[28].mxu1 %v6810_v50  ;;  %5120 = vmatprep.subr.bf16.mxu1 %v8108_v0  ;;  %v491_v32 = vsel %vm442_vm0, %v488_v25, %v490_v31  ;;  %v1169_v25 = vld [vmem:[#allocation4 + $0x688] sm:$0xff]  ;;  %v599_v31 = vsel %vm590_vm1, %v596_v55, %v598_v8 }
 0x18a   : > { %1558 = vmatmul.mubr.f32.gmra.mrb[28].mxu0 %v6810_v50  ;;  %2593 = vmatprep.mubr.f32.mxu1 %v475_v47  ;;  %v593_v40 = vsel %vm590_vm1, %v591_v34, %v592_v37  ;;  %v519_v22 = vsel %vm516_vm2, %v517_v38, %v518_v39  ;;  %v600_v34 = vrot.slane %v6739_v57, 3  ;;  %v1170_v38 = vld [vmem:[#allocation4 + $0x690] sm:$0xff] }
 0x18b   : > { %1563 = vmatprep.mubr.f32.mxu0 %v475_v47  ;;  %4865 = vmatpush1.bf16.msra.mxu0 %v4864_v29  ;;  %v1162_v47 = vld [vmem:[#allocation4 + $0x650] sm:$0xff]  ;;  %v1157_v29 = vld [vmem:[#allocation4 + $0x628] sm:$0xff] }
 0x18c   : > { %5122 = vmatpush1.bf16.msra.mxu1 %v5121_v51  ;;  %4867 = vmatprep.subr.bf16.mxu0 %v4866_v52  ;;  %v520_v51 = vrot.slane %v6719_v26, 2  ;;  %v595_v52 = vsel %vm590_vm1, %v592_v37, %v594_v44  ;;  %v4874_v53 = vpack.c.bf16 %v1162_v47, %v1159_v45  ;;  %v5127_v59 = vpack.c.bf16 %v1157_v29, %v1154_v48 }
 0x18d   : > { %2594 = vmatmul.mubr.f32.gmra.mrb[30].mxu1 %v6818_v63  ;;  %5123 = vmatprep.subr.bf16.mxu1 %v8108_v0  ;;  %v522_v26 = vrot.slane %v6724_v36, 2  ;;  %v526_v47 = vrot.slane %v6739_v57, 2  ;;  %v601_v48 = vsel %vm590_vm1, %v598_v8, %v600_v34  ;;  %v602_v29 = vrot.slane %v6747_v2, 3  ;;  %v1181_v57 = vld [vmem:[#allocation4 + $0x6e8] sm:$0xff] }
 0x18e   : > { %1564 = vmatmul.mubr.f32.gmra.mrb[30].mxu0 %v6818_v63  ;;  %2598 = vmatprep.mubr.f32.mxu1 %v477_v61  ;;  %v1189_v8 = vld [vmem:[#allocation4 + $0x728] sm:$0xff] }
 0x18f   : > { %1569 = vmatprep.mubr.f32.mxu0 %v477_v61  ;;  %4869 = vmatpush1.bf16.msra.mxu0 %v4868_v1  ;;  %v1168_v61 = vld [vmem:[#allocation4 + $0x680] sm:$0xff]  ;;  %v1163_v1 = vld [vmem:[#allocation4 + $0x658] sm:$0xff]  ;;  %v523_v36 = vsel %vm516_vm2, %v520_v51, %v522_v26 }
 0x190   : > { %5125 = vmatpush1.bf16.msra.mxu1 %v5124_v4  ;;  %4871 = vmatprep.subr.bf16.mxu0 %v4870_v6  ;;  %v521_v4 = vsel %vm516_vm2, %v518_v39, %v520_v51  ;;  %v597_v6 = vsel %vm590_vm1, %v594_v44, %v596_v55  ;;  %v5130_v16 = vpack.c.bf16 %v1163_v1, %v1160_v62  ;;  %v1173_v39 = vld [vmem:[#allocation4 + $0x6a8] sm:$0xff]  ;;  %v1172_v44 = vld [vmem:[#allocation4 + $0x6a0] sm:$0xff]  ;;  %v1183_v55 = vld [vmem:[#allocation4 + $0x6f8] sm:$0xff]  ;;  %v604_v62 = vrot.slane %v6755_v14, 3 }
 0x191   : > { %2599 = vmatmul.mubr.f32.gmra.mrb[32].mxu1 %v6826_v15  ;;  %5126 = vmatprep.subr.bf16.mxu1 %v8108_v0  ;;  %v1176_v51 = vld [vmem:[#allocation4 + $0x6c0] sm:$0xff] }
 0x192   : > { %1570 = vmatmul.mubr.f32.gmra.mrb[32].mxu0 %v6826_v15  ;;  %2603 = vmatprep.mubr.f32.mxu1 %v479_v7 }
 0x193   : > { %1575 = vmatprep.mubr.f32.mxu0 %v479_v7  ;;  %v4876_v7 = vpack.c.bf16 %v1161_v58, %v1158_v56  ;;  %v1186_v56 = vld [vmem:[#allocation4 + $0x710] sm:$0xff] }
 0x194   : > { %v1178_v58 = vld [vmem:[#allocation4 + $0x6d0] sm:$0xff] }
 0x195   : > { %2604 = vmatmul.mubr.f32.gmra.mrb[34].mxu1 %v6834_v33 }
 0x196   : > { %1576 = vmatmul.mubr.f32.gmra.mrb[34].mxu0 %v6834_v33  ;;  %2608 = vmatprep.mubr.f32.mxu1 %v481_v10 }
 0x197   : > { %1581 = vmatprep.mubr.f32.mxu0 %v481_v10  ;;  %v4878_v10 = vpack.c.bf16 %v1168_v61, %v1165_v60  ;;  %v528_v60 = vrot.slane %v6747_v2, 2  ;;  %v603_v61 = vsel %vm590_vm1, %v600_v34, %v602_v29  ;;  %v1187_v2 = vld [vmem:[#allocation4 + $0x718] sm:$0xff]  ;;  %v1198_v34 = vld [vmem:[#allocation4 + $0x770] sm:$0xff] }
 0x199   : > { %2609 = vmatmul.mubr.f32.gmra.mrb[36].mxu1 %v6842_v49 }
 0x19a   : > { %1582 = vmatmul.mubr.f32.gmra.mrb[36].mxu0 %v6842_v49  ;;  %2613 = vmatprep.mubr.f32.mxu1 %v483_v13 }
 0x19b   : > { %1587 = vmatprep.mubr.f32.mxu0 %v483_v13  ;;  %v1167_v13 = vld [vmem:[#allocation4 + $0x678] sm:$0xff] }
 0x19d   : > { %2614 = vmatmul.mubr.f32.gmra.mrb[38].mxu1 %v6851_v3 }
 0x19e   : > { %1588 = vmatmul.mubr.f32.gmra.mrb[38].mxu0 %v6851_v3  ;;  %2618 = vmatprep.mubr.f32.mxu1 %v485_v19 }
 0x19f   : > { %1593 = vmatprep.mubr.f32.mxu0 %v485_v19  ;;  %v1171_v19 = vld [vmem:[#allocation4 + $0x698] sm:$0xff] }
 0x1a0   : > { %v4882_v37 = vpack.c.bf16 %v1174_v20, %v1171_v19  ;;  %v605_v19 = vsel %vm590_vm1, %v602_v29, %v604_v62  ;;  %v606_v20 = vrot.slane %v6763_v30, 3  ;;  %v1204_v29 = vld [vmem:[#allocation4 + $0x7a0] sm:$0xff] }
 0x1a1   : > { %2619 = vmatmul.mubr.f32.gmra.mrb[40].mxu1 %v6859_v9 }
 0x1a2   : > { %1594 = vmatmul.mubr.f32.gmra.mrb[40].mxu0 %v6859_v9  ;;  %2623 = vmatprep.mubr.f32.mxu1 %v487_v24 }
 0x1a3   : > { %1599 = vmatprep.mubr.f32.mxu0 %v487_v24  ;;  %v1166_v24 = vld [vmem:[#allocation4 + $0x670] sm:$0xff] }
 0x1a5   : > { %2624 = vmatmul.mubr.f32.gmra.mrb[42].mxu1 %v6867_v12 }
 0x1a6   : > { %1600 = vmatmul.mubr.f32.gmra.mrb[42].mxu0 %v6867_v12  ;;  %2628 = vmatprep.mubr.f32.mxu1 %v489_v28 }
 0x1a7   : > { %1605 = vmatprep.mubr.f32.mxu0 %v489_v28  ;;  %v524_v28 = vrot.slane %v6732_v46, 2  ;;  %v1175_v46 = vld [vmem:[#allocation4 + $0x6b8] sm:$0xff] }
 0x1a9   : > { %2629 = vmatmul.mubr.f32.gmra.mrb[44].mxu1 %v6874_v17  ;;  %v525_v45 = vsel %vm516_vm2, %v522_v26, %v524_v28  ;;  %v1182_v26 = vld [vmem:[#allocation4 + $0x6f0] sm:$0xff] }
 0x1aa   : > { %1606 = vmatmul.mubr.f32.gmra.mrb[44].mxu0 %v6874_v17  ;;  %2633 = vmatprep.mubr.f32.mxu1 %v491_v32 }
 0x1ab   : > { %1611 = vmatprep.mubr.f32.mxu0 %v491_v32  ;;  %v4880_v32 = vpack.c.bf16 %v1167_v13, %v1164_v11  ;;  %v1184_v11 = vld [vmem:[#allocation4 + $0x700] sm:$0xff]  ;;  %v529_v13 = vsel %vm516_vm2, %v526_v47, %v528_v60 }
 0x1ad   : > { %2634 = vmatmul.mubr.f32.gmra.mrb[46].mxu1 %v6881_v21 }
 0x1ae   : > { %1612 = vmatmul.mubr.f32.gmra.mrb[46].mxu0 %v6881_v21  ;;  %2703 = vmatprep.mubr.f32.mxu1 %v593_v40 }
 0x1af   : > { %1682 = vmatprep.mubr.f32.mxu0 %v593_v40  ;;  %v5133_v40 = vpack.c.bf16 %v1169_v25, %v1166_v24 }
 0x1b1   : > { %2704 = vmatmul.mubr.f32.vlgmr.msra.gmra.mrb[0].mxu1 %v519_v22 }
 0x1b2   : > { %1683 = vmatmul.mubr.f32.vlgmr.msra.gmra.mrb[0].mxu0 %v519_v22  ;;  %2708 = vmatprep.mubr.f32.mxu1 %v595_v52  ;;  %v4884_v22 = vpack.c.bf16 %v1173_v39, %v1170_v38  ;;  %v532_v39 = vrot.slane %v6763_v30, 2  ;;  %v1199_v30 = vld [vmem:[#allocation4 + $0x778] sm:$0xff] }
 0x1b3   : > { %4873 = vmatpush1.bf16.msra.mxu0 %v4872_v23  ;;  %1688 = vmatprep.mubr.f32.mxu0 %v595_v52  ;;  %v4886_v23 = vpack.c.bf16 %v1180_v43, %v1177_v41  ;;  %v1179_v52 = vld [vmem:[#allocation4 + $0x6d8] sm:$0xff]  ;;  %v608_v41 = vrot.slane %v6770_v42, 3 }
 0x1b4   : > { %4875 = vmatprep.subr.bf16.mxu0 %v4874_v53  ;;  %5128 = vmatpush1.bf16.msra.mxu1 %v5127_v59  ;;  %v5136_v53 = vpack.c.bf16 %v1175_v46, %v1172_v44  ;;  %v527_v59 = vsel %vm516_vm2, %v524_v28, %v526_v47  ;;  %v4888_v1 = vpack.c.bf16 %v1179_v52, %v1176_v51  ;;  %v1191_v28 = vld [vmem:[#allocation4 + $0x738] sm:$0xff]  ;;  %v1194_v46 = vld [vmem:[#allocation4 + $0x750] sm:$0xff]  ;;  %v534_v51 = vrot.slane %v6770_v42, 2  ;;  %v1205_v42 = vld [vmem:[#allocation4 + $0x7a8] sm:$0xff] }
 0x1b5   : > { %2709 = vmatmul.mubr.f32.gmra.mrb[2].mxu1 %v521_v4  ;;  %5129 = vmatprep.subr.bf16.mxu1 %v8108_v0  ;;  %v609_v52 = vsel %vm590_vm1, %v606_v20, %v608_v41 }
 0x1b6   : > { %1689 = vmatmul.mubr.f32.gmra.mrb[2].mxu0 %v521_v4  ;;  %2713 = vmatprep.mubr.f32.mxu1 %v597_v6  ;;  %v4890_v4 = vpack.c.bf16 %v1186_v56, %v1183_v55 }
 0x1b7   : > { %1694 = vmatprep.mubr.f32.mxu0 %v597_v6  ;;  %4877 = vmatpush1.bf16.msra.mxu0 %v4876_v7  ;;  %v1185_v6 = vld [vmem:[#allocation4 + $0x708] sm:$0xff]  ;;  %v5139_v7 = vpack.c.bf16 %v1181_v57, %v1178_v58  ;;  %v1200_v58 = vld [vmem:[#allocation4 + $0x780] sm:$0xff]  ;;  %v1203_v57 = vld [vmem:[#allocation4 + $0x798] sm:$0xff] }
 0x1b8   : > { %4879 = vmatprep.subr.bf16.mxu0 %v4878_v10  ;;  %5131 = vmatpush1.bf16.msra.mxu1 %v5130_v16  ;;  %v1192_v10 = vld [vmem:[#allocation4 + $0x740] sm:$0xff]  ;;  %v530_v16 = vrot.slane %v6755_v14, 2  ;;  %v4892_v24 = vpack.c.bf16 %v1185_v6, %v1182_v26  ;;  %v1193_v14 = vld [vmem:[#allocation4 + $0x748] sm:$0xff]  ;;  %v612_v6 = vrot.slane %v6786_v5, 3 }
 0x1b9   : > { %2714 = vmatmul.mubr.f32.gmra.mrb[4].mxu1 %v523_v36  ;;  %5132 = vmatprep.subr.bf16.mxu1 %v8108_v0  ;;  %v4894_v25 = vpack.c.bf16 %v1192_v10, %v1189_v8  ;;  %v1206_v10 = vld [vmem:[#allocation4 + $0x7b0] sm:$0xff] }
 0x1ba   : > { %1695 = vmatmul.mubr.f32.gmra.mrb[4].mxu0 %v523_v36  ;;  %2718 = vmatprep.mubr.f32.mxu1 %v599_v31  ;;  %v1188_v36 = vld [vmem:[#allocation4 + $0x720] sm:$0xff]  ;;  %v531_v38 = vsel %vm516_vm2, %v528_v60, %v530_v16  ;;  %v1207_v60 = vld [vmem:[#allocation4 + $0x7b8] sm:$0xff] }
 0x1bb   : > { %1700 = vmatprep.mubr.f32.mxu0 %v599_v31  ;;  %4881 = vmatpush1.bf16.msra.mxu0 %v4880_v32  ;;  %v5142_v31 = vpack.c.bf16 %v1187_v2, %v1184_v11  ;;  %v1195_v32 = vld [vmem:[#allocation4 + $0x758] sm:$0xff]  ;;  %v4896_v43 = vpack.c.bf16 %v1191_v28, %v1188_v36  ;;  %v1209_v11 = vld [vmem:[#allocation4 + $0x7c8] sm:$0xff]  ;;  %v614_v36 = vrot.slane %v6794_v18, 3 }
 0x1bc   : > { %4883 = vmatprep.subr.bf16.mxu0 %v4882_v37  ;;  %5134 = vmatpush1.bf16.msra.mxu1 %v5133_v40  ;;  %v1190_v37 = vld [vmem:[#allocation4 + $0x730] sm:$0xff]  ;;  %v607_v40 = vsel %vm590_vm1, %v604_v62, %v606_v20  ;;  %v4898_v44 = vpack.c.bf16 %v1198_v34, %v1195_v32  ;;  %v4908_v28 = vpack.c.bf16 %v1209_v11, %v1206_v10  ;;  %v1212_v32 = vld [vmem:[#allocation4 + $0x7e0] sm:$0xff]  ;;  %v1215_v34 = vld [vmem:[#allocation4 + $0x7f8] sm:$0xff] }
 0x1bd   : > { %2719 = vmatmul.mubr.f32.gmra.mrb[6].mxu1 %v525_v45  ;;  %5135 = vmatprep.subr.bf16.mxu1 %v8108_v0  ;;  %v5145_v47 = vpack.c.bf16 %v1193_v14, %v1190_v37  ;;  %v1202_v62 = vld [vmem:[#allocation4 + $0x790] sm:$0xff]  ;;  %v1219_v14 = vld [vmem:[#allocation4 + $0x818] sm:$0xff]  ;;  %v1233_v11 = vld [vmem:[#allocation4 + $0x888] sm:$0xff] }
 0x1be   : > { %1701 = vmatmul.mubr.f32.gmra.mrb[6].mxu0 %v525_v45  ;;  %2723 = vmatprep.mubr.f32.mxu1 %v601_v48  ;;  %v1197_v45 = vld [vmem:[#allocation4 + $0x768] sm:$0xff]  ;;  %v5151_v2 = vpack.c.bf16 %v1205_v42, %v1202_v62  ;;  %v1234_v62 = vld [vmem:[#allocation4 + $0x890] sm:$0xff] }
 0x1bf   : > { %1706 = vmatprep.mubr.f32.mxu0 %v601_v48  ;;  %4885 = vmatpush1.bf16.msra.mxu0 %v4884_v22  ;;  %v1201_v48 = vld [vmem:[#allocation4 + $0x788] sm:$0xff]  ;;  %v1196_v22 = vld [vmem:[#allocation4 + $0x760] sm:$0xff]  ;;  %v4900_v55 = vpack.c.bf16 %v1197_v45, %v1194_v46  ;;  %v4912_v46 = vpack.c.bf16 %v1215_v34, %v1212_v32  ;;  %v1226_v42 = vld [vmem:[#allocation4 + $0x850] sm:$0xff] }
 0x1c0   : > { %4887 = vmatprep.subr.bf16.mxu0 %v4886_v23  ;;  %5137 = vmatpush1.bf16.msra.mxu1 %v5136_v53  ;;  %v533_v23 = vsel %vm516_vm2, %v530_v16, %v532_v39  ;;  %v610_v53 = vrot.slane %v6778_v54, 3  ;;  %v4902_v56 = vpack.c.bf16 %v1204_v29, %v1201_v48  ;;  %v1216_v16 = vld [vmem:[#allocation4 + $0x800] sm:$0xff]  ;;  %v1221_v48 = vld [vmem:[#allocation4 + $0x828] sm:$0xff]  ;;  %v1230_v10 = vld [vmem:[#allocation4 + $0x870] sm:$0xff] }
 0x1c1   : > { %2724 = vmatmul.mubr.f32.gmra.mrb[8].mxu1 %v527_v59  ;;  %5138 = vmatprep.subr.bf16.mxu1 %v8108_v0  ;;  %v1236_v32 = vld [vmem:[#allocation4 + $0x8a0] sm:$0xff]  ;;  %v1239_v34 = vld [vmem:[#allocation4 + $0x8b8] sm:$0xff] }
 0x1c2   : > { %1707 = vmatmul.mubr.f32.gmra.mrb[8].mxu0 %v527_v59  ;;  %2728 = vmatprep.mubr.f32.mxu1 %v603_v61  ;;  %v5148_v59 = vpack.c.bf16 %v1199_v30, %v1196_v22  ;;  %v611_v26 = vsel %vm590_vm1, %v608_v41, %v610_v53  ;;  %v540_v41 = vrot.slane %v6794_v18, 2  ;;  %v1225_v22 = vld [vmem:[#allocation4 + $0x848] sm:$0xff]  ;;  %v1228_v30 = vld [vmem:[#allocation4 + $0x860] sm:$0xff]  ;;  %v1223_v18 = vld [vmem:[#allocation4 + $0x838] sm:$0xff] }
 0x1c3   : > { %1712 = vmatprep.mubr.f32.mxu0 %v603_v61  ;;  %4889 = vmatpush1.bf16.msra.mxu0 %v4888_v1  ;;  %v1210_v61 = vld [vmem:[#allocation4 + $0x7d0] sm:$0xff]  ;;  %v535_v1 = vsel %vm516_vm2, %v532_v39, %v534_v51 }
 0x1c4   : > { %4891 = vmatprep.subr.bf16.mxu0 %v4890_v4  ;;  %5140 = vmatpush1.bf16.msra.mxu1 %v5139_v7  ;;  %v536_v4 = vrot.slane %v6778_v54, 2  ;;  %v4904_v7 = vpack.c.bf16 %v1203_v57, %v1200_v58  ;;  %v4906_v8 = vpack.c.bf16 %v1210_v61, %v1207_v60  ;;  %v1211_v54 = vld [vmem:[#allocation4 + $0x7d8] sm:$0xff]  ;;  %v1214_v39 = vld [vmem:[#allocation4 + $0x7f0] sm:$0xff]  ;;  %v4918_v58 = vpack.c.bf16 %v1228_v30, %v1225_v22  ;;  %v1224_v57 = vld [vmem:[#allocation4 + $0x840] sm:$0xff] }
 0x1c5   : > { %2729 = vmatmul.mubr.f32.gmra.mrb[10].mxu1 %v529_v13  ;;  %5141 = vmatprep.subr.bf16.mxu1 %v8108_v0  ;;  %v1231_v61 = vld [vmem:[#allocation4 + $0x878] sm:$0xff]  ;;  %v1249_v22 = vld [vmem:[#allocation4 + $0x908] sm:$0xff] }
 0x1c6   : > { %1713 = vmatmul.mubr.f32.gmra.mrb[10].mxu0 %v529_v13  ;;  %2733 = vmatprep.mubr.f32.mxu1 %v605_v19  ;;  %v1213_v13 = vld [vmem:[#allocation4 + $0x7e8] sm:$0xff]  ;;  %v537_v20 = vsel %vm516_vm2, %v534_v51, %v536_v4 }
 0x1c7   : > { %1718 = vmatprep.mubr.f32.mxu0 %v605_v19  ;;  %4893 = vmatpush1.bf16.msra.mxu0 %v4892_v24  ;;  %v1208_v19 = vld [vmem:[#allocation4 + $0x7c0] sm:$0xff]  ;;  %v538_v24 = vrot.slane %v6786_v5, 2  ;;  %v1217_v5 = vld [vmem:[#allocation4 + $0x808] sm:$0xff] }
 0x1c8   : > { %4895 = vmatprep.subr.bf16.mxu0 %v4894_v25  ;;  %5143 = vmatpush1.bf16.msra.mxu1 %v5142_v31  ;;  %v613_v25 = vsel %vm590_vm1, %v610_v53, %v612_v6  ;;  %v4910_v31 = vpack.c.bf16 %v1216_v16, %v1213_v13  ;;  %v5154_v37 = vpack.c.bf16 %v1211_v54, %v1208_v19  ;;  %v1232_v13 = vld [vmem:[#allocation4 + $0x880] sm:$0xff]  ;;  %v1237_v16 = vld [vmem:[#allocation4 + $0x8a8] sm:$0xff] }
 0x1c9   : > { %2734 = vmatmul.mubr.f32.gmra.mrb[12].mxu1 %v531_v38  ;;  %5144 = vmatprep.subr.bf16.mxu1 %v8108_v0  ;;  %v5157_v29 = vpack.c.bf16 %v1217_v5, %v1214_v39  ;;  %v541_v51 = vsel %vm516_vm2, %v538_v24, %v540_v41  ;;  %v1240_v19 = vld [vmem:[#allocation4 + $0x8c0] sm:$0xff]  ;;  %v548_v5 = vrot.slane %v6826_v15, 2 }
 0x1ca   : > { %1719 = vmatmul.mubr.f32.gmra.mrb[12].mxu0 %v531_v38  ;;  %2738 = vmatprep.mubr.f32.mxu1 %v607_v40  ;;  %v1222_v38 = vld [vmem:[#allocation4 + $0x830] sm:$0xff] }
 0x1cb   : > { %1724 = vmatprep.mubr.f32.mxu0 %v607_v40  ;;  %4897 = vmatpush1.bf16.msra.mxu0 %v4896_v43  ;;  %v539_v40 = vsel %vm516_vm2, %v536_v4, %v538_v24  ;;  %v615_v43 = vsel %vm590_vm1, %v612_v6, %v614_v36  ;;  %v4914_v45 = vpack.c.bf16 %v1222_v38, %v1219_v14  ;;  %v544_v4 = vrot.slane %v6810_v50, 2  ;;  %v1241_v14 = vld [vmem:[#allocation4 + $0x8c8] sm:$0xff]  ;;  %v1243_v38 = vld [vmem:[#allocation4 + $0x8d8] sm:$0xff] }
 0x1cc   : > { %4899 = vmatprep.subr.bf16.mxu0 %v4898_v44  ;;  %5146 = vmatpush1.bf16.msra.mxu1 %v5145_v47  ;;  %v616_v44 = vrot.slane %v6802_v35, 3  ;;  %v1218_v47 = vld [vmem:[#allocation4 + $0x810] sm:$0xff]  ;;  %v620_v6 = vrot.slane %v6818_v63, 3 }
 0x1cd   : > { %2739 = vmatmul.mubr.f32.gmra.mrb[14].mxu1 %v533_v23  ;;  %5147 = vmatprep.subr.bf16.mxu1 %v8108_v0 }
 0x1ce   : > { %1725 = vmatmul.mubr.f32.gmra.mrb[14].mxu0 %v533_v23  ;;  %2743 = vmatprep.mubr.f32.mxu1 %v609_v52  ;;  %v1220_v23 = vld [vmem:[#allocation4 + $0x820] sm:$0xff]  ;;  %v617_v53 = vsel %vm590_vm1, %v614_v36, %v616_v44  ;;  %v4924_v36 = vpack.c.bf16 %v1233_v11, %v1230_v10  ;;  %v636_v10 = vrot.slane %v6881_v21, 3  ;;  %v562_v11 = vrot.slane %v6881_v21, 2 }
 0x1cf   : > { %1730 = vmatprep.mubr.f32.mxu0 %v609_v52  ;;  %4901 = vmatpush1.bf16.msra.mxu0 %v4900_v55  ;;  %v542_v52 = vrot.slane %v6802_v35, 2  ;;  %v618_v55 = vrot.slane %v6810_v50, 3  ;;  %v5160_v60 = vpack.c.bf16 %v1223_v18, %v1220_v23  ;;  %v1229_v35 = vld [vmem:[#allocation4 + $0x868] sm:$0xff]  ;;  %v1235_v50 = vld [vmem:[#allocation4 + $0x898] sm:$0xff]  ;;  %v550_v23 = vrot.slane %v6834_v33, 2 }
 0x1d0   : > { %4903 = vmatprep.subr.bf16.mxu0 %v4902_v56  ;;  %5149 = vmatpush1.bf16.msra.mxu1 %v5148_v59  ;;  %v4916_v56 = vpack.c.bf16 %v1221_v48, %v1218_v47  ;;  %v1227_v59 = vld [vmem:[#allocation4 + $0x858] sm:$0xff]  ;;  %v1245_v47 = vld [vmem:[#allocation4 + $0x8e8] sm:$0xff]  ;;  %v1244_v48 = vld [vmem:[#allocation4 + $0x8e0] sm:$0xff] }
 0x1d1   : > { %2744 = vmatmul.mubr.f32.gmra.mrb[16].mxu1 %v535_v1  ;;  %5150 = vmatprep.subr.bf16.mxu1 %v8108_v0  ;;  %v545_v54 = vsel %vm516_vm2, %v542_v52, %v544_v4  ;;  %v621_v24 = vsel %vm590_vm1, %v618_v55, %v620_v6  ;;  %v7019_v21 = vld [vmem:[%s6622_s17 + $0x8] sm:$0xff] }
 0x1d2   : > { %1731 = vmatmul.mubr.f32.gmra.mrb[16].mxu0 %v535_v1  ;;  %2748 = vmatprep.mubr.f32.mxu1 %v611_v26  ;;  %v543_v1 = vsel %vm516_vm2, %v540_v41, %v542_v52  ;;  %v624_v41 = vrot.slane %v6834_v33, 3  ;;  %v552_v33 = vrot.slane %v6842_v49, 2 }
 0x1d3   : > { %1736 = vmatprep.mubr.f32.mxu0 %v611_v26  ;;  %4905 = vmatpush1.bf16.msra.mxu0 %v4904_v7  ;;  %v619_v26 = vsel %vm590_vm1, %v616_v44, %v618_v55  ;;  %v4920_v7 = vpack.c.bf16 %v1227_v59, %v1224_v57  ;;  %v628_v57 = vrot.slane %v6851_v3, 3 }
 0x1d4   : > { %4907 = vmatprep.subr.bf16.mxu0 %v4906_v8  ;;  %5152 = vmatpush1.bf16.msra.mxu1 %v5151_v2  ;;  %v4922_v8 = vpack.c.bf16 %v1234_v62, %v1231_v61  ;;  %v5163_v2 = vpack.c.bf16 %v1229_v35, %v1226_v42  ;;  %v553_v59 = vsel %vm516_vm2, %v550_v23, %v552_v33  ;;  %v556_v42 = vrot.slane %v6859_v9, 2 }
 0x1d5   : > { %2749 = vmatmul.mubr.f32.gmra.mrb[18].mxu1 %v537_v20  ;;  %5153 = vmatprep.subr.bf16.mxu1 %v8108_v0 }
 0x1d6   : > { %1737 = vmatmul.mubr.f32.gmra.mrb[18].mxu0 %v537_v20  ;;  %2753 = vmatprep.mubr.f32.mxu1 %v613_v25  ;;  %v546_v20 = vrot.slane %v6818_v63, 2  ;;  %v1246_v63 = vld [vmem:[#allocation4 + $0x8f0] sm:$0xff] }
 0x1d7   : > { %1742 = vmatprep.mubr.f32.mxu0 %v613_v25  ;;  %4909 = vmatpush1.bf16.msra.mxu0 %v4908_v28  ;;  %v622_v25 = vrot.slane %v6826_v15, 3  ;;  %v4926_v28 = vpack.c.bf16 %v1240_v19, %v1237_v16  ;;  %v1252_v15 = vld [vmem:[#allocation4 + $0x920] sm:$0xff]  ;;  %v564_v16 = vrot.slane %v6888_v27, 2 }
 0x1d8   : > { %4911 = vmatprep.subr.bf16.mxu0 %v4910_v31  ;;  %5155 = vmatpush1.bf16.msra.mxu1 %v5154_v37  ;;  %v5166_v31 = vpack.c.bf16 %v1235_v50, %v1232_v13  ;;  %v1238_v37 = vld [vmem:[#allocation4 + $0x8b0] sm:$0xff]  ;;  %v547_v39 = vsel %vm516_vm2, %v544_v4, %v546_v20  ;;  %v549_v30 = vsel %vm516_vm2, %v546_v20, %v548_v5  ;;  %v558_v4 = vrot.slane %v6867_v12, 2 }
 0x1d9   : > { %2754 = vmatmul.mubr.f32.gmra.mrb[20].mxu1 %v539_v40  ;;  %5156 = vmatprep.subr.bf16.mxu1 %v8108_v0  ;;  %v5169_v44 = vpack.c.bf16 %v1241_v14, %v1238_v37  ;;  %v625_v18 = vsel %vm590_vm1, %v622_v25, %v624_v41  ;;  %v4934_v55 = vpack.c.bf16 %v1252_v15, %v1249_v22  ;;  %v638_v13 = vrot.slane %v6888_v27, 3  ;;  %v7015_v50 = vld [vmem:[%s6622_s17] sm:$0xff]  ;;  %v1264_v22 = vld [vmem:[#allocation4 + $0x980] sm:$0xff] }
 0x1da   : > { %1743 = vmatmul.mubr.f32.gmra.mrb[20].mxu0 %v539_v40  ;;  %2758 = vmatprep.mubr.f32.mxu1 %v615_v43  ;;  %v623_v40 = vsel %vm590_vm1, %v620_v6, %v622_v25  ;;  %v634_v6 = vrot.slane %v6874_v17, 3  ;;  %v740_v20 = vrot.slane %v7019_v21, 5  ;;  %v665_v27 = vrot.slane %v7015_v50, 4  ;;  %v1255_v37 = vld [vmem:[#allocation4 + $0x938] sm:$0xff]  ;;  %v1258_v14 = vld [vmem:[#allocation4 + $0x950] sm:$0xff]  ;;  %v1256_v15 = vld [vmem:[#allocation4 + $0x940] sm:$0xff] }
 0x1db   : > { %1748 = vmatprep.mubr.f32.mxu0 %v615_v43  ;;  %4913 = vmatpush1.bf16.msra.mxu0 %v4912_v46  ;;  %v4928_v43 = vpack.c.bf16 %v1239_v34, %v1236_v32  ;;  %v4930_v46 = vpack.c.bf16 %v1246_v63, %v1243_v38  ;;  %v639_v19 = vsel %vm590_vm1, %v636_v10, %v638_v13  ;;  %v666_v25 = vrot.slane %v7019_v21, 4  ;;  %v7027_v32 = vld [vmem:[%s6622_s17 + $0x10] sm:$0xff]  ;;  %v1250_v38 = vld [vmem:[#allocation4 + $0x910] sm:$0xff] }
 0x1dc   : > { %4915 = vmatprep.subr.bf16.mxu0 %v4914_v45  ;;  %5158 = vmatpush1.bf16.msra.mxu1 %v5157_v29  ;;  %v1242_v45 = vld [vmem:[#allocation4 + $0x8d0] sm:$0xff]  ;;  %v1247_v29 = vld [vmem:[#allocation4 + $0x8f8] sm:$0xff]  ;;  %v742_v34 = vrot.slane %v7027_v32, 5  ;;  %v1253_v63 = vld [vmem:[#allocation4 + $0x928] sm:$0xff] }
 0x1dd   : > { %2759 = vmatmul.mubr.f32.gmra.mrb[22].mxu1 %v541_v51  ;;  %5159 = vmatprep.subr.bf16.mxu1 %v8108_v0  ;;  %v4932_v52 = vpack.c.bf16 %v1245_v47, %v1242_v45  ;;  %v1254_v45 = vld [vmem:[#allocation4 + $0x930] sm:$0xff]  ;;  %v1257_v47 = vld [vmem:[#allocation4 + $0x948] sm:$0xff] }
 0x1de   : > { %1749 = vmatmul.mubr.f32.gmra.mrb[22].mxu0 %v541_v51  ;;  %2763 = vmatprep.mubr.f32.mxu1 %v617_v53  ;;  %v626_v51 = vrot.slane %v6842_v49, 3  ;;  %v630_v49 = vrot.slane %v6859_v9, 3  ;;  %v559_v9 = vsel %vm516_vm2, %v556_v42, %v558_v4 }
 0x1df   : > { %1754 = vmatprep.mubr.f32.mxu0 %v617_v53  ;;  %4917 = vmatpush1.bf16.msra.mxu0 %v4916_v56  ;;  %v5172_v53 = vpack.c.bf16 %v1247_v29, %v1244_v48  ;;  %v551_v56 = vsel %vm516_vm2, %v548_v5, %v550_v23  ;;  %v5175_v48 = vpack.c.bf16 %v1253_v63, %v1250_v38  ;;  %v1261_v29 = vld [vmem:[#allocation4 + $0x968] sm:$0xff] }
 0x1e0   : > { %4919 = vmatprep.subr.bf16.mxu0 %v4918_v58  ;;  %5161 = vmatpush1.bf16.msra.mxu1 %v5160_v60  ;;  %v627_v58 = vsel %vm590_vm1, %v624_v41, %v626_v51  ;;  %v554_v60 = vrot.slane %v6851_v3, 2  ;;  %v629_v61 = vsel %vm590_vm1, %v626_v51, %v628_v57  ;;  %v631_v35 = vsel %vm590_vm1, %v628_v57, %v630_v49  ;;  %v7082_v63 = vld [vmem:[%s6622_s17 + $0x38] sm:$0xff] }
 0x1e1   : > { %2764 = vmatmul.mubr.f32.gmra.mrb[24].mxu1 %v543_v1  ;;  %5162 = vmatprep.subr.bf16.mxu1 %v8108_v0  ;;  %v743_v41 = vsel %vm738_vm3, %v740_v20, %v742_v34 }
 0x1e2   : > { %1755 = vmatmul.mubr.f32.gmra.mrb[24].mxu0 %v543_v1  ;;  %2768 = vmatprep.mubr.f32.mxu1 %v619_v26  ;;  %v555_v62 = vsel %vm516_vm2, %v552_v33, %v554_v60  ;;  %v632_v1 = vrot.slane %v6867_v12, 3  ;;  %v557_v3 = vsel %vm516_vm2, %v554_v60, %v556_v42  ;;  %v1260_v33 = vld [vmem:[#allocation4 + $0x960] sm:$0xff]  ;;  %v1270_v60 = vld [vmem:[#allocation4 + $0x9b0] sm:$0xff] }
 0x1e3   : > { %1760 = vmatprep.mubr.f32.mxu0 %v619_v26  ;;  %4921 = vmatpush1.bf16.msra.mxu0 %v4920_v7  ;;  %v560_v7 = vrot.slane %v6874_v17, 2 }
 0x1e4   : > { %4923 = vmatprep.subr.bf16.mxu0 %v4922_v8  ;;  %5164 = vmatpush1.bf16.msra.mxu1 %v5163_v2  ;;  %v633_v26 = vsel %vm590_vm1, %v630_v49, %v632_v1  ;;  %v635_v8 = vsel %vm590_vm1, %v632_v1, %v634_v6  ;;  %v637_v2 = vsel %vm590_vm1, %v634_v6, %v636_v10  ;;  %v1265_v49 = vld [vmem:[#allocation4 + $0x988] sm:$0xff]  ;;  %v1266_v6 = vld [vmem:[#allocation4 + $0x990] sm:$0xff]  ;;  %v1276_v10 = vld [vmem:[#allocation4 + $0x9e0] sm:$0xff] }
 0x1e5   : > { %2769 = vmatmul.mubr.f32.gmra.mrb[26].mxu1 %v545_v54  ;;  %5165 = vmatprep.subr.bf16.mxu1 %v8108_v0  ;;  %v561_v12 = vsel %vm516_vm2, %v558_v4, %v560_v7  ;;  %v563_v17 = vsel %vm516_vm2, %v560_v7, %v562_v11 }
 0x1e6   : > { %1761 = vmatmul.mubr.f32.gmra.mrb[26].mxu0 %v545_v54  ;;  %2773 = vmatprep.mubr.f32.mxu1 %v621_v24  ;;  %v739_v54 = vrot.slane %v7015_v50, 5 }
 0x1e7   : > { %1766 = vmatprep.mubr.f32.mxu0 %v621_v24  ;;  %4925 = vmatpush1.bf16.msra.mxu0 %v4924_v36  ;;  %v565_v24 = vsel %vm516_vm2, %v562_v11, %v564_v16  ;;  %v1271_v11 = vld [vmem:[#allocation4 + $0x9b8] sm:$0xff]  ;;  %v7070_v16 = vld [vmem:[%s6622_s17 + $0x30] sm:$0xff] }
 0x1e8   : > { %4927 = vmatprep.subr.bf16.mxu0 %v4926_v28  ;;  %5167 = vmatpush1.bf16.msra.mxu1 %v5166_v31  ;;  %v741_v36 = vsel %vm738_vm3, %v739_v54, %v740_v20  ;;  %v1248_v28 = vld [vmem:[#allocation4 + $0x900] sm:$0xff]  ;;  %v1251_v31 = vld [vmem:[#allocation4 + $0x918] sm:$0xff] }
 0x1e9   : > { %2774 = vmatmul.mubr.f32.gmra.mrb[28].mxu1 %v547_v39  ;;  %5168 = vmatprep.subr.bf16.mxu1 %v8108_v0  ;;  %v4936_v5 = vpack.c.bf16 %v1251_v31, %v1248_v28  ;;  %v1282_v28 = vld [vmem:[#allocation4 + $0xa10] sm:$0xff] }
 0x1ea   : > { %1767 = vmatmul.mubr.f32.gmra.mrb[28].mxu0 %v547_v39  ;;  %2778 = vmatprep.mubr.f32.mxu1 %v623_v40  ;;  %v7031_v39 = vsel %vm664_vm4, %v665_v27, %v666_v25  ;;  %v1275_v27 = vld [vmem:[#allocation4 + $0x9d8] sm:$0xff]  ;;  %v1274_v31 = vld [vmem:[#allocation4 + $0x9d0] sm:$0xff] }
 0x1eb   : > { %1772 = vmatprep.mubr.f32.mxu0 %v623_v40  ;;  %4929 = vmatpush1.bf16.msra.mxu0 %v4928_v43  ;;  %v668_v40 = vrot.slane %v7027_v32, 4  ;;  %v4938_v43 = vpack.c.bf16 %v1258_v14, %v1255_v37  ;;  %v676_v14 = vrot.slane %v7070_v16, 4 }
 0x1ec   : > { %5170 = vmatpush1.bf16.msra.mxu1 %v5169_v44  ;;  %4931 = vmatprep.subr.bf16.mxu0 %v4930_v46  ;;  %v7036_v44 = vld [vmem:[%s6622_s17 + $0x18] sm:$0xff] }
 0x1ed   : > { %2779 = vmatmul.mubr.f32.gmra.mrb[30].mxu1 %v549_v30  ;;  %5171 = vmatprep.subr.bf16.mxu1 %v8108_v0  ;;  %v744_v46 = vrot.slane %v7036_v44, 5  ;;  %v7042_v23 = vsel %vm664_vm4, %v666_v25, %v668_v40 }
 0x1ee   : > { %1773 = vmatmul.mubr.f32.gmra.mrb[30].mxu0 %v549_v30  ;;  %2783 = vmatprep.mubr.f32.mxu1 %v625_v18  ;;  %v1259_v30 = vld [vmem:[#allocation4 + $0x958] sm:$0xff] }
 0x1ef   : > { %1778 = vmatprep.mubr.f32.mxu0 %v625_v18  ;;  %4933 = vmatpush1.bf16.msra.mxu0 %v4932_v52  ;;  %v670_v18 = vrot.slane %v7036_v44, 4  ;;  %v745_v51 = vsel %vm738_vm3, %v742_v34, %v744_v46  ;;  %v4940_v52 = vpack.c.bf16 %v1257_v47, %v1254_v45  ;;  %v5178_v57 = vpack.c.bf16 %v1259_v30, %v1256_v15  ;;  %v1277_v34 = vld [vmem:[#allocation4 + $0x9e8] sm:$0xff] }
 0x1f0   : > { %5173 = vmatpush1.bf16.msra.mxu1 %v5172_v53  ;;  %4935 = vmatprep.subr.bf16.mxu0 %v4934_v55  ;;  %v7047_v53 = vld [vmem:[%s6622_s17 + $0x20] sm:$0xff]  ;;  %v5187_v45 = vpack.c.bf16 %v1277_v34, %v1274_v31  ;;  %v1285_v47 = vld [vmem:[#allocation4 + $0xa28] sm:$0xff]  ;;  %v678_v30 = vrot.slane %v7082_v63, 4 }
 0x1f1   : > { %2784 = vmatmul.mubr.f32.gmra.mrb[32].mxu1 %v551_v56  ;;  %5174 = vmatprep.subr.bf16.mxu1 %v8108_v0  ;;  %v746_v55 = vrot.slane %v7047_v53, 5  ;;  %v672_v42 = vrot.slane %v7047_v53, 4  ;;  %v1299_v31 = vld [vmem:[#allocation4 + $0xa98] sm:$0xff] }
 0x1f2   : > { %1779 = vmatmul.mubr.f32.gmra.mrb[32].mxu0 %v551_v56  ;;  %2788 = vmatprep.mubr.f32.mxu1 %v627_v58  ;;  %v4942_v56 = vpack.c.bf16 %v1264_v22, %v1261_v29  ;;  %v1280_v29 = vld [vmem:[#allocation4 + $0xa00] sm:$0xff]  ;;  %v1283_v22 = vld [vmem:[#allocation4 + $0xa18] sm:$0xff] }
 0x1f3   : > { %1784 = vmatprep.mubr.f32.mxu0 %v627_v58  ;;  %v1263_v58 = vld [vmem:[#allocation4 + $0x978] sm:$0xff] }
 0x1f4   : > { %v4944_v1 = vpack.c.bf16 %v1263_v58, %v1260_v33  ;;  %v1284_v33 = vld [vmem:[#allocation4 + $0xa20] sm:$0xff]  ;;  %v1287_v58 = vld [vmem:[#allocation4 + $0xa38] sm:$0xff] }
 0x1f5   : > { %2789 = vmatmul.mubr.f32.gmra.mrb[34].mxu1 %v553_v59 }
 0x1f6   : > { %1785 = vmatmul.mubr.f32.gmra.mrb[34].mxu0 %v553_v59  ;;  %2793 = vmatprep.mubr.f32.mxu1 %v629_v61  ;;  %v1267_v59 = vld [vmem:[#allocation4 + $0x998] sm:$0xff] }
 0x1f7   : > { %1790 = vmatprep.mubr.f32.mxu0 %v629_v61  ;;  %v1262_v61 = vld [vmem:[#allocation4 + $0x970] sm:$0xff] }
 0x1f8   : > { %v5181_v7 = vpack.c.bf16 %v1265_v49, %v1262_v61  ;;  %v1286_v61 = vld [vmem:[#allocation4 + $0xa30] sm:$0xff]  ;;  %v1289_v49 = vld [vmem:[#allocation4 + $0xa48] sm:$0xff] }
 0x1f9   : > { %2794 = vmatmul.mubr.f32.gmra.mrb[36].mxu1 %v555_v62 }
 0x1fa   : > { %1791 = vmatmul.mubr.f32.gmra.mrb[36].mxu0 %v555_v62  ;;  %2798 = vmatprep.mubr.f32.mxu1 %v631_v35  ;;  %v7053_v62 = vsel %vm664_vm4, %v668_v40, %v670_v18 }
 0x1fb   : > { %1796 = vmatprep.mubr.f32.mxu0 %v631_v35  ;;  %v747_v35 = vsel %vm738_vm3, %v744_v46, %v746_v55  ;;  %v1281_v46 = vld [vmem:[#allocation4 + $0xa08] sm:$0xff] }
 0x1fd   : > { %2799 = vmatmul.mubr.f32.gmra.mrb[38].mxu1 %v557_v3 }
 0x1fe   : > { %1797 = vmatmul.mubr.f32.gmra.mrb[38].mxu0 %v557_v3  ;;  %2803 = vmatprep.mubr.f32.mxu1 %v633_v26  ;;  %v7059_v3 = vld [vmem:[%s6622_s17 + $0x28] sm:$0xff] }
 0x1ff   : > { %1802 = vmatprep.mubr.f32.mxu0 %v633_v26  ;;  %v748_v4 = vrot.slane %v7059_v3, 5  ;;  %v4946_v26 = vpack.c.bf16 %v1270_v60, %v1267_v59  ;;  %v674_v13 = vrot.slane %v7059_v3, 4  ;;  %v1291_v59 = vld [vmem:[#allocation4 + $0xa58] sm:$0xff]  ;;  %v1294_v60 = vld [vmem:[#allocation4 + $0xa70] sm:$0xff] }
 0x201   : > { %2804 = vmatmul.mubr.f32.gmra.mrb[40].mxu1 %v559_v9  ;;  %v7077_v37 = vsel %vm664_vm4, %v672_v42, %v674_v13  ;;  %v7089_v15 = vsel %vm664_vm4, %v674_v13, %v676_v14  ;;  %v1292_v13 = vld [vmem:[#allocation4 + $0xa60] sm:$0xff] }
 0x202   : > { %1803 = vmatmul.mubr.f32.gmra.mrb[40].mxu0 %v559_v9  ;;  %2808 = vmatprep.mubr.f32.mxu1 %v635_v8  ;;  %v1269_v9 = vld [vmem:[#allocation4 + $0x9a8] sm:$0xff] }
 0x203   : > { %1808 = vmatprep.mubr.f32.mxu0 %v635_v8  ;;  %v1273_v8 = vld [vmem:[#allocation4 + $0x9c8] sm:$0xff]  ;;  %v4948_v54 = vpack.c.bf16 %v1269_v9, %v1266_v6  ;;  %v4960_v6 = vpack.c.bf16 %v1287_v58, %v1284_v33  ;;  %v4962_v9 = vpack.c.bf16 %v1294_v60, %v1291_v59  ;;  %v1307_v33 = vld [vmem:[#allocation4 + $0xad8] sm:$0xff] }
 0x204   : > { %v4950_v20 = vpack.c.bf16 %v1276_v10, %v1273_v8  ;;  %v1293_v8 = vld [vmem:[#allocation4 + $0xa68] sm:$0xff]  ;;  %v5193_v10 = vpack.c.bf16 %v1289_v49, %v1286_v61  ;;  %v7142_v60 = vld [vmem:[%s6622_s17 + $0x60] sm:$0xff] }
 0x205   : > { %2809 = vmatmul.mubr.f32.gmra.mrb[42].mxu1 %v561_v12  ;;  %v762_v61 = vrot.slane %v7142_v60, 5 }
 0x206   : > { %1809 = vmatmul.mubr.f32.gmra.mrb[42].mxu0 %v561_v12  ;;  %2813 = vmatprep.mubr.f32.mxu1 %v637_v2  ;;  %v1268_v12 = vld [vmem:[#allocation4 + $0x9a0] sm:$0xff] }
 0x207   : > { %1814 = vmatprep.mubr.f32.mxu0 %v637_v2  ;;  %v7065_v2 = vsel %vm664_vm4, %v670_v18, %v672_v42  ;;  %v5184_v25 = vpack.c.bf16 %v1271_v11, %v1268_v12  ;;  %v7101_v42 = vsel %vm664_vm4, %v676_v14, %v678_v30  ;;  %v1297_v12 = vld [vmem:[#allocation4 + $0xa88] sm:$0xff]  ;;  %v1300_v11 = vld [vmem:[#allocation4 + $0xaa0] sm:$0xff]  ;;  %v1303_v14 = vld [vmem:[#allocation4 + $0xab8] sm:$0xff] }
 0x209   : > { %2814 = vmatmul.mubr.f32.gmra.mrb[44].mxu1 %v563_v17 }
 0x20a   : > { %1815 = vmatmul.mubr.f32.gmra.mrb[44].mxu0 %v563_v17  ;;  %2818 = vmatprep.mubr.f32.mxu1 %v639_v19  ;;  %v749_v17 = vsel %vm738_vm3, %v746_v55, %v748_v4 }
 0x20b   : > { %1820 = vmatprep.mubr.f32.mxu0 %v639_v19  ;;  %v750_v19 = vrot.slane %v7070_v16, 5 }
 0x20d   : > { %2819 = vmatmul.mubr.f32.gmra.mrb[46].mxu1 %v565_v24  ;;  %v751_v38 = vsel %vm738_vm3, %v748_v4, %v750_v19  ;;  %v7106_v4 = vld [vmem:[%s6622_s17 + $0x48] sm:$0xff] }
 0x20e   : > { %1821 = vmatmul.mubr.f32.gmra.mrb[46].mxu0 %v565_v24  ;;  %2888 = vmatprep.mubr.f32.mxu1 %v741_v36  ;;  %v1272_v24 = vld [vmem:[#allocation4 + $0x9c0] sm:$0xff] }
 0x20f   : > { %1891 = vmatprep.mubr.f32.mxu0 %v741_v36  ;;  %v1279_v36 = vld [vmem:[#allocation4 + $0x9f8] sm:$0xff]  ;;  %v4952_v40 = vpack.c.bf16 %v1275_v27, %v1272_v24  ;;  %v7118_v24 = vld [vmem:[%s6622_s17 + $0x50] sm:$0xff] }
 0x210   : > { %v758_v27 = vrot.slane %v7118_v24, 5 }
 0x211   : > { %2889 = vmatmul.mubr.f32.vlgmr.msra.gmra.mrb[0].mxu1 %v7031_v39 }
 0x212   : > { %1892 = vmatmul.mubr.f32.vlgmr.msra.gmra.mrb[0].mxu0 %v7031_v39  ;;  %2893 = vmatprep.mubr.f32.mxu1 %v743_v41 }
 0x213   : > { %4937 = vmatpush1.bf16.msra.mxu0 %v4936_v5  ;;  %1897 = vmatprep.mubr.f32.mxu0 %v743_v41  ;;  %v752_v5 = vrot.slane %v7082_v63, 5  ;;  %v4954_v41 = vpack.c.bf16 %v1282_v28, %v1279_v36  ;;  %v4966_v36 = vpack.c.bf16 %v1300_v11, %v1297_v12  ;;  %v1296_v28 = vld [vmem:[#allocation4 + $0xa80] sm:$0xff]  ;;  %v688_v11 = vrot.slane %v7142_v60, 4 }
 0x214   : > { %4939 = vmatprep.subr.bf16.mxu0 %v4938_v43  ;;  %5176 = vmatpush1.bf16.msra.mxu1 %v5175_v48  ;;  %v1278_v43 = vld [vmem:[#allocation4 + $0x9f0] sm:$0xff]  ;;  %v1288_v48 = vld [vmem:[#allocation4 + $0xa40] sm:$0xff] }
 0x215   : > { %2894 = vmatmul.mubr.f32.gmra.mrb[2].mxu1 %v7042_v23  ;;  %5177 = vmatprep.subr.bf16.mxu1 %v8108_v0  ;;  %v753_v18 = vsel %vm738_vm3, %v750_v19, %v752_v5  ;;  %v4956_v55 = vpack.c.bf16 %v1281_v46, %v1278_v43  ;;  %v684_v43 = vrot.slane %v7118_v24, 4 }
 0x216   : > { %1898 = vmatmul.mubr.f32.gmra.mrb[2].mxu0 %v7042_v23  ;;  %2898 = vmatprep.mubr.f32.mxu1 %v745_v51 }
 0x217   : > { %1903 = vmatprep.mubr.f32.mxu0 %v745_v51  ;;  %4941 = vmatpush1.bf16.msra.mxu0 %v4940_v52  ;;  %v7094_v51 = vld [vmem:[%s6622_s17 + $0x40] sm:$0xff] }
 0x218   : > { %4943 = vmatprep.subr.bf16.mxu0 %v4942_v56  ;;  %5179 = vmatpush1.bf16.msra.mxu1 %v5178_v57  ;;  %v754_v52 = vrot.slane %v7094_v51, 5  ;;  %v4958_v56 = vpack.c.bf16 %v1288_v48, %v1285_v47  ;;  %v5190_v57 = vpack.c.bf16 %v1283_v22, %v1280_v29  ;;  %v4968_v48 = vpack.c.bf16 %v1299_v31, %v1296_v28  ;;  %v1302_v22 = vld [vmem:[#allocation4 + $0xab0] sm:$0xff]  ;;  %v1321_v31 = vld [vmem:[#allocation4 + $0xb48] sm:$0xff] }
 0x219   : > { %2899 = vmatmul.mubr.f32.gmra.mrb[4].mxu1 %v7053_v62  ;;  %5180 = vmatprep.subr.bf16.mxu1 %v8108_v0 }
 0x21a   : > { %1904 = vmatmul.mubr.f32.gmra.mrb[4].mxu0 %v7053_v62  ;;  %2903 = vmatprep.mubr.f32.mxu1 %v747_v35 }
 0x21b   : > { %1909 = vmatprep.mubr.f32.mxu0 %v747_v35  ;;  %4945 = vmatpush1.bf16.msra.mxu0 %v4944_v1  ;;  %v680_v35 = vrot.slane %v7094_v51, 4  ;;  %v755_v1 = vsel %vm738_vm3, %v752_v5, %v754_v52  ;;  %v1298_v5 = vld [vmem:[#allocation4 + $0xa90] sm:$0xff] }
 0x21c   : > { %4947 = vmatprep.subr.bf16.mxu0 %v4946_v26  ;;  %5182 = vmatpush1.bf16.msra.mxu1 %v5181_v7  ;;  %v756_v26 = vrot.slane %v7106_v4, 5  ;;  %v1290_v7 = vld [vmem:[#allocation4 + $0xa50] sm:$0xff] }
 0x21d   : > { %2904 = vmatmul.mubr.f32.gmra.mrb[6].mxu1 %v7065_v2  ;;  %5183 = vmatprep.subr.bf16.mxu1 %v8108_v0  ;;  %v7113_v19 = vsel %vm664_vm4, %v678_v30, %v680_v35  ;;  %v1305_v30 = vld [vmem:[#allocation4 + $0xac8] sm:$0xff] }
 0x21e   : > { %1910 = vmatmul.mubr.f32.gmra.mrb[6].mxu0 %v7065_v2  ;;  %2908 = vmatprep.mubr.f32.mxu1 %v749_v17  ;;  %v759_v46 = vsel %vm738_vm3, %v756_v26, %v758_v27  ;;  %v4972_v49 = vpack.c.bf16 %v1305_v30, %v1302_v22  ;;  %v1320_v22 = vld [vmem:[#allocation4 + $0xb40] sm:$0xff]  ;;  %v1323_v30 = vld [vmem:[#allocation4 + $0xb58] sm:$0xff] }
 0x21f   : > { %1915 = vmatprep.mubr.f32.mxu0 %v749_v17  ;;  %4949 = vmatpush1.bf16.msra.mxu0 %v4948_v54  ;;  %v1295_v17 = vld [vmem:[#allocation4 + $0xa78] sm:$0xff]  ;;  %v682_v54 = vrot.slane %v7106_v4, 4 }
 0x220   : > { %4951 = vmatprep.subr.bf16.mxu0 %v4950_v20  ;;  %5185 = vmatpush1.bf16.msra.mxu1 %v5184_v25  ;;  %v757_v20 = vsel %vm738_vm3, %v754_v52, %v756_v26  ;;  %v4964_v25 = vpack.c.bf16 %v1293_v8, %v1290_v7  ;;  %v5196_v34 = vpack.c.bf16 %v1295_v17, %v1292_v13  ;;  %v1309_v52 = vld [vmem:[#allocation4 + $0xae8] sm:$0xff]  ;;  %v1311_v26 = vld [vmem:[#allocation4 + $0xaf8] sm:$0xff]  ;;  %v1318_v7 = vld [vmem:[#allocation4 + $0xb30] sm:$0xff] }
 0x221   : > { %2909 = vmatmul.mubr.f32.gmra.mrb[8].mxu1 %v7077_v37  ;;  %5186 = vmatprep.subr.bf16.mxu1 %v8108_v0  ;;  %v7137_v58 = vsel %vm664_vm4, %v682_v54, %v684_v43  ;;  %v1310_v8 = vld [vmem:[#allocation4 + $0xaf0] sm:$0xff]  ;;  %v7154_v17 = vld [vmem:[%s6622_s17 + $0x68] sm:$0xff] }
 0x222   : > { %1916 = vmatmul.mubr.f32.gmra.mrb[8].mxu0 %v7077_v37  ;;  %2913 = vmatprep.mubr.f32.mxu1 %v751_v38 }
 0x223   : > { %1921 = vmatprep.mubr.f32.mxu0 %v751_v38  ;;  %4953 = vmatpush1.bf16.msra.mxu0 %v4952_v40  ;;  %v1306_v38 = vld [vmem:[#allocation4 + $0xad0] sm:$0xff]  ;;  %v1301_v40 = vld [vmem:[#allocation4 + $0xaa8] sm:$0xff] }
 0x224   : > { %4955 = vmatprep.subr.bf16.mxu0 %v4954_v41  ;;  %5188 = vmatpush1.bf16.msra.mxu1 %v5187_v45  ;;  %v7125_v41 = vsel %vm664_vm4, %v680_v35, %v682_v54  ;;  %v7130_v45 = vld [vmem:[%s6622_s17 + $0x58] sm:$0xff]  ;;  %v4970_v29 = vpack.c.bf16 %v1306_v38, %v1303_v14  ;;  %v764_v54 = vrot.slane %v7154_v17, 5  ;;  %v1316_v14 = vld [vmem:[#allocation4 + $0xb20] sm:$0xff]  ;;  %v1319_v38 = vld [vmem:[#allocation4 + $0xb38] sm:$0xff] }
 0x225   : > { %2914 = vmatmul.mubr.f32.gmra.mrb[10].mxu1 %v7089_v15  ;;  %5189 = vmatprep.subr.bf16.mxu1 %v8108_v0  ;;  %v760_v47 = vrot.slane %v7130_v45, 5 }
 0x226   : > { %1922 = vmatmul.mubr.f32.gmra.mrb[10].mxu0 %v7089_v15  ;;  %2918 = vmatprep.mubr.f32.mxu1 %v753_v18 }
 0x227   : > { %1927 = vmatprep.mubr.f32.mxu0 %v753_v18  ;;  %4957 = vmatpush1.bf16.msra.mxu0 %v4956_v55  ;;  %v5199_v18 = vpack.c.bf16 %v1301_v40, %v1298_v5  ;;  %v1312_v55 = vld [vmem:[#allocation4 + $0xb00] sm:$0xff]  ;;  %v761_v59 = vsel %vm738_vm3, %v758_v27, %v760_v47  ;;  %v763_v13 = vsel %vm738_vm3, %v760_v47, %v762_v61  ;;  %v690_v40 = vrot.slane %v7154_v17, 4 }
 0x228   : > { %4959 = vmatprep.subr.bf16.mxu0 %v4958_v56  ;;  %5191 = vmatpush1.bf16.msra.mxu1 %v5190_v57  ;;  %v1304_v56 = vld [vmem:[#allocation4 + $0xac0] sm:$0xff]  ;;  %v686_v57 = vrot.slane %v7130_v45, 4  ;;  %v4974_v35 = vpack.c.bf16 %v1312_v55, %v1309_v52  ;;  %v1327_v52 = vld [vmem:[#allocation4 + $0xb78] sm:$0xff]  ;;  %v1330_v55 = vld [vmem:[#allocation4 + $0xb90] sm:$0xff] }
 0x229   : > { %2919 = vmatmul.mubr.f32.gmra.mrb[12].mxu1 %v7101_v42  ;;  %5192 = vmatprep.subr.bf16.mxu1 %v8108_v0 }
 0x22a   : > { %1928 = vmatmul.mubr.f32.gmra.mrb[12].mxu0 %v7101_v42  ;;  %2923 = vmatprep.mubr.f32.mxu1 %v755_v1  ;;  %v7149_v12 = vsel %vm664_vm4, %v684_v43, %v686_v57  ;;  %v7161_v5 = vsel %vm664_vm4, %v686_v57, %v688_v11  ;;  %v765_v43 = vsel %vm738_vm3, %v762_v61, %v764_v54 }
 0x22b   : > { %1933 = vmatprep.mubr.f32.mxu0 %v755_v1  ;;  %4961 = vmatpush1.bf16.msra.mxu0 %v4960_v6  ;;  %v1308_v1 = vld [vmem:[#allocation4 + $0xae0] sm:$0xff]  ;;  %v5202_v6 = vpack.c.bf16 %v1307_v33, %v1304_v56  ;;  %v1322_v56 = vld [vmem:[#allocation4 + $0xb50] sm:$0xff]  ;;  %v1325_v33 = vld [vmem:[#allocation4 + $0xb68] sm:$0xff]  ;;  %v7173_v57 = vsel %vm664_vm4, %v688_v11, %v690_v40 }
 0x22c   : > { %4963 = vmatprep.subr.bf16.mxu0 %v4962_v9  ;;  %5194 = vmatpush1.bf16.msra.mxu1 %v5193_v10  ;;  %v1315_v9 = vld [vmem:[#allocation4 + $0xb18] sm:$0xff]  ;;  %v1313_v10 = vld [vmem:[#allocation4 + $0xb08] sm:$0xff]  ;;  %v1336_v11 = vld [vmem:[#allocation4 + $0xbc0] sm:$0xff] }
 0x22d   : > { %2924 = vmatmul.mubr.f32.gmra.mrb[14].mxu1 %v7113_v19  ;;  %5195 = vmatprep.subr.bf16.mxu1 %v8108_v0  ;;  %v4978_v27 = vpack.c.bf16 %v1318_v7, %v1315_v9  ;;  %v5205_v28 = vpack.c.bf16 %v1313_v10, %v1310_v8  ;;  %v1329_v9 = vld [vmem:[#allocation4 + $0xb88] sm:$0xff]  ;;  %v5211_v7 = vpack.c.bf16 %v1325_v33, %v1322_v56  ;;  %v1328_v8 = vld [vmem:[#allocation4 + $0xb80] sm:$0xff] }
 0x22e   : > { %1934 = vmatmul.mubr.f32.gmra.mrb[14].mxu0 %v7113_v19  ;;  %2928 = vmatprep.mubr.f32.mxu1 %v757_v20  ;;  %v1333_v10 = vld [vmem:[#allocation4 + $0xba8] sm:$0xff] }
 0x22f   : > { %1939 = vmatprep.mubr.f32.mxu0 %v757_v20  ;;  %4965 = vmatpush1.bf16.msra.mxu0 %v4964_v25  ;;  %v4976_v20 = vpack.c.bf16 %v1311_v26, %v1308_v1  ;;  %v1314_v25 = vld [vmem:[#allocation4 + $0xb10] sm:$0xff]  ;;  %v4984_v1 = vpack.c.bf16 %v1323_v30, %v1320_v22  ;;  %v4986_v26 = vpack.c.bf16 %v1330_v55, %v1327_v52 }
 0x230   : > { %4967 = vmatprep.subr.bf16.mxu0 %v4966_v36  ;;  %5197 = vmatpush1.bf16.msra.mxu1 %v5196_v34  ;;  %v1317_v36 = vld [vmem:[#allocation4 + $0xb28] sm:$0xff]  ;;  %v1324_v34 = vld [vmem:[#allocation4 + $0xb60] sm:$0xff] }
 0x231   : > { %2929 = vmatmul.mubr.f32.gmra.mrb[16].mxu1 %v7125_v41  ;;  %5198 = vmatprep.subr.bf16.mxu1 %v8108_v0 }
 0x232   : > { %1940 = vmatmul.mubr.f32.gmra.mrb[16].mxu0 %v7125_v41  ;;  %2933 = vmatprep.mubr.f32.mxu1 %v759_v46 }
 0x233   : > { %1945 = vmatprep.mubr.f32.mxu0 %v759_v46  ;;  %4969 = vmatpush1.bf16.msra.mxu0 %v4968_v48  ;;  %v7166_v46 = vld [vmem:[%s6622_s17 + $0x70] sm:$0xff]  ;;  %v4980_v48 = vpack.c.bf16 %v1317_v36, %v1314_v25  ;;  %v7190_v25 = vld [vmem:[%s6622_s17 + $0x80] sm:$0xff] }
 0x234   : > { %4971 = vmatprep.subr.bf16.mxu0 %v4970_v29  ;;  %5200 = vmatpush1.bf16.msra.mxu1 %v5199_v18  ;;  %v766_v47 = vrot.slane %v7166_v46, 5  ;;  %v4982_v29 = vpack.c.bf16 %v1324_v34, %v1321_v31  ;;  %v5208_v18 = vpack.c.bf16 %v1319_v38, %v1316_v14  ;;  %v770_v36 = vrot.slane %v7190_v25, 5  ;;  %v1332_v14 = vld [vmem:[#allocation4 + $0xba0] sm:$0xff]  ;;  %v1335_v38 = vld [vmem:[#allocation4 + $0xbb8] sm:$0xff] }
 0x235   : > { %2934 = vmatmul.mubr.f32.gmra.mrb[18].mxu1 %v7137_v58  ;;  %5201 = vmatprep.subr.bf16.mxu1 %v8108_v0  ;;  %v4990_v31 = vpack.c.bf16 %v1336_v11, %v1333_v10  ;;  %v696_v22 = vrot.slane %v7190_v25, 4  ;;  %v4992_v55 = vpack.c.bf16 %v1335_v38, %v1332_v14  ;;  %v7214_v10 = vld [vmem:[%s6622_s17 + $0x90] sm:$0xff]  ;;  %v7226_v38 = vld [vmem:[%s6622_s17 + $0x98] sm:$0xff] }
 0x236   : > { %1946 = vmatmul.mubr.f32.gmra.mrb[18].mxu0 %v7137_v58  ;;  %2938 = vmatprep.mubr.f32.mxu1 %v761_v59  ;;  %v767_v61 = vsel %vm738_vm3, %v764_v54, %v766_v47  ;;  %v774_v11 = vrot.slane %v7214_v10, 5 }
 0x237   : > { %1951 = vmatprep.mubr.f32.mxu0 %v761_v59  ;;  %4973 = vmatpush1.bf16.msra.mxu0 %v4972_v49  ;;  %v692_v59 = vrot.slane %v7166_v46, 4  ;;  %v7178_v49 = vld [vmem:[%s6622_s17 + $0x78] sm:$0xff] }
 0x238   : > { %4975 = vmatprep.subr.bf16.mxu0 %v4974_v35  ;;  %5203 = vmatpush1.bf16.msra.mxu1 %v5202_v6  ;;  %v768_v35 = vrot.slane %v7178_v49, 5  ;;  %v1326_v6 = vld [vmem:[#allocation4 + $0xb70] sm:$0xff] }
 0x239   : > { %2939 = vmatmul.mubr.f32.gmra.mrb[20].mxu1 %v7149_v12  ;;  %5204 = vmatprep.subr.bf16.mxu1 %v8108_v0  ;;  %v7185_v54 = vsel %vm664_vm4, %v690_v40, %v692_v59  ;;  %v1334_v40 = vld [vmem:[#allocation4 + $0xbb0] sm:$0xff] }
 0x23a   : > { %1952 = vmatmul.mubr.f32.gmra.mrb[20].mxu0 %v7149_v12  ;;  %2943 = vmatprep.mubr.f32.mxu1 %v763_v13  ;;  %v771_v30 = vsel %vm738_vm3, %v768_v35, %v770_v36 }
 0x23b   : > { %1957 = vmatprep.mubr.f32.mxu0 %v763_v13  ;;  %4977 = vmatpush1.bf16.msra.mxu0 %v4976_v20  ;;  %v1331_v13 = vld [vmem:[#allocation4 + $0xb98] sm:$0xff]  ;;  %v694_v20 = vrot.slane %v7178_v49, 4 }
 0x23c   : > { %4979 = vmatprep.subr.bf16.mxu0 %v4978_v27  ;;  %5206 = vmatpush1.bf16.msra.mxu1 %v5205_v28  ;;  %v769_v27 = vsel %vm738_vm3, %v766_v47, %v768_v35  ;;  %v4988_v28 = vpack.c.bf16 %v1329_v9, %v1326_v6  ;;  %v5214_v34 = vpack.c.bf16 %v1331_v13, %v1328_v8  ;;  %v1339_v47 = vld [vmem:[#allocation4 + $0xbd8] sm:$0xff]  ;;  %v1348_v6 = vld [vmem:[#allocation4 + $0xc20] sm:$0xff] }
 0x23d   : > { %2944 = vmatmul.mubr.f32.gmra.mrb[22].mxu1 %v7161_v5  ;;  %5207 = vmatprep.subr.bf16.mxu1 %v8108_v0  ;;  %v1343_v35 = vld [vmem:[#allocation4 + $0xbf8] sm:$0xff]  ;;  %v7209_v9 = vsel %vm664_vm4, %v694_v20, %v696_v22 }
 0x23e   : > { %1958 = vmatmul.mubr.f32.gmra.mrb[22].mxu0 %v7161_v5  ;;  %2948 = vmatprep.mubr.f32.mxu1 %v765_v43 }
 0x23f   : > { %1963 = vmatprep.mubr.f32.mxu0 %v765_v43  ;;  %4981 = vmatpush1.bf16.msra.mxu0 %v4980_v48  ;;  %v1337_v43 = vld [vmem:[#allocation4 + $0xbc8] sm:$0xff]  ;;  %v1342_v48 = vld [vmem:[#allocation4 + $0xbf0] sm:$0xff] }
 0x240   : > { %4983 = vmatprep.subr.bf16.mxu0 %v4982_v29  ;;  %5209 = vmatpush1.bf16.msra.mxu1 %v5208_v18  ;;  %v7197_v29 = vsel %vm664_vm4, %v692_v59, %v694_v20  ;;  %v7202_v18 = vld [vmem:[%s6622_s17 + $0x88] sm:$0xff]  ;;  %v5217_v56 = vpack.c.bf16 %v1337_v43, %v1334_v40  ;;  %v4994_v33 = vpack.c.bf16 %v1342_v48, %v1339_v47  ;;  %v1341_v59 = vld [vmem:[#allocation4 + $0xbe8] sm:$0xff]  ;;  %v776_v40 = vrot.slane %v7226_v38, 5 }
 0x241   : > { %2949 = vmatmul.mubr.f32.gmra.mrb[24].mxu1 %v7173_v57  ;;  %5210 = vmatprep.subr.bf16.mxu1 %v8108_v0  ;;  %v772_v52 = vrot.slane %v7202_v18, 5  ;;  %v1349_v20 = vld [vmem:[#allocation4 + $0xc28] sm:$0xff]  ;;  %v702_v48 = vrot.slane %v7226_v38, 4 }
 0x242   : > { %1964 = vmatmul.mubr.f32.gmra.mrb[24].mxu0 %v7173_v57  ;;  %2953 = vmatprep.mubr.f32.mxu1 %v767_v61 }
 0x243   : > { %1969 = vmatprep.mubr.f32.mxu0 %v767_v61  ;;  %4985 = vmatpush1.bf16.msra.mxu0 %v4984_v1  ;;  %v1338_v61 = vld [vmem:[#allocation4 + $0xbd0] sm:$0xff]  ;;  %v1340_v1 = vld [vmem:[#allocation4 + $0xbe0] sm:$0xff]  ;;  %v773_v8 = vsel %vm738_vm3, %v770_v36, %v772_v52  ;;  %v775_v14 = vsel %vm738_vm3, %v772_v52, %v774_v11 }
 0x244   : > { %4987 = vmatprep.subr.bf16.mxu0 %v4986_v26  ;;  %5212 = vmatpush1.bf16.msra.mxu1 %v5211_v7  ;;  %v1345_v26 = vld [vmem:[#allocation4 + $0xc08] sm:$0xff]  ;;  %v698_v7 = vrot.slane %v7202_v18, 4  ;;  %v4996_v13 = vpack.c.bf16 %v1341_v59, %v1338_v61  ;;  %v7252_v61 = vld [vmem:[%s6622_s17 + $0xa8] sm:$0xff] }
 0x245   : > { %2954 = vmatmul.mubr.f32.gmra.mrb[26].mxu1 %v7185_v54  ;;  %5213 = vmatprep.subr.bf16.mxu1 %v8108_v0  ;;  %v780_v59 = vrot.slane %v7252_v61, 5 }
 0x246   : > { %1970 = vmatmul.mubr.f32.gmra.mrb[26].mxu0 %v7185_v54  ;;  %2958 = vmatprep.mubr.f32.mxu1 %v769_v27  ;;  %v7221_v36 = vsel %vm664_vm4, %v696_v22, %v698_v7  ;;  %v777_v22 = vsel %vm738_vm3, %v774_v11, %v776_v40 }
 0x247   : > { %1975 = vmatprep.mubr.f32.mxu0 %v769_v27  ;;  %4989 = vmatpush1.bf16.msra.mxu0 %v4988_v28  ;;  %v5220_v27 = vpack.c.bf16 %v1343_v35, %v1340_v1  ;;  %v4998_v28 = vpack.c.bf16 %v1348_v6, %v1345_v26  ;;  %8143 = vst [vmem:[#allocation35_spill] sm:$0xff] %v7221_v36  ;;  %v706_v35 = vrot.slane %v7252_v61, 4  ;;  %v7263_v6 = vld [vmem:[%s6622_s17 + $0xb0] sm:$0xff] }
 0x248   : > { %4991 = vmatprep.subr.bf16.mxu0 %v4990_v31  ;;  %5215 = vmatpush1.bf16.msra.mxu1 %v5214_v34  ;;  %v1346_v31 = vld [vmem:[#allocation4 + $0xc10] sm:$0xff]  ;;  %v700_v34 = vrot.slane %v7214_v10, 4  ;;  %v708_v11 = vrot.slane %v7263_v6, 4 }
 0x249   : > { %2959 = vmatmul.mubr.f32.gmra.mrb[28].mxu1 %v7197_v29  ;;  %5216 = vmatprep.subr.bf16.mxu1 %v8108_v0  ;;  %v7230_v43 = vpack.c.bf16 %v1349_v20, %v1346_v31 }
 0x24a   : > { %1976 = vmatmul.mubr.f32.gmra.mrb[28].mxu0 %v7197_v29  ;;  %2963 = vmatprep.mubr.f32.mxu1 %v771_v30  ;;  %v7235_v47 = vsel %vm664_vm4, %v698_v7, %v700_v34  ;;  %v782_v7 = vrot.slane %v7263_v6, 5  ;;  %v7280_v31 = vsel %vm664_vm4, %v706_v35, %v708_v11 }
 0x24b   : > { %1981 = vmatprep.mubr.f32.mxu0 %v771_v30  ;;  %4993 = vmatpush1.bf16.msra.mxu0 %v4992_v55  ;;  %8144 = vst [vmem:[#allocation36_spill] sm:$0xff] %v7235_v47  ;;  %v7240_v30 = vld [vmem:[%s6622_s17 + $0xa0] sm:$0xff]  ;;  %v7247_v55 = vsel %vm664_vm4, %v700_v34, %v702_v48  ;;  %8148 = vst [vmem:[#allocation40_spill] sm:$0xff] %v7280_v31 }
 0x24c   : > { %5218 = vmatpush1.bf16.msra.mxu1 %v5217_v56  ;;  %4995 = vmatprep.subr.bf16.mxu0 %v4994_v33  ;;  %v778_v52 = vrot.slane %v7240_v30, 5  ;;  %8145 = vst [vmem:[#allocation37_spill] sm:$0xff] %v7247_v55  ;;  %v704_v56 = vrot.slane %v7240_v30, 4 }
 0x24d   : > { %2964 = vmatmul.mubr.f32.gmra.mrb[30].mxu1 %v7209_v9  ;;  %5219 = vmatprep.subr.bf16.mxu1 %v8108_v0  ;;  %v892_v0 = vrot.slane %v7036_v44, 7 }
 0x24e   : > { %1982 = vmatmul.mubr.f32.gmra.mrb[30].mxu0 %v7209_v9  ;;  %2968 = vmatprep.mubr.f32.mxu1 %v773_v8  ;;  %v779_v33 = vsel %vm738_vm3, %v776_v40, %v778_v52  ;;  %v7258_v1 = vsel %vm664_vm4, %v702_v48, %v704_v56  ;;  %v781_v26 = vsel %vm738_vm3, %v778_v52, %v780_v59 }
 0x24f   : > { %1987 = vmatprep.mubr.f32.mxu0 %v773_v8  ;;  %4997 = vmatpush1.bf16.msra.mxu0 %v4996_v13  ;;  %8146 = vst [vmem:[#allocation38_spill] sm:$0xff] %v7258_v1  ;;  %v7269_v8 = vsel %vm664_vm4, %v704_v56, %v706_v35  ;;  %v783_v13 = vsel %vm738_vm3, %v780_v59, %v782_v7  ;;  %v887_v56 = vrot.slane %v7015_v50, 7  ;;  %v813_v35 = vrot.slane %v7015_v50, 6 }
 0x250   : > { %5221 = vmatpush1.bf16.msra.mxu1 %v5220_v27  ;;  %4999 = vmatprep.subr.bf16.mxu0 %v4998_v28  ;;  %8147 = vst [vmem:[#allocation39_spill] sm:$0xff] %v7269_v8  ;;  %v7274_v27 = vld [vmem:[%s6622_s17 + $0xb8] sm:$0xff] }
 0x251   : > { %2969 = vmatmul.mubr.f32.gmra.mrb[32].mxu1 %v7221_v36  ;;  %5223 = vmatprep.subr.bf16.mxu1 %v7230_v43  ;;  %v784_v28 = vrot.slane %v7274_v27, 5  ;;  %v710_v20 = vrot.slane %v7274_v27, 4 }
 0x252   : > { %1988 = vmatmul.mubr.f32.gmra.mrb[32].mxu0 %v7221_v36  ;;  %2973 = vmatprep.mubr.f32.mxu1 %v775_v14  ;;  %v1361_v36 = vld [vmem:[#allocation4 + $0xc88] sm:$0xff] }
 0x253   : > { %1993 = vmatprep.mubr.f32.mxu0 %v775_v14  ;;  %v785_v34 = vsel %vm738_vm3, %v782_v7, %v784_v28  ;;  %v7285_v14 = vld [vmem:[%s6622_s17 + $0xc0] sm:$0xff]  ;;  %v7291_v48 = vsel %vm664_vm4, %v708_v11, %v710_v20  ;;  %v1344_v11 = vld [vmem:[#allocation4 + $0xc00] sm:$0xff] }
 0x254   : > { %v786_v40 = vrot.slane %v7285_v14, 5  ;;  %8149 = vst [vmem:[#allocation41_spill] sm:$0xff] %v7291_v48 }
 0x255   : > { %2974 = vmatmul.mubr.f32.gmra.mrb[34].mxu1 %v7235_v47 }
 0x256   : > { %1994 = vmatmul.mubr.f32.gmra.mrb[34].mxu0 %v7235_v47  ;;  %2978 = vmatprep.mubr.f32.mxu1 %v777_v22  ;;  %v787_v52 = vsel %vm738_vm3, %v784_v28, %v786_v40  ;;  %v890_v28 = vrot.slane %v7027_v32, 7  ;;  %v1354_v40 = vld [vmem:[#allocation4 + $0xc50] sm:$0xff] }
 0x257   : > { %1999 = vmatprep.mubr.f32.mxu0 %v777_v22  ;;  %v712_v22 = vrot.slane %v7285_v14, 4  ;;  %v1358_v47 = vld [vmem:[#allocation4 + $0xc70] sm:$0xff] }
 0x259   : > { %2979 = vmatmul.mubr.f32.gmra.mrb[36].mxu1 %v7247_v55  ;;  %v7300_v59 = vsel %vm664_vm4, %v710_v20, %v712_v22  ;;  %v1355_v20 = vld [vmem:[#allocation4 + $0xc58] sm:$0xff]  ;;  %v816_v22 = vrot.slane %v7027_v32, 6  ;;  %v818_v32 = vrot.slane %v7036_v44, 6 }
 0x25a   : > { %2000 = vmatmul.mubr.f32.gmra.mrb[36].mxu0 %v7247_v55  ;;  %2983 = vmatprep.mubr.f32.mxu1 %v779_v33  ;;  %8150 = vst [vmem:[#allocation42_spill] sm:$0xff] %v7300_v59  ;;  %v1357_v55 = vld [vmem:[#allocation4 + $0xc68] sm:$0xff]  ;;  %v1367_v44 = vld [vmem:[#allocation4 + $0xcb8] sm:$0xff] }
 0x25b   : > { %2005 = vmatprep.mubr.f32.mxu0 %v779_v33  ;;  %v888_v33 = vrot.slane %v7019_v21, 7 }
 0x25d   : > { %2984 = vmatmul.mubr.f32.gmra.mrb[38].mxu1 %v7258_v1  ;;  %v889_v7 = vsel %vm886_vm5, %v887_v56, %v888_v33  ;;  %v891_v56 = vsel %vm886_vm5, %v888_v33, %v890_v28  ;;  %v893_v33 = vsel %vm886_vm5, %v890_v28, %v892_v0  ;;  %v819_v28 = vsel %vm812_vm6, %v816_v22, %v818_v32 }
 0x25e   : > { %2006 = vmatmul.mubr.f32.gmra.mrb[38].mxu0 %v7258_v1  ;;  %2988 = vmatprep.mubr.f32.mxu1 %v781_v26 }
 0x25f   : > { %2011 = vmatprep.mubr.f32.mxu0 %v781_v26  ;;  %v814_v26 = vrot.slane %v7019_v21, 6 }
 0x261   : > { %2989 = vmatmul.mubr.f32.gmra.mrb[40].mxu1 %v7269_v8  ;;  %v815_v50 = vsel %vm812_vm6, %v813_v35, %v814_v26  ;;  %v817_v35 = vsel %vm812_vm6, %v814_v26, %v816_v22  ;;  %v1366_v26 = vld [vmem:[#allocation4 + $0xcb0] sm:$0xff] }
 0x262   : > { %2012 = vmatmul.mubr.f32.gmra.mrb[40].mxu0 %v7269_v8  ;;  %2993 = vmatprep.mubr.f32.mxu1 %v783_v13  ;;  %v1353_v8 = vld [vmem:[#allocation4 + $0xc48] sm:$0xff]  ;;  %v1370_v22 = vld [vmem:[#allocation4 + $0xcd0] sm:$0xff] }
 0x263   : > { %2017 = vmatprep.mubr.f32.mxu0 %v783_v13  ;;  %v1347_v13 = vld [vmem:[#allocation4 + $0xc18] sm:$0xff] }
 0x264   : > { %v5000_v21 = vpack.c.bf16 %v1347_v13, %v1344_v11 }
 0x265   : > { %2994 = vmatmul.mubr.f32.gmra.mrb[42].mxu1 %v7280_v31 }
 0x266   : > { %2018 = vmatmul.mubr.f32.gmra.mrb[42].mxu0 %v7280_v31  ;;  %2998 = vmatprep.mubr.f32.mxu1 %v785_v34  ;;  %v1350_v31 = vld [vmem:[#allocation4 + $0xc30] sm:$0xff] }
 0x267   : > { %2023 = vmatprep.mubr.f32.mxu0 %v785_v34  ;;  %v1351_v34 = vld [vmem:[#allocation4 + $0xc38] sm:$0xff]  ;;  %v5004_v11 = vpack.c.bf16 %v1353_v8, %v1350_v31 }
 0x269   : > { %2999 = vmatmul.mubr.f32.gmra.mrb[44].mxu1 %v7291_v48 }
 0x26a   : > { %2024 = vmatmul.mubr.f32.gmra.mrb[44].mxu0 %v7291_v48  ;;  %3003 = vmatprep.mubr.f32.mxu1 %v787_v52  ;;  %v5002_v48 = vpack.c.bf16 %v1354_v40, %v1351_v34  ;;  %v1356_v34 = vld [vmem:[#allocation4 + $0xc60] sm:$0xff]  ;;  %v1359_v40 = vld [vmem:[#allocation4 + $0xc78] sm:$0xff] }
 0x26b   : > { %2029 = vmatprep.mubr.f32.mxu0 %v787_v52  ;;  %v1352_v52 = vld [vmem:[#allocation4 + $0xc40] sm:$0xff]  ;;  %v5008_v31 = vpack.c.bf16 %v1359_v40, %v1356_v34  ;;  %v1371_v40 = vld [vmem:[#allocation4 + $0xcd8] sm:$0xff] }
 0x26c   : > { %v5226_v1 = vpack.c.bf16 %v1355_v20, %v1352_v52  ;;  %v5230_v52 = vpack.c.bf16 %v1361_v36, %v1358_v47  ;;  %v1363_v20 = vld [vmem:[#allocation4 + $0xc98] sm:$0xff]  ;;  %v1362_v47 = vld [vmem:[#allocation4 + $0xc90] sm:$0xff]  ;;  %v1368_v34 = vld [vmem:[#allocation4 + $0xcc0] sm:$0xff] }
 0x26d   : > { %3004 = vmatmul.mubr.f32.gmra.mrb[46].mxu1 %v7300_v59  ;;  %v5010_v36 = vpack.c.bf16 %v1366_v26, %v1363_v20  ;;  %v1375_v26 = vld [vmem:[#allocation4 + $0xcf8] sm:$0xff] }
 0x26e   : > { %2030 = vmatmul.mubr.f32.gmra.mrb[46].mxu0 %v7300_v59  ;;  %3073 = vmatprep.mubr.f32.mxu1 %v889_v7  ;;  %v1360_v59 = vld [vmem:[#allocation4 + $0xc80] sm:$0xff] }
 0x26f   : > { %2100 = vmatprep.mubr.f32.mxu0 %v889_v7  ;;  %v894_v7 = vrot.slane %v7047_v53, 7  ;;  %v5006_v13 = vpack.c.bf16 %v1360_v59, %v1357_v55  ;;  %v896_v55 = vrot.slane %v7059_v3, 7 }
 0x271   : > { %3074 = vmatmul.mubr.f32.vlgmr.msra.gmra.mrb[0].mxu1 %v815_v50  ;;  %v895_v8 = vsel %vm886_vm5, %v892_v0, %v894_v7 }
 0x272   : > { %2101 = vmatmul.mubr.f32.vlgmr.msra.gmra.mrb[0].mxu0 %v815_v50  ;;  %3078 = vmatprep.mubr.f32.mxu1 %v891_v56  ;;  %v1364_v50 = vld [vmem:[#allocation4 + $0xca0] sm:$0xff] }
 0x273   : > { %5001 = vmatpush1.bf16.msra.mxu0 %v5000_v21  ;;  %2106 = vmatprep.mubr.f32.mxu0 %v891_v56  ;;  %v5234_v59 = vpack.c.bf16 %v1367_v44, %v1364_v50  ;;  %v1369_v21 = vld [vmem:[#allocation4 + $0xcc8] sm:$0xff]  ;;  %v1372_v56 = vld [vmem:[#allocation4 + $0xce0] sm:$0xff]  ;;  %v1378_v50 = vld [vmem:[#allocation4 + $0xd10] sm:$0xff] }
 0x274   : > { %5225 = vmatpush3.bf16.msra.mxu1 %v7230_v43  ;;  %5003 = vmatprep.subr.bf16.mxu0 %v5002_v48  ;;  %v820_v43 = vrot.slane %v7047_v53, 6  ;;  %v1365_v48 = vld [vmem:[#allocation4 + $0xca8] sm:$0xff]  ;;  %v822_v53 = vrot.slane %v7059_v3, 6  ;;  %v1379_v44 = vld [vmem:[#allocation4 + $0xd18] sm:$0xff] }
 0x275   : > { %5227 = vmatprep.subr.bf16.mxu1 %v5226_v1  ;;  %3079 = vmatmul.mubr.f32.gmra.mrb[2].mxu1 %v817_v35 }
 0x276   : > { %2107 = vmatmul.mubr.f32.gmra.mrb[2].mxu0 %v817_v35  ;;  %3083 = vmatprep.mubr.f32.mxu1 %v893_v33  ;;  %v1373_v35 = vld [vmem:[#allocation4 + $0xce8] sm:$0xff]  ;;  %v821_v0 = vsel %vm812_vm6, %v818_v32, %v820_v43  ;;  %v1376_v32 = vld [vmem:[#allocation4 + $0xd00] sm:$0xff]  ;;  %v823_v3 = vsel %vm812_vm6, %v820_v43, %v822_v53  ;;  %v1382_v43 = vld [vmem:[#allocation4 + $0xd30] sm:$0xff] }
 0x277   : > { %2112 = vmatprep.mubr.f32.mxu0 %v893_v33  ;;  %5005 = vmatpush1.bf16.msra.mxu0 %v5004_v11  ;;  %v898_v33 = vrot.slane %v7070_v16, 7  ;;  %v5012_v11 = vpack.c.bf16 %v1365_v48, %v1362_v47  ;;  %v5238_v20 = vpack.c.bf16 %v1373_v35, %v1370_v22  ;;  %v1377_v47 = vld [vmem:[#allocation4 + $0xd08] sm:$0xff]  ;;  %v5242_v48 = vpack.c.bf16 %v1379_v44, %v1376_v32 }
 0x278   : > { %5229 = vmatpush3.bf16.msra.mxu1 %v5226_v1  ;;  %5007 = vmatprep.subr.bf16.mxu0 %v5006_v13  ;;  %v897_v1 = vsel %vm886_vm5, %v894_v7, %v896_v55  ;;  %v5014_v13 = vpack.c.bf16 %v1372_v56, %v1369_v21  ;;  %v824_v7 = vrot.slane %v7070_v16, 6  ;;  %v1381_v21 = vld [vmem:[#allocation4 + $0xd28] sm:$0xff]  ;;  %v1384_v56 = vld [vmem:[#allocation4 + $0xd40] sm:$0xff]  ;;  %v902_v35 = vrot.slane %v7094_v51, 7 }
 0x279   : > { %5231 = vmatprep.subr.bf16.mxu1 %v5230_v52  ;;  %3084 = vmatmul.mubr.f32.gmra.mrb[4].mxu1 %v819_v28  ;;  %v1385_v22 = vld [vmem:[#allocation4 + $0xd48] sm:$0xff]  ;;  %v904_v32 = vrot.slane %v7106_v4, 7 }
 0x27a   : > { %2113 = vmatmul.mubr.f32.gmra.mrb[4].mxu0 %v819_v28  ;;  %3088 = vmatprep.mubr.f32.mxu1 %v895_v8  ;;  %v900_v28 = vrot.slane %v7082_v63, 7  ;;  %v825_v16 = vsel %vm812_vm6, %v822_v53, %v824_v7  ;;  %v1388_v53 = vld [vmem:[#allocation4 + $0xd60] sm:$0xff] }
 0x27b   : > { %2118 = vmatprep.mubr.f32.mxu0 %v895_v8  ;;  %5009 = vmatpush1.bf16.msra.mxu0 %v5008_v31  ;;  %v5016_v8 = vpack.c.bf16 %v1371_v40, %v1368_v34  ;;  %v5018_v31 = vpack.c.bf16 %v1378_v50, %v1375_v26  ;;  %v5246_v34 = vpack.c.bf16 %v1385_v22, %v1382_v43  ;;  %v1387_v40 = vld [vmem:[#allocation4 + $0xd58] sm:$0xff]  ;;  %v1390_v26 = vld [vmem:[#allocation4 + $0xd70] sm:$0xff]  ;;  %v8151_v43 = vmov 0.0|0.0  }
 0x27c   : > { %5233 = vmatpush3.bf16.msra.mxu1 %v5230_v52  ;;  %5011 = vmatprep.subr.bf16.mxu0 %v5010_v36  ;;  %v899_v52 = vsel %vm886_vm5, %v896_v55, %v898_v33  ;;  %v1374_v36 = vld [vmem:[#allocation4 + $0xcf0] sm:$0xff]  ;;  %v826_v55 = vrot.slane %v7082_v63, 6  ;;  %v1391_v50 = vld [vmem:[#allocation4 + $0xd78] sm:$0xff] }
 0x27d   : > { %5235 = vmatprep.subr.bf16.mxu1 %v5234_v59  ;;  %3089 = vmatmul.mubr.f32.gmra.mrb[6].mxu1 %v821_v0 }
 0x27e   : > { %2119 = vmatmul.mubr.f32.gmra.mrb[6].mxu0 %v821_v0  ;;  %3093 = vmatprep.mubr.f32.mxu1 %v897_v1  ;;  %v5020_v0 = vpack.c.bf16 %v1377_v47, %v1374_v36  ;;  %v827_v63 = vsel %vm812_vm6, %v824_v7, %v826_v55  ;;  %v906_v36 = vrot.slane %v7118_v24, 7 }
 0x27f   : > { %2124 = vmatprep.mubr.f32.mxu0 %v897_v1  ;;  %5013 = vmatpush1.bf16.msra.mxu0 %v5012_v11  ;;  %v5022_v1 = vpack.c.bf16 %v1384_v56, %v1381_v21  ;;  %v1380_v11 = vld [vmem:[#allocation4 + $0xd20] sm:$0xff]  ;;  %v832_v21 = vrot.slane %v7118_v24, 6  ;;  %v910_v24 = vrot.slane %v7142_v60, 7 }
 0x280   : > { %5237 = vmatpush3.bf16.msra.mxu1 %v5234_v59  ;;  %5015 = vmatprep.subr.bf16.mxu0 %v5014_v13  ;;  %v901_v59 = vsel %vm886_vm5, %v898_v33, %v900_v28  ;;  %v1383_v13 = vld [vmem:[#allocation4 + $0xd38] sm:$0xff]  ;;  %v828_v33 = vrot.slane %v7094_v51, 6  ;;  %v830_v51 = vrot.slane %v7106_v4, 6  ;;  %v907_v56 = vsel %vm886_vm5, %v904_v32, %v906_v36 }
 0x281   : > { %5239 = vmatprep.subr.bf16.mxu1 %v5238_v20  ;;  %3094 = vmatmul.mubr.f32.gmra.mrb[8].mxu1 %v823_v3  ;;  %v5024_v44 = vpack.c.bf16 %v1383_v13, %v1380_v11  ;;  %v908_v4 = vrot.slane %v7130_v45, 7  ;;  %v838_v11 = vrot.slane %v7154_v17, 6 }
 0x282   : > { %2125 = vmatmul.mubr.f32.gmra.mrb[8].mxu0 %v823_v3  ;;  %3098 = vmatprep.mubr.f32.mxu1 %v899_v52  ;;  %v5026_v3 = vpack.c.bf16 %v1390_v26, %v1387_v40  ;;  %v829_v7 = vsel %vm812_vm6, %v826_v55, %v828_v33  ;;  %v833_v22 = vsel %vm812_vm6, %v830_v51, %v832_v21  ;;  %v840_v40 = vrot.slane %v7166_v46, 6 }
 0x283   : > { %2130 = vmatprep.mubr.f32.mxu0 %v899_v52  ;;  %5017 = vmatpush1.bf16.msra.mxu0 %v5016_v8  ;;  %v1386_v52 = vld [vmem:[#allocation4 + $0xd50] sm:$0xff]  ;;  %v1389_v8 = vld [vmem:[#allocation4 + $0xd68] sm:$0xff]  ;;  %v909_v55 = vsel %vm886_vm5, %v906_v36, %v908_v4  ;;  %v848_v36 = vrot.slane %v7214_v10, 6 }
 0x284   : > { %5241 = vmatpush3.bf16.msra.mxu1 %v5238_v20  ;;  %5019 = vmatprep.subr.bf16.mxu0 %v5018_v31  ;;  %v903_v20 = vsel %vm886_vm5, %v900_v28, %v902_v35  ;;  %v5250_v31 = vpack.c.bf16 %v1391_v50, %v1388_v53  ;;  %v905_v28 = vsel %vm886_vm5, %v902_v35, %v904_v32  ;;  %v836_v35 = vrot.slane %v7142_v60, 6 }
 0x285   : > { %5243 = vmatprep.subr.bf16.mxu1 %v5242_v48  ;;  %3099 = vmatmul.mubr.f32.gmra.mrb[10].mxu1 %v825_v16  ;;  %v5028_v47 = vpack.c.bf16 %v1389_v8, %v1386_v52  ;;  %v916_v53 = vrot.slane %v7178_v49, 7  ;;  %v841_v50 = vsel %vm812_vm6, %v838_v11, %v840_v40  ;;  %v920_v52 = vrot.slane %v7202_v18, 7 }
 0x286   : > { %2131 = vmatmul.mubr.f32.gmra.mrb[10].mxu0 %v825_v16  ;;  %3103 = vmatprep.mubr.f32.mxu1 %v901_v59  ;;  %v834_v16 = vrot.slane %v7130_v45, 6  ;;  %v839_v60 = vsel %vm812_vm6, %v836_v35, %v838_v11 }
 0x287   : > { %2136 = vmatprep.mubr.f32.mxu0 %v901_v59  ;;  %5021 = vmatpush1.bf16.msra.mxu0 %v5020_v0  ;;  %v911_v0 = vsel %vm886_vm5, %v908_v4, %v910_v24 }
 0x288   : > { %5245 = vmatpush3.bf16.msra.mxu1 %v5242_v48  ;;  %5023 = vmatprep.subr.bf16.mxu0 %v5022_v1  ;;  %v831_v48 = vsel %vm812_vm6, %v828_v33, %v830_v51  ;;  %v835_v59 = vsel %vm812_vm6, %v832_v21, %v834_v16  ;;  %v912_v1 = vrot.slane %v7154_v17, 7  ;;  %v837_v45 = vsel %vm812_vm6, %v834_v16, %v836_v35 }
 0x289   : > { %5247 = vmatprep.subr.bf16.mxu1 %v5246_v34  ;;  %3104 = vmatmul.mubr.f32.gmra.mrb[12].mxu1 %v827_v63  ;;  %v922_v51 = vrot.slane %v7214_v10, 7 }
 0x28a   : > { %2137 = vmatmul.mubr.f32.gmra.mrb[12].mxu0 %v827_v63  ;;  %3108 = vmatprep.mubr.f32.mxu1 %v903_v20  ;;  %v913_v13 = vsel %vm886_vm5, %v910_v24, %v912_v1  ;;  %v842_v63 = vrot.slane %v7178_v49, 6 }
 0x28b   : > { %2142 = vmatprep.mubr.f32.mxu0 %v903_v20  ;;  %5025 = vmatpush1.bf16.msra.mxu0 %v5024_v44  ;;  %v918_v20 = vrot.slane %v7190_v25, 7  ;;  %v844_v44 = vrot.slane %v7190_v25, 6 }
 0x28c   : > { %5249 = vmatpush3.bf16.msra.mxu1 %v5246_v34  ;;  %5027 = vmatprep.subr.bf16.mxu0 %v5026_v3  ;;  %v914_v34 = vrot.slane %v7166_v46, 7  ;;  %v843_v32 = vsel %vm812_vm6, %v840_v40, %v842_v63 }
 0x28d   : > { %5251 = vmatprep.subr.bf16.mxu1 %v5250_v31  ;;  %3109 = vmatmul.mubr.f32.gmra.mrb[14].mxu1 %v829_v7  ;;  %v919_v3 = vsel %vm886_vm5, %v916_v53, %v918_v20  ;;  %v845_v8 = vsel %vm812_vm6, %v842_v63, %v844_v44 }
 0x28e   : > { %2143 = vmatmul.mubr.f32.gmra.mrb[14].mxu0 %v829_v7  ;;  %3113 = vmatprep.mubr.f32.mxu1 %v905_v28  ;;  %v915_v26 = vsel %vm886_vm5, %v912_v1, %v914_v34  ;;  %v917_v33 = vsel %vm886_vm5, %v914_v34, %v916_v53  ;;  %v921_v7 = vsel %vm886_vm5, %v918_v20, %v920_v52 }
 0x28f   : > { %2148 = vmatprep.mubr.f32.mxu0 %v905_v28  ;;  %5029 = vmatpush1.bf16.msra.mxu0 %v5028_v47  ;;  %v923_v47 = vsel %vm886_vm5, %v920_v52, %v922_v51  ;;  %v5964_v52 = vld [vmem:[%s6622_s17 + $0x10] sm:$0xff] }
 0x290   : > { %5253 = vmatpush3.bf16.msra.mxu1 %v5250_v31  ;;  %v846_v31 = vrot.slane %v7202_v18, 6 }
 0x291   : > { %5254 = vmatprep.subr.bf16.mxu1 %v8151_v43  ;;  %3114 = vmatmul.mubr.f32.gmra.mrb[16].mxu1 %v831_v48 }
 0x292   : > { %2149 = vmatmul.mubr.f32.gmra.mrb[16].mxu0 %v831_v48  ;;  %3118 = vmatprep.mubr.f32.mxu1 %v907_v56  ;;  %v847_v28 = vsel %vm812_vm6, %v844_v44, %v846_v31  ;;  %v924_v48 = vrot.slane %v7226_v38, 7  ;;  %v849_v21 = vsel %vm812_vm6, %v846_v31, %v848_v36  ;;  %v5963_v44 = vld [vmem:[%s6622_s17 + $0x8] sm:$0xff]  ;;  %v3484_v31 = vld [vmem:[#allocation9 + $0x108] sm:$0xff] }
 0x293   : > { %2154 = vmatprep.mubr.f32.mxu0 %v907_v56  ;;  %v850_v56 = vrot.slane %v7226_v38, 6 }
 0x294   : > { %v925_v4 = vsel %vm886_vm5, %v922_v51, %v924_v48 }
 0x295   : > { %3119 = vmatmul.mubr.f32.gmra.mrb[18].mxu1 %v833_v22  ;;  %v851_v16 = vsel %vm812_vm6, %v848_v36, %v850_v56  ;;  %v5967_v36 = vld [vmem:[%s6622_s17 + $0x28] sm:$0xff] }
 0x296   : > { %2155 = vmatmul.mubr.f32.gmra.mrb[18].mxu0 %v833_v22  ;;  %3123 = vmatprep.mubr.f32.mxu1 %v909_v55  ;;  %v926_v22 = vrot.slane %v7240_v30, 7 }
 0x297   : > { %2160 = vmatprep.mubr.f32.mxu0 %v909_v55  ;;  %v852_v55 = vrot.slane %v7240_v30, 6 }
 0x298   : > { %v927_v24 = vsel %vm886_vm5, %v924_v48, %v926_v22  ;;  %v5969_v48 = vld [vmem:[%s6622_s17 + $0x38] sm:$0xff] }
 0x299   : > { %3124 = vmatmul.mubr.f32.gmra.mrb[20].mxu1 %v835_v59  ;;  %v853_v35 = vsel %vm812_vm6, %v850_v56, %v852_v55  ;;  %v3485_v56 = vld [vmem:[#allocation9 + $0x110] sm:$0xff] }
 0x29a   : > { %2161 = vmatmul.mubr.f32.gmra.mrb[20].mxu0 %v835_v59  ;;  %3128 = vmatprep.mubr.f32.mxu1 %v911_v0  ;;  %v928_v59 = vrot.slane %v7252_v61, 7 }
 0x29b   : > { %2166 = vmatprep.mubr.f32.mxu0 %v911_v0  ;;  %v854_v0 = vrot.slane %v7252_v61, 6 }
 0x29c   : > { %v929_v1 = vsel %vm886_vm5, %v926_v22, %v928_v59  ;;  %v5971_v22 = vld [vmem:[%s6622_s17 + $0x48] sm:$0xff] }
 0x29d   : > { %3129 = vmatmul.mubr.f32.gmra.mrb[22].mxu1 %v837_v45  ;;  %v855_v11 = vsel %vm812_vm6, %v852_v55, %v854_v0  ;;  %v5972_v55 = vld [vmem:[%s6622_s17 + $0x50] sm:$0xff] }
 0x29e   : > { %2167 = vmatmul.mubr.f32.gmra.mrb[22].mxu0 %v837_v45  ;;  %3133 = vmatprep.mubr.f32.mxu1 %v913_v13  ;;  %v930_v45 = vrot.slane %v7263_v6, 7 }
 0x29f   : > { %2172 = vmatprep.mubr.f32.mxu0 %v913_v13  ;;  %v856_v13 = vrot.slane %v7263_v6, 6 }
 0x2a0   : > { %v931_v34 = vsel %vm886_vm5, %v928_v59, %v930_v45  ;;  %v5974_v59 = vld [vmem:[%s6622_s17 + $0x60] sm:$0xff] }
 0x2a1   : > { %3134 = vmatmul.mubr.f32.gmra.mrb[24].mxu1 %v839_v60  ;;  %v857_v40 = vsel %vm812_vm6, %v854_v0, %v856_v13  ;;  %v3488_v0 = vld [vmem:[#allocation9 + $0x128] sm:$0xff] }
 0x2a2   : > { %2173 = vmatmul.mubr.f32.gmra.mrb[24].mxu0 %v839_v60  ;;  %3138 = vmatprep.mubr.f32.mxu1 %v915_v26  ;;  %v932_v60 = vrot.slane %v7274_v27, 7 }
 0x2a3   : > { %2178 = vmatprep.mubr.f32.mxu0 %v915_v26  ;;  %v858_v26 = vrot.slane %v7274_v27, 6 }
 0x2a4   : > { %v933_v53 = vsel %vm886_vm5, %v930_v45, %v932_v60  ;;  %v3451_v45 = vld [vmem:[#allocation9] sm:$0xff] }
 0x2a5   : > { %3139 = vmatmul.mubr.f32.gmra.mrb[26].mxu1 %v841_v50  ;;  %v859_v63 = vsel %vm812_vm6, %v856_v13, %v858_v26 }
 0x2a6   : > { %2179 = vmatmul.mubr.f32.gmra.mrb[26].mxu0 %v841_v50  ;;  %3143 = vmatprep.mubr.f32.mxu1 %v917_v33  ;;  %v934_v50 = vrot.slane %v7285_v14, 7 }
 0x2a7   : > { %2184 = vmatprep.mubr.f32.mxu0 %v917_v33  ;;  %v860_v33 = vrot.slane %v7285_v14, 6 }
 0x2a8   : > { %v935_v20 = vsel %vm886_vm5, %v932_v60, %v934_v50  ;;  %v3489_v60 = vld [vmem:[#allocation9 + $0x130] sm:$0xff] }
 0x2a9   : > { %3144 = vmatmul.mubr.f32.gmra.mrb[28].mxu1 %v843_v32 }
 0x2aa   : > { %2185 = vmatmul.mubr.f32.gmra.mrb[28].mxu0 %v843_v32  ;;  %3148 = vmatprep.mubr.f32.mxu1 %v919_v3  ;;  %v861_v32 = vsel %vm812_vm6, %v858_v26, %v860_v33  ;;  %v3457_v26 = vld [vmem:[#allocation9 + $0x30] sm:$0xff]  ;;  %v3460_v33 = vld [vmem:[#allocation9 + $0x48] sm:$0xff] }
 0x2ab   : > { %2190 = vmatprep.mubr.f32.mxu0 %v919_v3  ;;  %v6332_v3 = vmov 0.0  }
 0x2ad   : > { %3149 = vmatmul.mubr.f32.gmra.mrb[30].mxu1 %v845_v8 }
 0x2ae   : > { %2191 = vmatmul.mubr.f32.gmra.mrb[30].mxu0 %v845_v8  ;;  %3153 = vmatprep.mubr.f32.mxu1 %v921_v7  ;;  %v3483_v8 = vld [vmem:[#allocation9 + $0x100] sm:$0xff] }
 0x2af   : > { %2196 = vmatprep.mubr.f32.mxu0 %v921_v7  ;;  %v5965_v7 = vld [vmem:[%s6622_s17 + $0x18] sm:$0xff]  ;;  %v5302_v51 = vpack.c.bf16 %v3484_v31, %v3483_v8  ;;  %v5975_v8 = vld [vmem:[%s6622_s17 + $0x68] sm:$0xff] }
 0x2b0   : > { %v3491_v31 = vld [vmem:[#allocation9 + $0x140] sm:$0xff] }
 0x2b1   : > { %3154 = vmatmul.mubr.f32.gmra.mrb[32].mxu1 %v847_v28  ;;  %5303 = vmatprep.subr.bf16.mxu0 %v5302_v51 }
 0x2b2   : > { %2197 = vmatmul.mubr.f32.gmra.mrb[32].mxu0 %v847_v28  ;;  %3158 = vmatprep.mubr.f32.mxu1 %v923_v47  ;;  %v5966_v28 = vld [vmem:[%s6622_s17 + $0x20] sm:$0xff] }
 0x2b3   : > { %2202 = vmatprep.mubr.f32.mxu0 %v923_v47  ;;  %v5968_v47 = vld [vmem:[%s6622_s17 + $0x30] sm:$0xff] }
 0x2b5   : > { %3159 = vmatmul.mubr.f32.gmra.mrb[34].mxu1 %v849_v21 }
 0x2b6   : > { %2203 = vmatmul.mubr.f32.gmra.mrb[34].mxu0 %v849_v21  ;;  %3163 = vmatprep.mubr.f32.mxu1 %v925_v4  ;;  %v5970_v21 = vld [vmem:[%s6622_s17 + $0x40] sm:$0xff] }
 0x2b7   : > { %2208 = vmatprep.mubr.f32.mxu0 %v925_v4  ;;  %v3486_v4 = vld [vmem:[#allocation9 + $0x118] sm:$0xff] }
 0x2b9   : > { %3164 = vmatmul.mubr.f32.gmra.mrb[36].mxu1 %v851_v16 }
 0x2ba   : > { %2209 = vmatmul.mubr.f32.gmra.mrb[36].mxu0 %v851_v16  ;;  %3168 = vmatprep.mubr.f32.mxu1 %v927_v24  ;;  %v5306_v16 = vpack.c.bf16 %v3486_v4, %v3485_v56  ;;  %v3466_v56 = vld [vmem:[#allocation9 + $0x78] sm:$0xff] }
 0x2bb   : > { %2214 = vmatprep.mubr.f32.mxu0 %v927_v24  ;;  %v5973_v24 = vld [vmem:[%s6622_s17 + $0x58] sm:$0xff] }
 0x2bd   : > { %3169 = vmatmul.mubr.f32.gmra.mrb[38].mxu1 %v853_v35 }
 0x2be   : > { %2215 = vmatmul.mubr.f32.gmra.mrb[38].mxu0 %v853_v35  ;;  %3173 = vmatprep.mubr.f32.mxu1 %v929_v1  ;;  %v3487_v35 = vld [vmem:[#allocation9 + $0x120] sm:$0xff] }
 0x2bf   : > { %2220 = vmatprep.mubr.f32.mxu0 %v929_v1  ;;  %v5310_v1 = vpack.c.bf16 %v3488_v0, %v3487_v35  ;;  %v3493_v35 = vld [vmem:[#allocation9 + $0x150] sm:$0xff]  ;;  %v3494_v0 = vld [vmem:[#allocation9 + $0x158] sm:$0xff] }
 0x2c1   : > { %3174 = vmatmul.mubr.f32.gmra.mrb[40].mxu1 %v855_v11 }
 0x2c2   : > { %2221 = vmatmul.mubr.f32.gmra.mrb[40].mxu0 %v855_v11  ;;  %3178 = vmatprep.mubr.f32.mxu1 %v931_v34  ;;  %v3452_v11 = vld [vmem:[#allocation9 + $0x8] sm:$0xff] }
 0x2c3   : > { %2226 = vmatprep.mubr.f32.mxu0 %v931_v34  ;;  %v5255_v13 = vpack.c.bf16 %v3452_v11, %v3451_v45  ;;  %v3469_v45 = vld [vmem:[#allocation9 + $0x90] sm:$0xff]  ;;  %v3470_v11 = vld [vmem:[#allocation9 + $0x98] sm:$0xff] }
 0x2c5   : > { %3179 = vmatmul.mubr.f32.gmra.mrb[42].mxu1 %v857_v40 }
 0x2c6   : > { %2227 = vmatmul.mubr.f32.gmra.mrb[42].mxu0 %v857_v40  ;;  %3183 = vmatprep.mubr.f32.mxu1 %v933_v53  ;;  %v3490_v40 = vld [vmem:[#allocation9 + $0x138] sm:$0xff] }
 0x2c7   : > { %2232 = vmatprep.mubr.f32.mxu0 %v933_v53  ;;  %v3458_v53 = vld [vmem:[#allocation9 + $0x38] sm:$0xff] }
 0x2c8   : > { %v5264_v50 = vpack.c.bf16 %v3458_v53, %v3457_v26  ;;  %v3496_v26 = vld [vmem:[#allocation9 + $0x168] sm:$0xff] }
 0x2c9   : > { %3184 = vmatmul.mubr.f32.gmra.mrb[44].mxu1 %v859_v63 }
 0x2ca   : > { %2233 = vmatmul.mubr.f32.gmra.mrb[44].mxu0 %v859_v63  ;;  %3188 = vmatprep.mubr.f32.mxu1 %v935_v20  ;;  %v3459_v63 = vld [vmem:[#allocation9 + $0x40] sm:$0xff] }
 0x2cb   : > { %2238 = vmatprep.mubr.f32.mxu0 %v935_v20  ;;  %v5267_v20 = vpack.c.bf16 %v3460_v33, %v3459_v63  ;;  %v3476_v63 = vld [vmem:[#allocation9 + $0xc8] sm:$0xff] }
 0x2cd   : > { %3189 = vmatmul.mubr.f32.gmra.mrb[46].mxu1 %v861_v32 }
 0x2ce   : > { %2239 = vmatmul.mubr.f32.gmra.mrb[46].mxu0 %v861_v32  ;;  %4638 = vmatprep.mubr.f32.mxu1 %v5963_v44  ;;  %v3461_v32 = vld [vmem:[#allocation9 + $0x50] sm:$0xff] }
 0x2cf   : > { %2309 = vmatprep.mubr.f32.mxu0 %v6332_v3 }
 0x2d1   : > { %4639 = vmatmul.mubr.f32.vlgmr.msra.gmra.mrb[48].mxu1 %v5964_v52 }
 0x2d2   : > { %2310 = vmatmul.mubr.f32.vlgmr.msra.gmra.mrb[0].mxu0 %v5963_v44  ;;  %4641 = vmatprep.mubr.f32.mxu1 %v5965_v7  ;;  %v3462_v44 = vld [vmem:[#allocation9 + $0x58] sm:$0xff] }
 0x2d3   : > { %2315 = vmatprep.mubr.f32.mxu0 %v6332_v3  ;;  %5305 = vmatpush3.bf16.msra.mxu0 %v5302_v51 }
 0x2d4   : > { %5307 = vmatprep.subr.bf16.mxu0 %v5306_v16  ;;  %5256 = vmatpush1.bf16.msra.mxu1 %v5255_v13  ;;  %v5282_v13 = vpack.c.bf16 %v3470_v11, %v3469_v45 }
 0x2d5   : > { %4642 = vmatmul.mubr.f32.gmra.mrb[50].mxu1 %v5966_v28  ;;  %5257 = vmatprep.subr.bf16.mxu1 %v8151_v43 }
 0x2d6   : > { %2316 = vmatmul.mubr.f32.gmra.mrb[2].mxu0 %v5964_v52  ;;  %4644 = vmatprep.mubr.f32.mxu1 %v5967_v36  ;;  %v5270_v52 = vpack.c.bf16 %v3462_v44, %v3461_v32  ;;  %v3478_v32 = vld [vmem:[#allocation9 + $0xd8] sm:$0xff]  ;;  %v3479_v44 = vld [vmem:[#allocation9 + $0xe0] sm:$0xff] }
 0x2d7   : > { %2321 = vmatprep.mubr.f32.mxu0 %v6332_v3  ;;  %5309 = vmatpush3.bf16.msra.mxu0 %v5306_v16  ;;  %v3467_v16 = vld [vmem:[#allocation9 + $0x80] sm:$0xff] }
 0x2d8   : > { %5311 = vmatprep.subr.bf16.mxu0 %v5310_v1 }
 0x2d9   : > { %4645 = vmatmul.mubr.f32.gmra.mrb[52].mxu1 %v5968_v47 }
 0x2da   : > { %2322 = vmatmul.mubr.f32.gmra.mrb[4].mxu0 %v5965_v7  ;;  %4647 = vmatprep.mubr.f32.mxu1 %v5969_v48  ;;  %v3492_v7 = vld [vmem:[#allocation9 + $0x148] sm:$0xff] }
 0x2db   : > { %2327 = vmatprep.mubr.f32.mxu0 %v6332_v3  ;;  %5313 = vmatpush3.bf16.msra.mxu0 %v5310_v1  ;;  %v5318_v51 = vpack.c.bf16 %v3492_v7, %v3491_v31  ;;  %v5322_v1 = vpack.c.bf16 %v3494_v0, %v3493_v35  ;;  %v3498_v31 = vld [vmem:[#allocation9 + $0x178] sm:$0xff] }
 0x2dd   : > { %4648 = vmatmul.mubr.f32.gmra.mrb[54].mxu1 %v5970_v21 }
 0x2de   : > { %2328 = vmatmul.mubr.f32.gmra.mrb[6].mxu0 %v5966_v28  ;;  %4650 = vmatprep.mubr.f32.mxu1 %v5971_v22  ;;  %v3463_v28 = vld [vmem:[#allocation9 + $0x60] sm:$0xff] }
 0x2df   : > { %2333 = vmatprep.mubr.f32.mxu0 %v6332_v3 }
 0x2e1   : > { %4651 = vmatmul.mubr.f32.gmra.mrb[56].mxu1 %v5972_v55 }
 0x2e2   : > { %2334 = vmatmul.mubr.f32.gmra.mrb[8].mxu0 %v5967_v36  ;;  %4653 = vmatprep.mubr.f32.mxu1 %v5973_v24  ;;  %v3464_v36 = vld [vmem:[#allocation9 + $0x68] sm:$0xff] }
 0x2e3   : > { %2339 = vmatprep.mubr.f32.mxu0 %v6332_v3 }
 0x2e5   : > { %4654 = vmatmul.mubr.f32.gmra.mrb[58].mxu1 %v5974_v59 }
 0x2e6   : > { %2340 = vmatmul.mubr.f32.gmra.mrb[10].mxu0 %v5968_v47  ;;  %4656 = vmatprep.mubr.f32.mxu1 %v7154_v17  ;;  %v3453_v17 = vld [vmem:[#allocation9 + $0x10] sm:$0xff]  ;;  %v5273_v47 = vpack.c.bf16 %v3464_v36, %v3463_v28  ;;  %v3482_v28 = vld [vmem:[#allocation9 + $0xf8] sm:$0xff] }
 0x2e7   : > { %2345 = vmatprep.mubr.f32.mxu0 %v6332_v3 }
 0x2e9   : > { %4657 = vmatmul.mubr.f32.gmra.mrb[60].mxu1 %v7166_v46  ;;  %v3454_v46 = vld [vmem:[#allocation9 + $0x18] sm:$0xff] }
 0x2ea   : > { %2346 = vmatmul.mubr.f32.gmra.mrb[12].mxu0 %v5969_v48  ;;  %4659 = vmatprep.mubr.f32.mxu1 %v7178_v49  ;;  %v5258_v34 = vpack.c.bf16 %v3454_v46, %v3453_v17  ;;  %v3455_v49 = vld [vmem:[#allocation9 + $0x20] sm:$0xff] }
 0x2eb   : > { %2351 = vmatprep.mubr.f32.mxu0 %v6332_v3  ;;  %v5976_v48 = vld [vmem:[%s6622_s17 + $0x70] sm:$0xff]  ;;  %v5979_v17 = vld [vmem:[%s6622_s17 + $0x88] sm:$0xff] }
 0x2ec   : > { %5259 = vmatpush1.bf16.msra.mxu1 %v5258_v34  ;;  %v3471_v46 = vld [vmem:[#allocation9 + $0xa0] sm:$0xff]  ;;  %v3472_v34 = vld [vmem:[#allocation9 + $0xa8] sm:$0xff] }
 0x2ed   : > { %4660 = vmatmul.mubr.f32.gmra.mrb[62].mxu1 %v7190_v25  ;;  %v3456_v25 = vld [vmem:[#allocation9 + $0x28] sm:$0xff]  ;;  %5260 = vmatprep.subr.bf16.mxu1 %v8151_v43 }
 0x2ee   : > { %2352 = vmatmul.mubr.f32.gmra.mrb[14].mxu0 %v5970_v21  ;;  %4662 = vmatprep.mubr.f32.mxu1 %v7202_v18  ;;  %v5261_v18 = vpack.c.bf16 %v3456_v25, %v3455_v49  ;;  %v3465_v21 = vld [vmem:[#allocation9 + $0x70] sm:$0xff]  ;;  %v5285_v49 = vpack.c.bf16 %v3472_v34, %v3471_v46  ;;  %v5980_v25 = vld [vmem:[%s6622_s17 + $0x90] sm:$0xff] }
 0x2ef   : > { %2357 = vmatprep.mubr.f32.mxu0 %v6332_v3  ;;  %v5276_v4 = vpack.c.bf16 %v3466_v56, %v3465_v21 }
 0x2f0   : > { %5262 = vmatpush1.bf16.msra.mxu1 %v5261_v18  ;;  %v3473_v18 = vld [vmem:[#allocation9 + $0xb0] sm:$0xff] }
 0x2f1   : > { %4663 = vmatmul.mubr.f32.gmra.mrb[64].mxu1 %v7214_v10  ;;  %v5314_v10 = vpack.c.bf16 %v3490_v40, %v3489_v60  ;;  %5263 = vmatprep.subr.bf16.mxu1 %v8151_v43  ;;  %v3474_v60 = vld [vmem:[#allocation9 + $0xb8] sm:$0xff] }
 0x2f2   : > { %2358 = vmatmul.mubr.f32.gmra.mrb[16].mxu0 %v5971_v22  ;;  %4665 = vmatprep.mubr.f32.mxu1 %v7226_v38  ;;  %v5977_v22 = vld [vmem:[%s6622_s17 + $0x78] sm:$0xff]  ;;  %v5288_v40 = vpack.c.bf16 %v3474_v60, %v3473_v18 }
 0x2f3   : > { %2363 = vmatprep.mubr.f32.mxu0 %v6332_v3  ;;  %5315 = vmatprep.subr.bf16.mxu0 %v5314_v10 }
 0x2f4   : > { %5317 = vmatpush3.bf16.msra.mxu0 %v5314_v10  ;;  %5265 = vmatpush1.bf16.msra.mxu1 %v5264_v50  ;;  %v3495_v10 = vld [vmem:[#allocation9 + $0x160] sm:$0xff] }
 0x2f5   : > { %4666 = vmatmul.mubr.f32.gmra.mrb[66].mxu1 %v7240_v30  ;;  %5266 = vmatprep.subr.bf16.mxu1 %v8151_v43  ;;  %v5326_v53 = vpack.c.bf16 %v3496_v26, %v3495_v10  ;;  %v3475_v50 = vld [vmem:[#allocation9 + $0xc0] sm:$0xff] }
 0x2f6   : > { %2364 = vmatmul.mubr.f32.gmra.mrb[18].mxu0 %v5972_v55  ;;  %4668 = vmatprep.mubr.f32.mxu1 %v7252_v61  ;;  %v3468_v55 = vld [vmem:[#allocation9 + $0x88] sm:$0xff]  ;;  %v5291_v33 = vpack.c.bf16 %v3476_v63, %v3475_v50 }
 0x2f7   : > { %2369 = vmatprep.mubr.f32.mxu0 %v6332_v3  ;;  %5319 = vmatprep.subr.bf16.mxu0 %v5318_v51 }
 0x2f8   : > { %5268 = vmatpush1.bf16.msra.mxu1 %v5267_v20  ;;  %5321 = vmatpush3.bf16.msra.mxu0 %v5318_v51  ;;  %v3477_v20 = vld [vmem:[#allocation9 + $0xd0] sm:$0xff] }
 0x2f9   : > { %4669 = vmatmul.mubr.f32.gmra.mrb[68].mxu1 %v7263_v6  ;;  %5269 = vmatprep.subr.bf16.mxu1 %v8151_v43  ;;  %v3481_v51 = vld [vmem:[#allocation9 + $0xf0] sm:$0xff] }
 0x2fa   : > { %2370 = vmatmul.mubr.f32.gmra.mrb[20].mxu0 %v5973_v24  ;;  %4671 = vmatprep.mubr.f32.mxu1 %v7274_v27  ;;  %v5279_v24 = vpack.c.bf16 %v3468_v55, %v3467_v16 }
 0x2fb   : > { %2375 = vmatprep.mubr.f32.mxu0 %v6332_v3  ;;  %5323 = vmatprep.subr.bf16.mxu0 %v5322_v1 }
 0x2fc   : > { %5271 = vmatpush1.bf16.msra.mxu1 %v5270_v52  ;;  %5325 = vmatpush3.bf16.msra.mxu0 %v5322_v1  ;;  %v3480_v52 = vld [vmem:[#allocation9 + $0xe8] sm:$0xff] }
 0x2fd   : > { %4672 = vmatmul.mubr.f32.gmra.mrb[70].mxu1 %v7285_v14  ;;  %5272 = vmatprep.subr.bf16.mxu1 %v8151_v43 }
 0x2fe   : > { %2376 = vmatmul.mubr.f32.gmra.mrb[22].mxu0 %v5974_v59  ;;  %v5978_v59 = vld [vmem:[%s6622_s17 + $0x80] sm:$0xff]  ;;  %5327 = vmatprep.subr.bf16.mxu0 %v5326_v53  ;;  %s8028_s17 = scalar_lea.hbm %s8095_s7, %s4521_s27 }
 0x2ff   : > { %2381 = vmatprep.mubr.f32.mxu0 %v6332_v3 }
 0x300   : > { %5274 = vmatpush1.bf16.msra.mxu1 %v5273_v47  ;;  %5329 = vmatpush3.bf16.msra.mxu0 %v5326_v53 }
 0x301   : > { %5275 = vmatprep.subr.bf16.mxu1 %v8151_v43 }
 0x302   : > { %2382 = vmatmul.mubr.f32.gmra.mrb[24].mxu0 %v5975_v8  ;;  %v5297_v8 = vpack.c.bf16 %v3480_v52, %v3479_v44  ;;  %v1394_v52 = vlaneseq }
 0x303   : > { %2387 = vmatprep.mubr.f32.mxu0 %v6332_v3 }
 0x304   : > { %5277 = vmatpush1.bf16.msra.mxu1 %v5276_v4 }
 0x305   : > { %5278 = vmatprep.subr.bf16.mxu1 %v8151_v43 }
 0x306   : > { %2388 = vmatmul.mubr.f32.gmra.mrb[26].mxu0 %v5976_v48 }
 0x307   : > { %2393 = vmatprep.mubr.f32.mxu0 %v6332_v3 }
 0x308   : > { %5280 = vmatpush1.bf16.msra.mxu1 %v5279_v24 }
 0x309   : > { %5281 = vmatprep.subr.bf16.mxu1 %v8151_v43 }
 0x30a   : > { %2394 = vmatmul.mubr.f32.gmra.mrb[28].mxu0 %v5977_v22 }
 0x30b   : > { %2399 = vmatprep.mubr.f32.mxu0 %v6332_v3 }
 0x30c   : > { %5283 = vmatpush1.bf16.msra.mxu1 %v5282_v13 }
 0x30d   : > { %5284 = vmatprep.subr.bf16.mxu1 %v8151_v43 }
 0x30e   : > { %2400 = vmatmul.mubr.f32.gmra.mrb[30].mxu0 %v5978_v59 }
 0x30f   : > { %2405 = vmatprep.mubr.f32.mxu0 %v6332_v3 }
 0x310   : > { %5286 = vmatpush1.bf16.msra.mxu1 %v5285_v49 }
 0x311   : > { %5287 = vmatprep.subr.bf16.mxu1 %v8151_v43 }
 0x312   : > { %2406 = vmatmul.mubr.f32.gmra.mrb[32].mxu0 %v5979_v17 }
 0x313   : > { %2411 = vmatprep.mubr.f32.mxu0 %v6332_v3 }
 0x314   : > { %5289 = vmatpush1.bf16.msra.mxu1 %v5288_v40 }
 0x315   : > { %5290 = vmatprep.subr.bf16.mxu1 %v8151_v43 }
 0x316   : > { %2412 = vmatmul.mubr.f32.gmra.mrb[34].mxu0 %v5980_v25 }
 0x317   : > { %2417 = vmatprep.mubr.f32.mxu0 %v6332_v3 }
 0x318   : > { %5292 = vmatpush1.bf16.msra.mxu1 %v5291_v33 }
 0x319   : > { %5293 = vmatprep.subr.bf16.mxu1 %v8151_v43 }
 0x31a   : > { %2418 = vmatmul.mubr.f32.gmra.mrb[36].mxu0 %v7226_v38  ;;  %v5294_v38 = vpack.c.bf16 %v3478_v32, %v3477_v20 }
 0x31b   : > { %2423 = vmatprep.mubr.f32.mxu0 %v6332_v3 }
 0x31c   : > { %5295 = vmatpush1.bf16.msra.mxu1 %v5294_v38 }
 0x31d   : > { %5296 = vmatprep.subr.bf16.mxu1 %v8151_v43 }
 0x31e   : > { %2424 = vmatmul.mubr.f32.gmra.mrb[38].mxu0 %v7240_v30  ;;  %v3497_v30 = vld [vmem:[#allocation9 + $0x170] sm:$0xff] }
 0x31f   : > { %2429 = vmatprep.mubr.f32.mxu0 %v6332_v3  ;;  %v5330_v7 = vpack.c.bf16 %v3498_v31, %v3497_v30  ;;  %v1395_v31 = vshrl.u32 %v1394_v52, 7 }
 0x320   : > { %5298 = vmatpush1.bf16.msra.mxu1 %v5297_v8 }
 0x321   : > { %5331 = vmatprep.subr.bf16.mxu0 %v5330_v7  ;;  %5299 = vmatprep.subr.bf16.mxu1 %v8151_v43 }
 0x322   : > { %2430 = vmatmul.mubr.f32.gmra.mrb[40].mxu0 %v7252_v61  ;;  %v5300_v61 = vpack.c.bf16 %v3482_v28, %v3481_v51  ;;  %v1404_v28 = vsub.s32 2, %v1395_v31 }
 0x323   : > { %2435 = vmatprep.mubr.f32.mxu0 %v6332_v3  ;;  %5333 = vmatpush3.bf16.msra.mxu0 %v5330_v7 }
 0x324   : > { %5301 = vmatpush1.bf16.msra.mxu1 %v5300_v61 }
 0x326   : > { %2436 = vmatmul.mubr.f32.gmra.mrb[42].mxu0 %v7263_v6 }
 0x327   : > { %2441 = vmatprep.mubr.f32.mxu0 %v6332_v3 }
 0x32a   : > { %2442 = vmatmul.mubr.f32.gmra.mrb[44].mxu0 %v7274_v27 }
 0x32b   : > { %2447 = vmatprep.mubr.f32.mxu0 %v6332_v3 }
 0x32e   : > { %2448 = vmatmul.mubr.f32.gmra.mrb[46].mxu0 %v7285_v14 }
 0x344   : > { %v3075_v36 = vpop.f32.mrb[0].mxu1 }
 0x345   : > { %v3077_v6 = vpop.f32.mrb[1].mxu1 }
 0x346   : > { %v1392_v6 = vld [vmem:[#allocation7] sm:$0x7] }
 0x348   : > { %v3080_v47 = vpop.f32.mrb[2].mxu1 }
 0x349   : > { %v3082_v48 = vpop.f32.mrb[3].mxu1 }
 0x34c   : > { %v7477_v21 = vpop.f32.mrb[4].mxu1 }
 0x34d   : > { %v3087_v56 = vpop.f32.mrb[5].mxu1 }
 0x34e   : > { %v1396_v56 = vsub.s32 0, %v1395_v31 }
 0x350   : > { %v3090_v4 = vpop.f32.mrb[6].mxu1 }
 0x351   : > { %v3092_v22 = vpop.f32.mrb[7].mxu1 }
 0x352   : > { %v1400_v22 = vsub.s32 1, %v1395_v31 }
 0x354   : > { %v7479_v16 = vpop.f32.mrb[8].mxu1 }
 0x355   : > { %v3097_v55 = vpop.f32.mrb[9].mxu1 }
 0x356   : > { %v7517_v55 = vrot.slane %v1392_v6, %v1404_v28 }
 0x358   : > { %v7481_v43 = vpop.f32.mrb[10].mxu1  ;;  %v5384_v52 = vadd.f32 %v7477_v21, %v7517_v55  ;;  %v5386_v21 = vadd.f32 %v7479_v16, %v7517_v55 }
 0x359   : > { %v3102_v27 = vpop.f32.mrb[11].mxu1 }
 0x35c   : > { %v7483_v24 = vpop.f32.mrb[12].mxu1 }
 0x35d   : > { %v3107_v3 = vpop.f32.mrb[13].mxu1  ;;  %v5388_v16 = vadd.f32 %v7483_v24, %v7517_v55 }
 0x360   : > { %v7485_v59 = vpop.f32.mrb[14].mxu1 }
 0x361   : > { %v3112_v14 = vpop.f32.mrb[15].mxu1 }
 0x362   : > { %v7521_v14 = vrot.slane %v1392_v6, %v1396_v56 }
 0x364   : > { %v7487_v35 = vpop.f32.mrb[16].mxu1 }
 0x365   : > { %v3117_v0 = vpop.f32.mrb[17].mxu1  ;;  %v5390_v24 = vadd.f32 %v7487_v35, %v7517_v55 }
 0x366   : > { %v7523_v0 = vrot.slane %v1392_v6, %v1400_v22 }
 0x368   : > { %v7489_v1 = vpop.f32.mrb[18].mxu1 }
 0x369   : > { %v3122_v45 = vpop.f32.mrb[19].mxu1 }
 0x36a   : > { %v5383_v45 = vadd.f32 %v3080_v47, %v7517_v55 }
 0x36c   : > { %v7491_v11 = vpop.f32.mrb[20].mxu1 }
 0x36d   : > { %v3127_v13 = vpop.f32.mrb[21].mxu1  ;;  %v5392_v35 = vadd.f32 %v7491_v11, %v7517_v55 }
 0x36e   : > { %v5382_v13 = vadd.f32 %v3075_v36, %v7517_v55 }
 0x370   : > { %v7493_v17 = vpop.f32.mrb[22].mxu1 }
 0x371   : > { %v3132_v46 = vpop.f32.mrb[23].mxu1 }
 0x374   : > { %v7495_v34 = vpop.f32.mrb[24].mxu1 }
 0x375   : > { %v3137_v49 = vpop.f32.mrb[25].mxu1  ;;  %v5394_v11 = vadd.f32 %v7495_v34, %v7517_v55 }
 0x378   : > { %v7497_v25 = vpop.f32.mrb[26].mxu1 }
 0x379   : > { %v3142_v18 = vpop.f32.mrb[27].mxu1 }
 0x37c   : > { %v7499_v60 = vpop.f32.mrb[28].mxu1 }
 0x37d   : > { %v3147_v40 = vpop.f32.mrb[29].mxu1  ;;  %v5396_v34 = vadd.f32 %v7499_v60, %v7517_v55 }
 0x380   : > { %v7501_v10 = vpop.f32.mrb[30].mxu1 }
 0x381   : > { %v3152_v26 = vpop.f32.mrb[31].mxu1 }
 0x384   : > { %v7503_v53 = vpop.f32.mrb[32].mxu1 }
 0x385   : > { %v3157_v50 = vpop.f32.mrb[33].mxu1  ;;  %v5398_v60 = vadd.f32 %v7503_v53, %v7517_v55 }
 0x388   : > { %v7505_v63 = vpop.f32.mrb[34].mxu1 }
 0x389   : > { %v3162_v33 = vpop.f32.mrb[35].mxu1 }
 0x38c   : > { %v7507_v20 = vpop.f32.mrb[36].mxu1 }
 0x38d   : > { %v3167_v32 = vpop.f32.mrb[37].mxu1  ;;  %v5400_v53 = vadd.f32 %v7507_v20, %v7517_v55 }
 0x390   : > { %v7509_v38 = vpop.f32.mrb[38].mxu1 }
 0x391   : > { %v3172_v44 = vpop.f32.mrb[39].mxu1 }
 0x392   : > { %v5385_v44 = vadd.f32 %v3090_v4, %v7517_v55  ;;  %v5387_v4 = vadd.f32 %v7481_v43, %v7517_v55  ;;  %v5389_v43 = vadd.f32 %v7485_v59, %v7517_v55  ;;  %v5391_v59 = vadd.f32 %v7489_v1, %v7517_v55 }
 0x393   : > { %v5393_v1 = vadd.f32 %v7493_v17, %v7517_v55  ;;  %v5395_v17 = vadd.f32 %v7497_v25, %v7517_v55  ;;  %v5397_v25 = vadd.f32 %v7501_v10, %v7517_v55  ;;  %v5399_v10 = vadd.f32 %v7505_v63, %v7517_v55 }
 0x394   : > { %v7511_v8 = vpop.f32.mrb[40].mxu1  ;;  %v5401_v63 = vadd.f32 %v7509_v38, %v7517_v55 }
 0x395   : > { %v3177_v30 = vpop.f32.mrb[41].mxu1  ;;  %v5402_v20 = vadd.f32 %v7511_v8, %v7517_v55 }
 0x398   : > { %v7513_v7 = vpop.f32.mrb[42].mxu1 }
 0x399   : > { %v3182_v51 = vpop.f32.mrb[43].mxu1  ;;  %v5403_v38 = vadd.f32 %v7513_v7, %v7517_v55 }
 0x39c   : > { %v7515_v61 = vpop.f32.mrb[44].mxu1 }
 0x39d   : > { %v3187_v48 = vpop.f32.mrb[45].mxu1  ;;  %v5404_v8 = vadd.f32 %v7515_v61, %v7517_v55 }
 0x3a0   : > { %v7519_v27 = vpop.f32.mrb[46].mxu1 }
 0x3a1   : > { %v3192_v3 = vpop.f32.mrb[47].mxu1  ;;  %v5405_v7 = vadd.f32 %v7519_v27, %v7517_v55 }
 0x3a4   : > { %v4640_v46 = vpop.f32.mrb[48].mxu1 }
 0x3a5   : > { %v2311_v49 = vpop.f32.mrb[0].mxu0  ;;  %v3266_v18 = vadd.f32 %v5383_v45, %v4640_v46  ;;  %v3260_v26 = vpop.f32.mrb[49].mxu1 }
 0x3a6   : > { %v5334_v40 = vadd.f32 %v2311_v49, %v7521_v14  ;;  %v2313_v50 = vpop.f32.mrb[1].mxu0  ;;  %v3261_v33 = vadd.f32 %v5382_v13, %v3260_v26 }
 0x3a7   : > { %v5335_v32 = vadd.f32 %v2313_v50, %v7523_v0  ;;  %v3384_v36 = vmax.f32 %v3266_v18, 0.0 }
 0x3a8   : > { %v3381_v30 = vmax.f32 %v3261_v33, 0.0  ;;  %v4643_v47 = vpop.f32.mrb[50].mxu1  ;;  %v3379_v28 = vmax.f32 %v5334_v40, 0.0 }
 0x3a9   : > { %v3380_v31 = vmax.f32 %v5335_v32, 0.0  ;;  %v2317_v51 = vpop.f32.mrb[2].mxu0  ;;  %v3276_v6 = vadd.f32 %v5385_v44, %v4643_v47  ;;  %v3270_v56 = vpop.f32.mrb[51].mxu1 }
 0x3aa   : > { %v5336_v48 = vadd.f32 %v2317_v51, %v7521_v14  ;;  %v2319_v22 = vpop.f32.mrb[3].mxu0  ;;  %v3271_v3 = vadd.f32 %v5384_v52, %v3270_v56  ;;  %4706 = vmatprep.mubr.f32.mxu0 %v3381_v30 }
 0x3ab   : > { %v5337_v45 = vadd.f32 %v2319_v22, %v7523_v0  ;;  %3570 = vmatprep.mubr.f32.mxu1 %v3380_v31  ;;  %4707 = vmatmul.mubr.f32.vlgmr.msra.gmra.mrb[48].mxu0 %v3384_v36  ;;  %v3390_v40 = vmax.f32 %v3276_v6, 0.0 }
 0x3ac   : > { %3571 = vmatmul.mubr.f32.vlgmr.msra.gmra.mrb[72].mxu1 %v3379_v28  ;;  %v3387_v13 = vmax.f32 %v3271_v3, 0.0  ;;  %v4646_v49 = vpop.f32.mrb[52].mxu1  ;;  %v3382_v26 = vmax.f32 %v5336_v48, 0.0 }
 0x3ad   : > { %v3383_v46 = vmax.f32 %v5337_v45, 0.0  ;;  %v2323_v18 = vpop.f32.mrb[4].mxu0  ;;  %v3286_v50 = vadd.f32 %v5387_v4, %v4646_v49  ;;  %v3280_v32 = vpop.f32.mrb[53].mxu1 }
 0x3ae   : > { %v5338_v33 = vadd.f32 %v2323_v18, %v7521_v14  ;;  %v2325_v44 = vpop.f32.mrb[5].mxu0  ;;  %v3281_v52 = vadd.f32 %v5386_v21, %v3280_v32  ;;  %4709 = vmatprep.mubr.f32.mxu0 %v3387_v13 }
 0x3af   : > { %v5339_v30 = vadd.f32 %v2325_v44, %v7523_v0  ;;  %3575 = vmatprep.mubr.f32.mxu1 %v3383_v46  ;;  %4710 = vmatmul.mubr.f32.gmra.mrb[50].mxu0 %v3390_v40  ;;  %v3396_v28 = vmax.f32 %v3286_v50, 0.0 }
 0x3b0   : > { %3576 = vmatmul.mubr.f32.gmra.mrb[74].mxu1 %v3382_v26  ;;  %v3393_v31 = vmax.f32 %v3281_v52, 0.0  ;;  %v4649_v51 = vpop.f32.mrb[54].mxu1  ;;  %v3385_v6 = vmax.f32 %v5338_v33, 0.0 }
 0x3b1   : > { %v3386_v47 = vmax.f32 %v5339_v30, 0.0  ;;  %v2329_v36 = vpop.f32.mrb[6].mxu0  ;;  %v3296_v48 = vadd.f32 %v5389_v43, %v4649_v51  ;;  %v3290_v22 = vpop.f32.mrb[55].mxu1 }
 0x3b2   : > { %v5340_v56 = vadd.f32 %v2329_v36, %v7521_v14  ;;  %v2331_v3 = vpop.f32.mrb[7].mxu0  ;;  %v3291_v45 = vadd.f32 %v5388_v16, %v3290_v22  ;;  %4712 = vmatprep.mubr.f32.mxu0 %v3393_v31 }
 0x3b3   : > { %v5341_v4 = vadd.f32 %v2331_v3, %v7523_v0  ;;  %3580 = vmatprep.mubr.f32.mxu1 %v3386_v47  ;;  %4713 = vmatmul.mubr.f32.gmra.mrb[52].mxu0 %v3396_v28  ;;  %v3402_v18 = vmax.f32 %v3296_v48, 0.0 }
 0x3b4   : > { %3581 = vmatmul.mubr.f32.gmra.mrb[76].mxu1 %v3385_v6  ;;  %v3399_v21 = vmax.f32 %v3291_v45, 0.0  ;;  %v4652_v46 = vpop.f32.mrb[56].mxu1  ;;  %v3388_v40 = vmax.f32 %v5340_v56, 0.0 }
 0x3b5   : > { %v3389_v13 = vmax.f32 %v5341_v4, 0.0  ;;  %v2335_v49 = vpop.f32.mrb[8].mxu0  ;;  %v3306_v26 = vadd.f32 %v5391_v59, %v4652_v46  ;;  %v3300_v33 = vpop.f32.mrb[57].mxu1 }
 0x3b6   : > { %v5342_v50 = vadd.f32 %v2335_v49, %v7521_v14  ;;  %v2337_v32 = vpop.f32.mrb[9].mxu0  ;;  %v3301_v44 = vadd.f32 %v5390_v24, %v3300_v33  ;;  %4715 = vmatprep.mubr.f32.mxu0 %v3399_v21 }
 0x3b7   : > { %v5343_v52 = vadd.f32 %v2337_v32, %v7523_v0  ;;  %3585 = vmatprep.mubr.f32.mxu1 %v3389_v13  ;;  %4716 = vmatmul.mubr.f32.gmra.mrb[54].mxu0 %v3402_v18  ;;  %v3408_v47 = vmax.f32 %v3306_v26, 0.0 }
 0x3b8   : > { %3586 = vmatmul.mubr.f32.gmra.mrb[78].mxu1 %v3388_v40  ;;  %v3405_v30 = vmax.f32 %v3301_v44, 0.0  ;;  %v4655_v16 = vpop.f32.mrb[58].mxu1  ;;  %v3391_v51 = vmax.f32 %v5342_v50, 0.0 }
 0x3b9   : > { %v3392_v43 = vmax.f32 %v5343_v52, 0.0  ;;  %v2341_v31 = vpop.f32.mrb[10].mxu0  ;;  %v3316_v36 = vadd.f32 %v5393_v1, %v4655_v16  ;;  %v3310_v6 = vpop.f32.mrb[59].mxu1 }
 0x3ba   : > { %v5344_v28 = vadd.f32 %v2341_v31, %v7521_v14  ;;  %v2343_v48 = vpop.f32.mrb[11].mxu0  ;;  %v3311_v56 = vadd.f32 %v5392_v35, %v3310_v6  ;;  %4718 = vmatprep.mubr.f32.mxu0 %v3405_v30 }
 0x3bb   : > { %v5345_v22 = vadd.f32 %v2343_v48, %v7523_v0  ;;  %3590 = vmatprep.mubr.f32.mxu1 %v3392_v43  ;;  %4719 = vmatmul.mubr.f32.gmra.mrb[56].mxu0 %v3408_v47  ;;  %v3414_v24 = vmax.f32 %v3316_v36, 0.0 }
 0x3bc   : > { %3591 = vmatmul.mubr.f32.gmra.mrb[80].mxu1 %v3391_v51  ;;  %v3411_v3 = vmax.f32 %v3311_v56, 0.0  ;;  %v4658_v4 = vpop.f32.mrb[60].mxu1  ;;  %v3394_v21 = vmax.f32 %v5344_v28, 0.0 }
 0x3bd   : > { %v3395_v45 = vmax.f32 %v5345_v22, 0.0  ;;  %v2347_v59 = vpop.f32.mrb[12].mxu0  ;;  %v3326_v13 = vadd.f32 %v5395_v17, %v4658_v4  ;;  %v3320_v49 = vpop.f32.mrb[61].mxu1 }
 0x3be   : > { %v5346_v46 = vadd.f32 %v2347_v59, %v7521_v14  ;;  %v2349_v18 = vpop.f32.mrb[13].mxu0  ;;  %v3321_v40 = vadd.f32 %v5394_v11, %v3320_v49  ;;  %4721 = vmatprep.mubr.f32.mxu0 %v3411_v3 }
 0x3bf   : > { %v5347_v26 = vadd.f32 %v2349_v18, %v7523_v0  ;;  %3595 = vmatprep.mubr.f32.mxu1 %v3395_v45  ;;  %4722 = vmatmul.mubr.f32.gmra.mrb[58].mxu0 %v3414_v24  ;;  %v3420_v52 = vmax.f32 %v3326_v13, 0.0 }
 0x3c0   : > { %3596 = vmatmul.mubr.f32.gmra.mrb[82].mxu1 %v3394_v21  ;;  %v3417_v50 = vmax.f32 %v3321_v40, 0.0  ;;  %v4661_v32 = vpop.f32.mrb[62].mxu1  ;;  %v3397_v1 = vmax.f32 %v5346_v46, 0.0 }
 0x3c1   : > { %v3398_v33 = vmax.f32 %v5347_v26, 0.0  ;;  %v2353_v44 = vpop.f32.mrb[14].mxu0  ;;  %v3336_v35 = vadd.f32 %v5397_v25, %v4661_v32  ;;  %v3330_v43 = vpop.f32.mrb[63].mxu1 }
 0x3c2   : > { %v5348_v30 = vadd.f32 %v2353_v44, %v7521_v14  ;;  %v2355_v16 = vpop.f32.mrb[15].mxu0  ;;  %v3331_v31 = vadd.f32 %v5396_v34, %v3330_v43  ;;  %4724 = vmatprep.mubr.f32.mxu0 %v3417_v50 }
 0x3c3   : > { %v5349_v47 = vadd.f32 %v2355_v16, %v7523_v0  ;;  %3600 = vmatprep.mubr.f32.mxu1 %v3398_v33  ;;  %4725 = vmatmul.mubr.f32.gmra.mrb[60].mxu0 %v3420_v52  ;;  %v3426_v48 = vmax.f32 %v3336_v35, 0.0 }
 0x3c4   : > { %3601 = vmatmul.mubr.f32.gmra.mrb[84].mxu1 %v3397_v1  ;;  %v3423_v51 = vmax.f32 %v3331_v31, 0.0  ;;  %v4664_v28 = vpop.f32.mrb[64].mxu1  ;;  %v3400_v56 = vmax.f32 %v5348_v30, 0.0 }
 0x3c5   : > { %v3401_v36 = vmax.f32 %v5349_v47, 0.0  ;;  %v2359_v6 = vpop.f32.mrb[16].mxu0  ;;  %v3346_v22 = vadd.f32 %v5399_v10, %v4664_v28  ;;  %v3340_v11 = vpop.f32.mrb[65].mxu1 }
 0x3c6   : > { %v5350_v17 = vadd.f32 %v2359_v6, %v7521_v14  ;;  %v2361_v3 = vpop.f32.mrb[17].mxu0  ;;  %v3341_v45 = vadd.f32 %v5398_v60, %v3340_v11  ;;  %4727 = vmatprep.mubr.f32.mxu0 %v3423_v51 }
 0x3c7   : > { %v5351_v4 = vadd.f32 %v2361_v3, %v7523_v0  ;;  %3605 = vmatprep.mubr.f32.mxu1 %v3401_v36  ;;  %4728 = vmatmul.mubr.f32.gmra.mrb[62].mxu0 %v3426_v48  ;;  %v3432_v46 = vmax.f32 %v3346_v22, 0.0 }
 0x3c8   : > { %3606 = vmatmul.mubr.f32.gmra.mrb[86].mxu1 %v3400_v56  ;;  %v3429_v59 = vmax.f32 %v3341_v45, 0.0  ;;  %v4667_v21 = vpop.f32.mrb[66].mxu1  ;;  %v3403_v49 = vmax.f32 %v5350_v17, 0.0 }
 0x3c9   : > { %v3404_v24 = vmax.f32 %v5351_v4, 0.0  ;;  %v2365_v13 = vpop.f32.mrb[18].mxu0  ;;  %v3356_v18 = vadd.f32 %v5401_v63, %v4667_v21  ;;  %v3350_v26 = vpop.f32.mrb[67].mxu1 }
 0x3ca   : > { %v5352_v40 = vadd.f32 %v2365_v13, %v7521_v14  ;;  %v2367_v25 = vpop.f32.mrb[19].mxu0  ;;  %v3351_v34 = vadd.f32 %v5400_v53, %v3350_v26  ;;  %4730 = vmatprep.mubr.f32.mxu0 %v3429_v59 }
 0x3cb   : > { %v5353_v50 = vadd.f32 %v2367_v25, %v7523_v0  ;;  %3610 = vmatprep.mubr.f32.mxu1 %v3404_v24  ;;  %4731 = vmatmul.mubr.f32.gmra.mrb[64].mxu0 %v3432_v46  ;;  %v3438_v1 = vmax.f32 %v3356_v18, 0.0 }
 0x3cc   : > { %3611 = vmatmul.mubr.f32.gmra.mrb[88].mxu1 %v3403_v49  ;;  %v3435_v33 = vmax.f32 %v3351_v34, 0.0  ;;  %v4670_v44 = vpop.f32.mrb[68].mxu1  ;;  %v3406_v35 = vmax.f32 %v5352_v40, 0.0 }
 0x3cd   : > { %v3407_v32 = vmax.f32 %v5353_v50, 0.0  ;;  %v2371_v52 = vpop.f32.mrb[20].mxu0  ;;  %v3366_v30 = vadd.f32 %v5403_v38, %v4670_v44  ;;  %v3360_v16 = vpop.f32.mrb[69].mxu1 }
 0x3ce   : > { %v5354_v43 = vadd.f32 %v2371_v52, %v7521_v14  ;;  %v2373_v31 = vpop.f32.mrb[21].mxu0  ;;  %v3361_v47 = vadd.f32 %v5402_v20, %v3360_v16  ;;  %4733 = vmatprep.mubr.f32.mxu0 %v3435_v33 }
 0x3cf   : > { %v5355_v10 = vadd.f32 %v2373_v31, %v7523_v0  ;;  %3615 = vmatprep.mubr.f32.mxu1 %v3407_v32  ;;  %4734 = vmatmul.mubr.f32.gmra.mrb[66].mxu0 %v3438_v1  ;;  %v3444_v6 = vmax.f32 %v3366_v30, 0.0 }
 0x3d0   : > { %3616 = vmatmul.mubr.f32.gmra.mrb[90].mxu1 %v3406_v35  ;;  %v3441_v60 = vmax.f32 %v3361_v47, 0.0  ;;  %v4673_v36 = vpop.f32.mrb[70].mxu1  ;;  %v3409_v48 = vmax.f32 %v5354_v43, 0.0 }
 0x3d1   : > { %v3410_v51 = vmax.f32 %v5355_v10, 0.0  ;;  %v2377_v28 = vpop.f32.mrb[22].mxu0  ;;  %v3376_v56 = vadd.f32 %v5405_v7, %v4673_v36  ;;  %v3370_v17 = vpop.f32.mrb[71].mxu1 }
 0x3d2   : > { %v5356_v22 = vadd.f32 %v2377_v28, %v7521_v14  ;;  %v2379_v11 = vpop.f32.mrb[23].mxu0  ;;  %v3371_v3 = vadd.f32 %v5404_v8, %v3370_v17  ;;  %4736 = vmatprep.mubr.f32.mxu0 %v3441_v60 }
 0x3d3   : > { %v5357_v45 = vadd.f32 %v2379_v11, %v7523_v0  ;;  %3620 = vmatprep.mubr.f32.mxu1 %v3410_v51  ;;  %4737 = vmatmul.mubr.f32.gmra.mrb[68].mxu0 %v3444_v6  ;;  %v3450_v4 = vmax.f32 %v3376_v56, 0.0 }
 0x3d4   : > { %3621 = vmatmul.mubr.f32.gmra.mrb[92].mxu1 %v3409_v48  ;;  %v3447_v27 = vmax.f32 %v3371_v3, 0.0  ;;  %v3412_v63 = vmax.f32 %v5356_v22, 0.0 }
 0x3d5   : > { %v3413_v61 = vmax.f32 %v5357_v45, 0.0  ;;  %v2383_v55 = vpop.f32.mrb[24].mxu0 }
 0x3d6   : > { %v5358_v53 = vadd.f32 %v2383_v55, %v7521_v14  ;;  %v2385_v59 = vpop.f32.mrb[25].mxu0  ;;  %4739 = vmatprep.mubr.f32.mxu0 %v3447_v27 }
 0x3d7   : > { %v5359_v24 = vadd.f32 %v2385_v59, %v7523_v0  ;;  %3625 = vmatprep.mubr.f32.mxu1 %v3413_v61  ;;  %4740 = vmatmul.mubr.f32.gmra.mrb[70].mxu0 %v3450_v4 }
 0x3d8   : > { %3626 = vmatmul.mubr.f32.gmra.mrb[94].mxu1 %v3412_v63  ;;  %v3415_v46 = vmax.f32 %v5358_v53, 0.0 }
 0x3d9   : > { %v3416_v21 = vmax.f32 %v5359_v24, 0.0  ;;  %v2389_v13 = vpop.f32.mrb[26].mxu0 }
 0x3da   : > { %v5360_v49 = vadd.f32 %v2389_v13, %v7521_v14  ;;  %v2391_v18 = vpop.f32.mrb[27].mxu0 }
 0x3db   : > { %v5361_v40 = vadd.f32 %v2391_v18, %v7523_v0  ;;  %3630 = vmatprep.mubr.f32.mxu1 %v3416_v21 }
 0x3dc   : > { %3631 = vmatmul.mubr.f32.gmra.mrb[96].mxu1 %v3415_v46  ;;  %v3418_v34 = vmax.f32 %v5360_v49, 0.0 }
 0x3dd   : > { %v3419_v26 = vmax.f32 %v5361_v40, 0.0  ;;  %v2395_v25 = vpop.f32.mrb[28].mxu0 }
 0x3de   : > { %v5362_v50 = vadd.f32 %v2395_v25, %v7521_v14  ;;  %v2397_v38 = vpop.f32.mrb[29].mxu0 }
 0x3df   : > { %v5363_v20 = vadd.f32 %v2397_v38, %v7523_v0  ;;  %3635 = vmatprep.mubr.f32.mxu1 %v3419_v26 }
 0x3e0   : > { %3636 = vmatmul.mubr.f32.gmra.mrb[98].mxu1 %v3418_v34  ;;  %v3421_v44 = vmax.f32 %v5362_v50, 0.0 }
 0x3e1   : > { %v3422_v33 = vmax.f32 %v5363_v20, 0.0  ;;  %v2401_v32 = vpop.f32.mrb[30].mxu0 }
 0x3e2   : > { %v5364_v52 = vadd.f32 %v2401_v32, %v7521_v14  ;;  %v2403_v1 = vpop.f32.mrb[31].mxu0 }
 0x3e3   : > { %v5365_v35 = vadd.f32 %v2403_v1, %v7523_v0  ;;  %3640 = vmatprep.mubr.f32.mxu1 %v3422_v33 }
 0x3e4   : > { %3641 = vmatmul.mubr.f32.gmra.mrb[100].mxu1 %v3421_v44  ;;  %v3424_v16 = vmax.f32 %v5364_v52, 0.0 }
 0x3e5   : > { %v3425_v30 = vmax.f32 %v5365_v35, 0.0  ;;  %v2407_v43 = vpop.f32.mrb[32].mxu0 }
 0x3e6   : > { %v5366_v31 = vadd.f32 %v2407_v43, %v7521_v14  ;;  %v2409_v47 = vpop.f32.mrb[33].mxu0 }
 0x3e7   : > { %v5367_v10 = vadd.f32 %v2409_v47, %v7523_v0  ;;  %3645 = vmatprep.mubr.f32.mxu1 %v3425_v30  ;;  %v7618_v47 = vld [vmem:[#allocation10] ss:$0 sm:$0xff] }
 0x3e8   : > { %3646 = vmatmul.mubr.f32.gmra.mrb[102].mxu1 %v3424_v16  ;;  %v3427_v60 = vmax.f32 %v5366_v31, 0.0 }
 0x3e9   : > { %v3428_v7 = vmax.f32 %v5367_v10, 0.0  ;;  %v2413_v8 = vpop.f32.mrb[34].mxu0 }
 0x3ea   : > { %v5368_v51 = vadd.f32 %v2413_v8, %v7521_v14  ;;  %v2415_v36 = vpop.f32.mrb[35].mxu0 }
 0x3eb   : > { %v5369_v28 = vadd.f32 %v2415_v36, %v7523_v0  ;;  %3650 = vmatprep.mubr.f32.mxu1 %v3428_v7 }
 0x3ec   : > { %3651 = vmatmul.mubr.f32.gmra.mrb[104].mxu1 %v3427_v60  ;;  %v3430_v56 = vmax.f32 %v5368_v51, 0.0 }
 0x3ed   : > { %v3431_v6 = vmax.f32 %v5369_v28, 0.0  ;;  %v2419_v48 = vpop.f32.mrb[36].mxu0 }
 0x3ee   : > { %v5370_v22 = vadd.f32 %v2419_v48, %v7521_v14  ;;  %v2421_v17 = vpop.f32.mrb[37].mxu0 }
 0x3ef   : > { %v5371_v11 = vadd.f32 %v2421_v17, %v7523_v0  ;;  %3655 = vmatprep.mubr.f32.mxu1 %v3431_v6 }
 0x3f0   : > { %3656 = vmatmul.mubr.f32.gmra.mrb[106].mxu1 %v3430_v56  ;;  %v3433_v27 = vmax.f32 %v5370_v22, 0.0 }
 0x3f1   : > { %v3434_v3 = vmax.f32 %v5371_v11, 0.0  ;;  %v2425_v45 = vpop.f32.mrb[38].mxu0 }
 0x3f2   : > { %v5372_v61 = vadd.f32 %v2425_v45, %v7521_v14  ;;  %v2427_v55 = vpop.f32.mrb[39].mxu0 }
 0x3f3   : > { %v5373_v4 = vadd.f32 %v2427_v55, %v7523_v0  ;;  %3660 = vmatprep.mubr.f32.mxu1 %v3434_v3 }
 0x3f4   : > { %3661 = vmatmul.mubr.f32.gmra.mrb[108].mxu1 %v3433_v27  ;;  %v3436_v59 = vmax.f32 %v5372_v61, 0.0 }
 0x3f5   : > { %v3437_v63 = vmax.f32 %v5373_v4, 0.0  ;;  %v2431_v53 = vpop.f32.mrb[40].mxu0 }
 0x3f6   : > { %v5374_v24 = vadd.f32 %v2431_v53, %v7521_v14  ;;  %v2433_v21 = vpop.f32.mrb[41].mxu0 }
 0x3f7   : > { %v5375_v13 = vadd.f32 %v2433_v21, %v7523_v0  ;;  %3665 = vmatprep.mubr.f32.mxu1 %v3437_v63 }
 0x3f8   : > { %3666 = vmatmul.mubr.f32.gmra.mrb[110].mxu1 %v3436_v59  ;;  %v3439_v18 = vmax.f32 %v5374_v24, 0.0 }
 0x3f9   : > { %v3440_v46 = vmax.f32 %v5375_v13, 0.0  ;;  %v2437_v49 = vpop.f32.mrb[42].mxu0 }
 0x3fa   : > { %v5376_v40 = vadd.f32 %v2437_v49, %v7521_v14  ;;  %v2439_v26 = vpop.f32.mrb[43].mxu0 }
 0x3fb   : > { %v5377_v25 = vadd.f32 %v2439_v26, %v7523_v0  ;;  %3670 = vmatprep.mubr.f32.mxu1 %v3440_v46 }
 0x3fc   : > { %3671 = vmatmul.mubr.f32.gmra.mrb[112].mxu1 %v3439_v18  ;;  %v3442_v38 = vmax.f32 %v5376_v40, 0.0 }
 0x3fd   : > { %v3443_v34 = vmax.f32 %v5377_v25, 0.0  ;;  %v2443_v50 = vpop.f32.mrb[44].mxu0 }
 0x3fe   : > { %v5378_v20 = vadd.f32 %v2443_v50, %v7521_v14  ;;  %v2445_v33 = vpop.f32.mrb[45].mxu0 }
 0x3ff   : > { %v5379_v32 = vadd.f32 %v2445_v33, %v7523_v0  ;;  %3675 = vmatprep.mubr.f32.mxu1 %v3443_v34 }
 0x400   : > { %3676 = vmatmul.mubr.f32.gmra.mrb[114].mxu1 %v3442_v38  ;;  %v3445_v1 = vmax.f32 %v5378_v20, 0.0 }
 0x401   : > { %v3446_v44 = vmax.f32 %v5379_v32, 0.0  ;;  %v2449_v52 = vpop.f32.mrb[46].mxu0 }
 0x402   : > { %v5380_v35 = vadd.f32 %v2449_v52, %v7521_v14  ;;  %v2451_v30 = vpop.f32.mrb[47].mxu0 }
 0x403   : > { %v5381_v43 = vadd.f32 %v2451_v30, %v7523_v0  ;;  %3680 = vmatprep.mubr.f32.mxu1 %v3446_v44 }
 0x404   : > { %3681 = vmatmul.mubr.f32.gmra.mrb[116].mxu1 %v3445_v1  ;;  %v3448_v31 = vmax.f32 %v5380_v35, 0.0 }
 0x405   : > { %v3449_v16 = vmax.f32 %v5381_v43, 0.0 }
 0x407   : > { %3685 = vmatprep.mubr.f32.mxu1 %v3449_v16 }
 0x408   : > { %3686 = vmatmul.mubr.f32.gmra.mrb[118].mxu1 %v3448_v31 }
 0x47e   : > { %v4708_v10 = vpop.f32.mrb[48].mxu0 }
 0x47f   : > { %v3572_v7 = vpop.f32.mrb[72].mxu1  ;;  %v3757_v60 = vpop.f32.mrb[49].mxu0 }
 0x480   : > { %v3573_v8 = vadd.f32 %v7618_v47, %v3572_v7  ;;  %v3574_v51 = vpop.f32.mrb[73].mxu1 }
 0x482   : > { %v3758_v36 = vadd.f32 %v3757_v60, %v3573_v8  ;;  %v4711_v28 = vpop.f32.mrb[50].mxu0 }
 0x483   : > { %v3577_v14 = vpop.f32.mrb[74].mxu1  ;;  %v3767_v48 = vpop.f32.mrb[51].mxu0 }
 0x484   : > { %v7622_v6 = vadd.f32 %v3758_v36, %v7031_v39  ;;  %v3578_v0 = vadd.f32 %v7618_v47, %v3577_v14  ;;  %v3579_v56 = vpop.f32.mrb[75].mxu1 }
 0x486   : > { %v3763_v22 = vadd.f32 %v4708_v10, %v3578_v0  ;;  %3900 = vadd.xlane.f32.xlu0 %v7622_v6  ;;  %v4714_v17 = vpop.f32.mrb[52].mxu0  ;;  %v3972_v61 = vmul.f32 %v7622_v6, %v7622_v6 }
 0x487   : > { %v3582_v11 = vpop.f32.mrb[76].mxu1  ;;  %v3777_v45 = vpop.f32.mrb[53].mxu0 }
 0x488   : > { %v3583_v3 = vadd.f32 %v7618_v47, %v3582_v11  ;;  %v3584_v27 = vpop.f32.mrb[77].mxu1  ;;  %v7630_v55 = vadd.f32 %v3763_v22, %v7042_v23 }
 0x48a   : > { %v3768_v39 = vadd.f32 %v3767_v48, %v3583_v3  ;;  %3996 = vadd.xlane.f32.xlu0 %v3972_v61  ;;  %v3973_v4 = vmul.f32 %v7630_v55, %v7630_v55  ;;  %v4717_v63 = vpop.f32.mrb[54].mxu0 }
 0x48b   : > { %v3587_v53 = vpop.f32.mrb[78].mxu1  ;;  %v3787_v24 = vpop.f32.mrb[55].mxu0 }
 0x48c   : > { %v3588_v59 = vadd.f32 %v7618_v47, %v3587_v53  ;;  %v3589_v21 = vpop.f32.mrb[79].mxu1  ;;  %3998 = vadd.xlane.f32.xlu1 %v3973_v4  ;;  %v7636_v13 = vadd.f32 %v3768_v39, %v7053_v62 }
 0x48e   : > { %v3773_v46 = vadd.f32 %v4711_v28, %v3588_v59  ;;  %3902 = vadd.xlane.f32.xlu0 %v7630_v55  ;;  %v4720_v23 = vpop.f32.mrb[56].mxu0  ;;  %v3974_v25 = vmul.f32 %v7636_v13, %v7636_v13 }
 0x48f   : > { %v3592_v49 = vpop.f32.mrb[80].mxu1  ;;  %v3797_v40 = vpop.f32.mrb[57].mxu0 }
 0x490   : > { %v3593_v18 = vadd.f32 %v7618_v47, %v3592_v49  ;;  %v3594_v26 = vpop.f32.mrb[81].mxu1  ;;  %3904 = vadd.xlane.f32.xlu1 %v7636_v13  ;;  %v7644_v50 = vadd.f32 %v3773_v46, %v7065_v2 }
 0x492   : > { %v3778_v34 = vadd.f32 %v3777_v45, %v3593_v18  ;;  %4000 = vadd.xlane.f32.xlu0 %v3974_v25  ;;  %v7646_v62 = vpop.f32.mrb[58].mxu0  ;;  %v3975_v1 = vmul.f32 %v7644_v50, %v7644_v50 }
 0x493   : > { %v3597_v38 = vpop.f32.mrb[82].mxu1  ;;  %v3807_v33 = vpop.f32.mrb[59].mxu0 }
 0x494   : > { %v3598_v20 = vadd.f32 %v7618_v47, %v3597_v38  ;;  %v3599_v32 = vpop.f32.mrb[83].mxu1  ;;  %3906 = vadd.xlane.f32.xlu1 %v7644_v50  ;;  %v7651_v44 = vadd.f32 %v3778_v34, %v7077_v37 }
 0x496   : > { %v3783_v52 = vadd.f32 %v4714_v17, %v3598_v20  ;;  %3908 = vadd.xlane.f32.xlu0 %v7651_v44  ;;  %v7656_v2 = vpop.f32.mrb[60].mxu0  ;;  %v3976_v31 = vmul.f32 %v7651_v44, %v7651_v44 }
 0x497   : > { %v3602_v35 = vpop.f32.mrb[84].mxu1  ;;  %v3817_v43 = vpop.f32.mrb[61].mxu0 }
 0x498   : > { %v3603_v30 = vadd.f32 %v7618_v47, %v3602_v35  ;;  %v3604_v16 = vpop.f32.mrb[85].mxu1  ;;  %4002 = vadd.xlane.f32.xlu1 %v3975_v1  ;;  %v7662_v37 = vadd.f32 %v3783_v52, %v7089_v15 }
 0x49a   : > { %v3788_v10 = vadd.f32 %v3787_v24, %v3603_v30  ;;  %4004 = vadd.xlane.f32.xlu0 %v3976_v31  ;;  %v7664_v7 = vpop.f32.mrb[62].mxu0  ;;  %v3977_v15 = vmul.f32 %v7662_v37, %v7662_v37 }
 0x49b   : > { %v3607_v8 = vpop.f32.mrb[86].mxu1  ;;  %v7667_v51 = vpop.f32.mrb[63].mxu0 }
 0x49c   : > { %v3608_v60 = vadd.f32 %v7618_v47, %v3607_v8  ;;  %v3609_v36 = vpop.f32.mrb[87].mxu1  ;;  %3910 = vadd.xlane.f32.xlu1 %v7662_v37  ;;  %v7671_v28 = vadd.f32 %v3788_v10, %v7101_v42 }
 0x49e   : > { %v3793_v14 = vadd.f32 %v4717_v63, %v3608_v60  ;;  %3912 = vadd.xlane.f32.xlu0 %v7671_v28  ;;  %v7676_v0 = vpop.f32.mrb[64].mxu0  ;;  %v3978_v11 = vmul.f32 %v7671_v28, %v7671_v28 }
 0x49f   : > { %v3612_v48 = vpop.f32.mrb[88].mxu1  ;;  %v7679_v22 = vpop.f32.mrb[65].mxu0 }
 0x4a0   : > { %v3613_v56 = vadd.f32 %v7618_v47, %v3612_v48  ;;  %v3614_v17 = vpop.f32.mrb[89].mxu1  ;;  %4006 = vadd.xlane.f32.xlu1 %v3977_v15  ;;  %v7684_v3 = vadd.f32 %v3793_v14, %v7113_v19 }
 0x4a2   : > { %v3798_v42 = vadd.f32 %v3797_v40, %v3613_v56  ;;  %4008 = vadd.xlane.f32.xlu0 %v3978_v11  ;;  %v7686_v45 = vpop.f32.mrb[66].mxu0  ;;  %v3979_v19 = vmul.f32 %v7684_v3, %v7684_v3 }
 0x4a3   : > { %v3617_v27 = vpop.f32.mrb[90].mxu1  ;;  %v7689_v39 = vpop.f32.mrb[67].mxu0 }
 0x4a4   : > { %v3618_v61 = vadd.f32 %v7618_v47, %v3617_v27  ;;  %v3619_v4 = vpop.f32.mrb[91].mxu1  ;;  %3914 = vadd.xlane.f32.xlu1 %v7684_v3  ;;  %v7693_v63 = vadd.f32 %v3798_v42, %v7125_v41 }
 0x4a6   : > { %v3803_v53 = vadd.f32 %v4720_v23, %v3618_v61  ;;  %3916 = vadd.xlane.f32.xlu0 %v7693_v63  ;;  %v7698_v59 = vpop.f32.mrb[68].mxu0  ;;  %v3980_v18 = vmul.f32 %v7693_v63, %v7693_v63 }
 0x4a7   : > { %v3622_v24 = vpop.f32.mrb[92].mxu1  ;;  %v7701_v46 = vpop.f32.mrb[69].mxu0 }
 0x4a8   : > { %v3623_v21 = vadd.f32 %v7618_v47, %v3622_v24  ;;  %v3624_v49 = vpop.f32.mrb[93].mxu1  ;;  %4010 = vadd.xlane.f32.xlu1 %v3979_v19  ;;  %v7706_v23 = vadd.f32 %v3803_v53, %v7137_v58  ;;  %v8152_v24 = vld [vmem:[#allocation35_spill] sm:$0xff] }
 0x4aa   : > { %v3808_v41 = vadd.f32 %v3807_v33, %v3623_v21  ;;  %4012 = vadd.xlane.f32.xlu0 %v3980_v18  ;;  %v7708_v40 = vpop.f32.mrb[70].mxu0  ;;  %v3981_v58 = vmul.f32 %v7706_v23, %v7706_v23 }
 0x4ab   : > { %v3627_v26 = vpop.f32.mrb[94].mxu1  ;;  %v7711_v34 = vpop.f32.mrb[71].mxu0 }
 0x4ac   : > { %v3628_v25 = vadd.f32 %v7618_v47, %v3627_v26  ;;  %v3629_v38 = vpop.f32.mrb[95].mxu1  ;;  %3918 = vadd.xlane.f32.xlu1 %v7706_v23  ;;  %v7715_v20 = vadd.f32 %v3808_v41, %v7149_v12 }
 0x4ad   : > { %v8153_v38 = vld [vmem:[#allocation36_spill] sm:$0xff] }
 0x4ae   : > { %v3813_v32 = vadd.f32 %v7646_v62, %v3628_v25  ;;  %3920 = vadd.xlane.f32.xlu0 %v7715_v20  ;;  %v3982_v35 = vmul.f32 %v7715_v20, %v7715_v20 }
 0x4af   : > { %v3632_v33 = vpop.f32.mrb[96].mxu1 }
 0x4b0   : > { %v3633_v52 = vadd.f32 %v7618_v47, %v3632_v33  ;;  %v3634_v1 = vpop.f32.mrb[97].mxu1  ;;  %4014 = vadd.xlane.f32.xlu1 %v3981_v58  ;;  %v7725_v12 = vadd.f32 %v3813_v32, %v7161_v5 }
 0x4b2   : > { %v3818_v30 = vadd.f32 %v3817_v43, %v3633_v52  ;;  %4016 = vadd.xlane.f32.xlu0 %v3982_v35  ;;  %v3983_v43 = vmul.f32 %v7725_v12, %v7725_v12  ;;  %v8154_v52 = vld [vmem:[#allocation37_spill] sm:$0xff] }
 0x4b3   : > { %v3637_v16 = vpop.f32.mrb[98].mxu1 }
 0x4b4   : > { %v3638_v62 = vadd.f32 %v7618_v47, %v3637_v16  ;;  %v3639_v31 = vpop.f32.mrb[99].mxu1  ;;  %3922 = vadd.xlane.f32.xlu1 %v7725_v12  ;;  %v7730_v10 = vadd.f32 %v3818_v30, %v7173_v57 }
 0x4b6   : > { %v3823_v8 = vadd.f32 %v7656_v2, %v3638_v62  ;;  %3924 = vadd.xlane.f32.xlu0 %v7730_v10  ;;  %v3984_v14 = vmul.f32 %v7730_v10, %v7730_v10 }
 0x4b7   : > { %v3642_v60 = vpop.f32.mrb[100].mxu1 }
 0x4b8   : > { %v3643_v5 = vadd.f32 %v7618_v47, %v3642_v60  ;;  %v3644_v36 = vpop.f32.mrb[101].mxu1  ;;  %4018 = vadd.xlane.f32.xlu1 %v3983_v43  ;;  %v7741_v57 = vadd.f32 %v3823_v8, %v7185_v54  ;;  %v8155_v43 = vld [vmem:[#allocation38_spill] sm:$0xff] }
 0x4ba   : > { %v3828_v15 = vadd.f32 %v7667_v51, %v3643_v5  ;;  %4020 = vadd.xlane.f32.xlu0 %v3984_v14  ;;  %v3985_v51 = vmul.f32 %v7741_v57, %v7741_v57  ;;  %v8156_v14 = vld [vmem:[#allocation39_spill] sm:$0xff] }
 0x4bb   : > { %v3647_v2 = vpop.f32.mrb[102].mxu1 }
 0x4bc   : > { %v3648_v48 = vadd.f32 %v7618_v47, %v3647_v2  ;;  %v3649_v56 = vpop.f32.mrb[103].mxu1  ;;  %3926 = vadd.xlane.f32.xlu1 %v7741_v57  ;;  %v7746_v17 = vadd.f32 %v3828_v15, %v7197_v29 }
 0x4be   : > { %v3833_v11 = vadd.f32 %v7664_v7, %v3648_v48  ;;  %3928 = vadd.xlane.f32.xlu0 %v7746_v17  ;;  %v3986_v61 = vmul.f32 %v7746_v17, %v7746_v17 }
 0x4bf   : > { %v3652_v42 = vpop.f32.mrb[104].mxu1 }
 0x4c0   : > { %v3653_v54 = vadd.f32 %v7618_v47, %v3652_v42  ;;  %v3654_v27 = vpop.f32.mrb[105].mxu1  ;;  %4022 = vadd.xlane.f32.xlu1 %v3985_v51  ;;  %v7757_v29 = vadd.f32 %v3833_v11, %v7209_v9 }
 0x4c2   : > { %v3838_v4 = vadd.f32 %v7679_v22, %v3653_v54  ;;  %4024 = vadd.xlane.f32.xlu0 %v3986_v61  ;;  %v3987_v22 = vmul.f32 %v7757_v29, %v7757_v29  ;;  %v8157_v54 = vld [vmem:[#allocation40_spill] sm:$0xff] }
 0x4c3   : > { %v3657_v7 = vpop.f32.mrb[106].mxu1 }
 0x4c4   : > { %v3658_v53 = vadd.f32 %v7618_v47, %v3657_v7  ;;  %v3659_v19 = vpop.f32.mrb[107].mxu1  ;;  %3930 = vadd.xlane.f32.xlu1 %v7757_v29  ;;  %v7762_v21 = vadd.f32 %v3838_v4, %v8152_v24  ;;  %v8158_v7 = vld [vmem:[#allocation41_spill] sm:$0xff] }
 0x4c6   : > { %v3843_v49 = vadd.f32 %v7676_v0, %v3658_v53  ;;  %3932 = vadd.xlane.f32.xlu0 %v7762_v21  ;;  %v3988_v26 = vmul.f32 %v7762_v21, %v7762_v21 }
 0x4c7   : > { %v3662_v18 = vpop.f32.mrb[108].mxu1 }
 0x4c8   : > { %v3663_v9 = vadd.f32 %v7618_v47, %v3662_v18  ;;  %v3664_v41 = vpop.f32.mrb[109].mxu1  ;;  %4026 = vadd.xlane.f32.xlu1 %v3987_v22  ;;  %v7773_v32 = vadd.f32 %v3843_v49, %v8153_v38  ;;  %v8159_v49 = vld [vmem:[#allocation42_spill] sm:$0xff] }
 0x4ca   : > { %v3848_v25 = vadd.f32 %v7689_v39, %v3663_v9  ;;  %4028 = vadd.xlane.f32.xlu0 %v3988_v26  ;;  %v3989_v39 = vmul.f32 %v7773_v32, %v7773_v32 }
 0x4cb   : > { %v3667_v0 = vpop.f32.mrb[110].mxu1 }
 0x4cc   : > { %v3668_v58 = vadd.f32 %v7618_v47, %v3667_v0  ;;  %v3669_v33 = vpop.f32.mrb[111].mxu1  ;;  %3934 = vadd.xlane.f32.xlu1 %v7773_v32  ;;  %v7778_v1 = vadd.f32 %v3848_v25, %v8154_v52 }
 0x4ce   : > { %v3853_v35 = vadd.f32 %v7686_v45, %v3668_v58  ;;  %3936 = vadd.xlane.f32.xlu0 %v7778_v1  ;;  %v3990_v31 = vmul.f32 %v7778_v1, %v7778_v1 }
 0x4cf   : > { %v3672_v30 = vpop.f32.mrb[112].mxu1 }
 0x4d0   : > { %v3673_v16 = vadd.f32 %v7618_v47, %v3672_v30  ;;  %v3674_v62 = vpop.f32.mrb[113].mxu1  ;;  %4030 = vadd.xlane.f32.xlu1 %v3989_v39  ;;  %v7789_v60 = vadd.f32 %v3853_v35, %v8155_v43 }
 0x4d2   : > { %v3858_v8 = vadd.f32 %v7701_v46, %v3673_v16  ;;  %4032 = vadd.xlane.f32.xlu0 %v3990_v31  ;;  %v3991_v46 = vmul.f32 %v7789_v60, %v7789_v60 }
 0x4d3   : > { %v3677_v45 = vpop.f32.mrb[114].mxu1 }
 0x4d4   : > { %v3678_v5 = vadd.f32 %v7618_v47, %v3677_v45  ;;  %v3679_v36 = vpop.f32.mrb[115].mxu1  ;;  %3938 = vadd.xlane.f32.xlu1 %v7789_v60  ;;  %v7794_v15 = vadd.f32 %v3858_v8, %v8156_v14 }
 0x4d6   : > { %v3863_v2 = vadd.f32 %v7698_v59, %v3678_v5  ;;  %3940 = vadd.xlane.f32.xlu0 %v7794_v15  ;;  %v3992_v51 = vmul.f32 %v7794_v15, %v7794_v15 }
 0x4d7   : > { %v3682_v48 = vpop.f32.mrb[116].mxu1 }
 0x4d8   : > { %v3683_v56 = vadd.f32 %v7618_v47, %v3682_v48  ;;  %v3684_v11 = vpop.f32.mrb[117].mxu1  ;;  %4034 = vadd.xlane.f32.xlu1 %v3991_v46  ;;  %v7805_v27 = vadd.f32 %v3863_v2, %v8157_v54 }
 0x4da   : > { %v3868_v42 = vadd.f32 %v7711_v34, %v3683_v56  ;;  %4036 = vadd.xlane.f32.xlu0 %v3992_v51  ;;  %v3993_v34 = vmul.f32 %v7805_v27, %v7805_v27 }
 0x4db   : > { %v3687_v59 = vpop.f32.mrb[118].mxu1 }
 0x4dc   : > { %v3688_v61 = vadd.f32 %v7618_v47, %v3687_v59  ;;  %v3689_v4 = vpop.f32.mrb[119].mxu1  ;;  %3942 = vadd.xlane.f32.xlu1 %v7805_v27  ;;  %v7810_v53 = vadd.f32 %v3868_v42, %v8158_v7 }
 0x4de   : > { %v3873_v19 = vadd.f32 %v7708_v40, %v3688_v61  ;;  %3944 = vadd.xlane.f32.xlu0 %v7810_v53  ;;  %v3994_v24 = vmul.f32 %v7810_v53, %v7810_v53 }
 0x4e0   : > { %4038 = vadd.xlane.f32.xlu1 %v3993_v34  ;;  %v7819_v47 = vadd.f32 %v3873_v19, %v8159_v49  ;;  %v7833_v49 = vld [vmem:[#allocation12] ss:$0 sm:$0xff] }
 0x4e2   : > { %4040 = vadd.xlane.f32.xlu0 %v3994_v24  ;;  %v3995_v22 = vmul.f32 %v7819_v47, %v7819_v47 }
 0x4e4   : > { %3946 = vadd.xlane.f32.xlu1 %v7819_v47 }
 0x4e8   : > { %4042 = vadd.xlane.f32.xlu1 %v3995_v22 }
 0x513   : > { %v3901_v40 = vpop.xlane.xlu0 %3900 }
 0x514   : > { %v3948_v18 = vmul.f32 0.0078125, %v3901_v40 }
 0x516   : > { %v4068_v41 = vmul.f32 %v3948_v18, %v3948_v18  ;;  %v4140_v19 = vsub.f32 %v7622_v6, %v3948_v18 }
 0x517   : > { %v3997_v9 = vpop.xlane.xlu0 %3996 }
 0x518   : > { %v4044_v26 = vmul.f32 0.0078125, %v3997_v9 }
 0x519   : > { %v3999_v25 = vpop.xlane.xlu1 %3998 }
 0x51a   : > { %v4092_v38 = vsub.f32 %v4044_v26, %v4068_v41  ;;  %v4045_v39 = vmul.f32 0.0078125, %v3999_v25  ;;  %v7837_v25 = vld [vmem:[#allocation13] ss:$0 sm:$0xff] }
 0x51b   : > { %v3903_v0 = vpop.xlane.xlu0 %3902 }
 0x51c   : > { %v4116_v58 = vmax.f32 %v4092_v38, 0.0  ;;  %v3949_v33 = vmul.f32 0.0078125, %v3903_v0 }
 0x51d   : > { %v3905_v52 = vpop.xlane.xlu1 %3904 }
 0x51e   : > { %v4164_v35 = vadd.f32 1e-05, %v4116_v58  ;;  %v4069_v30 = vmul.f32 %v3949_v33, %v3949_v33  ;;  %v3950_v16 = vmul.f32 0.0078125, %v3905_v52 }
 0x51f   : > { %v4001_v62 = vpop.xlane.xlu0 %4000 }
 0x520   : > { %5890 = vrsqrt.f32 %v4164_v35  ;;  %v4093_v31 = vsub.f32 %v4045_v39, %v4069_v30  ;;  %v4070_v8 = vmul.f32 %v3950_v16, %v3950_v16  ;;  %v4046_v43 = vmul.f32 0.0078125, %v4001_v62 }
 0x521   : > { %v3907_v45 = vpop.xlane.xlu1 %3906  ;;  %v4141_v62 = vsub.f32 %v7630_v55, %v3949_v33 }
 0x522   : > { %v4117_v5 = vmax.f32 %v4093_v31, 0.0  ;;  %v7824_v36 = vmul.f32 0.0078125, %v3907_v45  ;;  %v4094_v14 = vsub.f32 %v4046_v43, %v4070_v8 }
 0x523   : > { %v3909_v2 = vpop.xlane.xlu0 %3908 }
 0x524   : > { %v4165_v46 = vadd.f32 1e-05, %v4117_v5  ;;  %v7826_v48 = vmul.f32 0.0078125, %v3909_v2  ;;  %v4118_v56 = vmax.f32 %v4094_v14, 0.0  ;;  %v4071_v51 = vmul.f32 %v7824_v36, %v7824_v36 }
 0x525   : > { %v4003_v11 = vpop.xlane.xlu1 %4002 }
 0x526   : > { %5892 = vrsqrt.f32 %v4165_v46  ;;  %v4047_v42 = vmul.f32 0.0078125, %v4003_v11  ;;  %v4166_v54 = vadd.f32 1e-05, %v4118_v56  ;;  %v4072_v61 = vmul.f32 %v7826_v48, %v7826_v48 }
 0x527   : > { %v4005_v59 = vpop.xlane.xlu0 %4004  ;;  %v4142_v46 = vsub.f32 %v7636_v13, %v3950_v16 }
 0x528   : > { %v4095_v4 = vsub.f32 %v4047_v42, %v4071_v51  ;;  %v4048_v7 = vmul.f32 0.0078125, %v4005_v59  ;;  %5894 = vrsqrt.f32 %v4166_v54 }
 0x529   : > { %v3911_v34 = vpop.xlane.xlu1 %3910 }
 0x52a   : > { %v5891_v24 = vpop.eup %5890  ;;  %v4119_v22 = vmax.f32 %v4095_v4, 0.0  ;;  %v4096_v40 = vsub.f32 %v4048_v7, %v4072_v61  ;;  %v7835_v9 = vmul.f32 0.0078125, %v3911_v34 }
 0x52b   : > { %v4212_v41 = vmul.f32 %v5891_v24, %v4140_v19  ;;  %v3913_v26 = vpop.xlane.xlu0 %3912 }
 0x52c   : > { %v4167_v38 = vadd.f32 1e-05, %v4119_v22  ;;  %v4120_v0 = vmax.f32 %v4096_v40, 0.0  ;;  %v7840_v52 = vmul.f32 0.0078125, %v3913_v26  ;;  %v4073_v35 = vmul.f32 %v7835_v9, %v7835_v9 }
 0x52d   : > { %v4243_v58 = vmul.f32 %v7833_v49, %v4212_v41  ;;  %v4007_v6 = vpop.xlane.xlu1 %4006  ;;  %v4143_v22 = vsub.f32 %v7644_v50, %v7824_v36 }
 0x52e   : > { %5896 = vrsqrt.f32 %v4167_v38  ;;  %v4168_v18 = vadd.f32 1e-05, %v4120_v0  ;;  %v4049_v39 = vmul.f32 0.0078125, %v4007_v6  ;;  %v4074_v43 = vmul.f32 %v7840_v52, %v7840_v52 }
 0x52f   : > { %v4274_v30 = vadd.f32 %v7837_v25, %v4243_v58  ;;  %v4009_v31 = vpop.xlane.xlu0 %4008  ;;  %v4144_v6 = vsub.f32 %v7651_v44, %v7826_v48 }
 0x530   : > { %v5893_v8 = vpop.eup %5892  ;;  %5898 = vrsqrt.f32 %v4168_v18  ;;  %v4097_v45 = vsub.f32 %v4049_v39, %v4073_v35  ;;  %v4050_v5 = vmul.f32 0.0078125, %v4009_v31 }
 0x531   : > { %4298 = vst [vmem:[%s6688_s3] sm:$0xff] %v4274_v30  ;;  %v4213_v14 = vmul.f32 %v5893_v8, %v4141_v62  ;;  %v3915_v2 = vpop.xlane.xlu1 %3914 }
 0x532   : > { %v4121_v56 = vmax.f32 %v4097_v45, 0.0  ;;  %v4098_v11 = vsub.f32 %v4050_v5, %v4074_v43  ;;  %v7850_v51 = vmul.f32 0.0078125, %v3915_v2  ;;  %v5895_v42 = vpop.eup %5894 }
 0x533   : > { %v4244_v55 = vmul.f32 %v7833_v49, %v4213_v14  ;;  %v3917_v33 = vpop.xlane.xlu0 %3916  ;;  %v4214_v54 = vmul.f32 %v5895_v42, %v4142_v46  ;;  %v4145_v42 = vsub.f32 %v7662_v37, %v7835_v9 }
 0x534   : > { %v4169_v59 = vadd.f32 1e-05, %v4121_v56  ;;  %v4122_v61 = vmax.f32 %v4098_v11, 0.0  ;;  %v4075_v7 = vmul.f32 %v7850_v51, %v7850_v51  ;;  %v7856_v19 = vmul.f32 0.0078125, %v3917_v33 }
 0x535   : > { %v4275_v4 = vadd.f32 %v7837_v25, %v4244_v55  ;;  %v4011_v13 = vpop.xlane.xlu1 %4010  ;;  %v4245_v16 = vmul.f32 %v7833_v49, %v4214_v54 }
 0x536   : > { %5900 = vrsqrt.f32 %v4169_v59  ;;  %v4170_v34 = vadd.f32 1e-05, %v4122_v61  ;;  %v4051_v24 = vmul.f32 0.0078125, %v4011_v13  ;;  %v4076_v40 = vmul.f32 %v7856_v19, %v7856_v19 }
 0x537   : > { %4299 = vst [vmem:[%s6688_s3 + $0x8] sm:$0xff] %v4275_v4  ;;  %v4013_v41 = vpop.xlane.xlu0 %4012  ;;  %v4276_v38 = vadd.f32 %v7837_v25, %v4245_v16  ;;  %v4146_v4 = vsub.f32 %v7671_v28, %v7840_v52 }
 0x538   : > { %v5897_v26 = vpop.eup %5896  ;;  %5902 = vrsqrt.f32 %v4170_v34  ;;  %v4099_v0 = vsub.f32 %v4051_v24, %v4075_v7  ;;  %v4052_v58 = vmul.f32 0.0078125, %v4013_v41 }
 0x539   : > { %v4215_v18 = vmul.f32 %v5897_v26, %v4143_v22  ;;  %v3919_v35 = vpop.xlane.xlu1 %3918  ;;  %4300 = vst [vmem:[%s6688_s3 + $0x10] sm:$0xff] %v4276_v38 }
 0x53a   : > { %v5899_v39 = vpop.eup %5898  ;;  %v4123_v30 = vmax.f32 %v4099_v0, 0.0  ;;  %v4100_v50 = vsub.f32 %v4052_v58, %v4076_v40  ;;  %v7868_v36 = vmul.f32 0.0078125, %v3919_v35 }
 0x53b   : > { %v4246_v62 = vmul.f32 %v7833_v49, %v4215_v18  ;;  %v4216_v31 = vmul.f32 %v5899_v39, %v4144_v6  ;;  %v3921_v8 = vpop.xlane.xlu0 %3920  ;;  %v4147_v39 = vsub.f32 %v7684_v3, %v7850_v51 }
 0x53c   : > { %v4171_v43 = vadd.f32 1e-05, %v4123_v30  ;;  %v4124_v45 = vmax.f32 %v4100_v50, 0.0  ;;  %v7873_v44 = vmul.f32 0.0078125, %v3921_v8  ;;  %v4077_v46 = vmul.f32 %v7868_v36, %v7868_v36 }
 0x53d   : > { %v4277_v5 = vadd.f32 %v7837_v25, %v4246_v62  ;;  %v4247_v14 = vmul.f32 %v7833_v49, %v4216_v31  ;;  %v4015_v48 = vpop.xlane.xlu1 %4014 }
 0x53e   : > { %5904 = vrsqrt.f32 %v4171_v43  ;;  %v4172_v2 = vadd.f32 1e-05, %v4124_v45  ;;  %v4053_v56 = vmul.f32 0.0078125, %v4015_v48  ;;  %v4078_v54 = vmul.f32 %v7873_v44, %v7873_v44 }
 0x53f   : > { %4301 = vst [vmem:[%s6688_s3 + $0x18] sm:$0xff] %v4277_v5  ;;  %v4278_v11 = vadd.f32 %v7837_v25, %v4247_v14  ;;  %v4017_v55 = vpop.xlane.xlu0 %4016  ;;  %v4148_v43 = vsub.f32 %v7693_v63, %v7856_v19 }
 0x540   : > { %v5901_v33 = vpop.eup %5900  ;;  %5906 = vrsqrt.f32 %v4172_v2  ;;  %v4101_v59 = vsub.f32 %v4053_v56, %v4077_v46  ;;  %v4054_v61 = vmul.f32 0.0078125, %v4017_v55 }
 0x541   : > { %4302 = vst [vmem:[%s6688_s3 + $0x20] sm:$0xff] %v4278_v11  ;;  %v4217_v7 = vmul.f32 %v5901_v33, %v4145_v42  ;;  %v3923_v13 = vpop.xlane.xlu1 %3922 }
 0x542   : > { %v5903_v16 = vpop.eup %5902  ;;  %v4125_v34 = vmax.f32 %v4101_v59, 0.0  ;;  %v4102_v24 = vsub.f32 %v4054_v61, %v4078_v54  ;;  %v7886_v22 = vmul.f32 0.0078125, %v3923_v13 }
 0x543   : > { %v4248_v37 = vmul.f32 %v7833_v49, %v4217_v7  ;;  %v4218_v9 = vmul.f32 %v5903_v16, %v4146_v4  ;;  %v3925_v40 = vpop.xlane.xlu0 %3924  ;;  %v4149_v7 = vsub.f32 %v7706_v23, %v7868_v36 }
 0x544   : > { %v4173_v41 = vadd.f32 1e-05, %v4125_v34  ;;  %v4126_v26 = vmax.f32 %v4102_v24, 0.0  ;;  %v7891_v28 = vmul.f32 0.0078125, %v3925_v40  ;;  %v4079_v6 = vmul.f32 %v7886_v22, %v7886_v22 }
 0x545   : > { %v4279_v38 = vadd.f32 %v7837_v25, %v4248_v37  ;;  %v4249_v0 = vmul.f32 %v7833_v49, %v4218_v9  ;;  %v4019_v52 = vpop.xlane.xlu1 %4018  ;;  %v4150_v9 = vsub.f32 %v7715_v20, %v7873_v44 }
 0x546   : > { %5908 = vrsqrt.f32 %v4173_v41  ;;  %v4174_v58 = vadd.f32 1e-05, %v4126_v26  ;;  %v4055_v18 = vmul.f32 0.0078125, %v4019_v52  ;;  %v4080_v62 = vmul.f32 %v7891_v28, %v7891_v28 }
 0x547   : > { %4303 = vst [vmem:[%s6688_s3 + $0x28] sm:$0xff] %v4279_v38  ;;  %v4280_v35 = vadd.f32 %v7837_v25, %v4249_v0  ;;  %v4021_v30 = vpop.xlane.xlu0 %4020 }
 0x548   : > { %v5905_v50 = vpop.eup %5904  ;;  %5910 = vrsqrt.f32 %v4174_v58  ;;  %v4103_v31 = vsub.f32 %v4055_v18, %v4079_v6  ;;  %v4056_v8 = vmul.f32 0.0078125, %v4021_v30 }
 0x549   : > { %4304 = vst [vmem:[%s6688_s3 + $0x30] sm:$0xff] %v4280_v35  ;;  %v4219_v45 = vmul.f32 %v5905_v50, %v4147_v39  ;;  %v3927_v5 = vpop.xlane.xlu1 %3926 }
 0x54a   : > { %v5907_v14 = vpop.eup %5906  ;;  %v4127_v48 = vmax.f32 %v4103_v31, 0.0  ;;  %v4104_v2 = vsub.f32 %v4056_v8, %v4080_v62  ;;  %v7904_v46 = vmul.f32 0.0078125, %v3927_v5  ;;  %v4151_v8 = vsub.f32 %v7725_v12, %v7886_v22 }
 0x54b   : > { %v4250_v3 = vmul.f32 %v7833_v49, %v4219_v45  ;;  %v4220_v51 = vmul.f32 %v5907_v14, %v4148_v43  ;;  %v3929_v56 = vpop.xlane.xlu0 %3928 }
 0x54c   : > { %v4175_v11 = vadd.f32 1e-05, %v4127_v48  ;;  %v4128_v42 = vmax.f32 %v4104_v2, 0.0  ;;  %v7909_v63 = vmul.f32 0.0078125, %v3929_v56  ;;  %v4081_v59 = vmul.f32 %v7904_v46, %v7904_v46 }
 0x54d   : > { %v4281_v55 = vadd.f32 %v7837_v25, %v4250_v3  ;;  %v4251_v33 = vmul.f32 %v7833_v49, %v4220_v51  ;;  %v4023_v19 = vpop.xlane.xlu1 %4022  ;;  %v4152_v2 = vsub.f32 %v7730_v10, %v7891_v28 }
 0x54e   : > { %5912 = vrsqrt.f32 %v4175_v11  ;;  %v4176_v54 = vadd.f32 1e-05, %v4128_v42  ;;  %v4057_v61 = vmul.f32 0.0078125, %v4023_v19  ;;  %v4082_v34 = vmul.f32 %v7909_v63, %v7909_v63 }
 0x54f   : > { %4305 = vst [vmem:[%s6688_s3 + $0x38] sm:$0xff] %v4281_v55  ;;  %v4282_v4 = vadd.f32 %v7837_v25, %v4251_v33  ;;  %v4025_v13 = vpop.xlane.xlu0 %4024 }
 0x550   : > { %v5909_v16 = vpop.eup %5908  ;;  %5914 = vrsqrt.f32 %v4176_v54  ;;  %v4105_v24 = vsub.f32 %v4057_v61, %v4081_v59  ;;  %v4058_v37 = vmul.f32 0.0078125, %v4025_v13 }
 0x551   : > { %4306 = vst [vmem:[%s6688_s3 + $0x40] sm:$0xff] %v4282_v4  ;;  %v4221_v40 = vmul.f32 %v5909_v16, %v4149_v7  ;;  %v3931_v41 = vpop.xlane.xlu1 %3930 }
 0x552   : > { %v5911_v26 = vpop.eup %5910  ;;  %v4129_v38 = vmax.f32 %v4105_v24, 0.0  ;;  %v4106_v0 = vsub.f32 %v4058_v37, %v4082_v34  ;;  %v7922_v52 = vmul.f32 0.0078125, %v3931_v41  ;;  %v4153_v34 = vsub.f32 %v7741_v57, %v7904_v46 }
 0x553   : > { %v4252_v23 = vmul.f32 %v7833_v49, %v4221_v40  ;;  %v4222_v36 = vmul.f32 %v5911_v26, %v4150_v9  ;;  %v3933_v58 = vpop.xlane.xlu0 %3932  ;;  %v4154_v26 = vsub.f32 %v7746_v17, %v7909_v63 }
 0x554   : > { %v4177_v6 = vadd.f32 1e-05, %v4129_v38  ;;  %v4130_v18 = vmax.f32 %v4106_v0, 0.0  ;;  %v7927_v20 = vmul.f32 0.0078125, %v3933_v58  ;;  %v4083_v50 = vmul.f32 %v7922_v52, %v7922_v52 }
 0x555   : > { %v4283_v35 = vadd.f32 %v7837_v25, %v4252_v23  ;;  %v4253_v39 = vmul.f32 %v7833_v49, %v4222_v36  ;;  %v4027_v44 = vpop.xlane.xlu1 %4026 }
 0x556   : > { %5916 = vrsqrt.f32 %v4177_v6  ;;  %v4178_v30 = vadd.f32 1e-05, %v4130_v18  ;;  %v4059_v62 = vmul.f32 0.0078125, %v4027_v44  ;;  %v4084_v5 = vmul.f32 %v7927_v20, %v7927_v20 }
 0x557   : > { %4307 = vst [vmem:[%s6688_s3 + $0x48] sm:$0xff] %v4283_v35  ;;  %v4284_v31 = vadd.f32 %v7837_v25, %v4253_v39  ;;  %v4029_v43 = vpop.xlane.xlu0 %4028 }
 0x558   : > { %v5913_v45 = vpop.eup %5912  ;;  %5918 = vrsqrt.f32 %v4178_v30  ;;  %v4107_v14 = vsub.f32 %v4059_v62, %v4083_v50  ;;  %v4060_v48 = vmul.f32 0.0078125, %v4029_v43  ;;  %v4155_v43 = vsub.f32 %v7757_v29, %v7922_v52 }
 0x559   : > { %4308 = vst [vmem:[%s6688_s3 + $0x50] sm:$0xff] %v4284_v31  ;;  %v4223_v3 = vmul.f32 %v5913_v45, %v4151_v8  ;;  %v3935_v51 = vpop.xlane.xlu1 %3934 }
 0x55a   : > { %v5915_v56 = vpop.eup %5914  ;;  %v4131_v11 = vmax.f32 %v4107_v14, 0.0  ;;  %v4108_v42 = vsub.f32 %v4060_v48, %v4084_v5  ;;  %v7940_v55 = vmul.f32 0.0078125, %v3935_v51 }
 0x55b   : > { %v4254_v12 = vmul.f32 %v7833_v49, %v4223_v3  ;;  %v4224_v22 = vmul.f32 %v5915_v56, %v4152_v2  ;;  %v3937_v33 = vpop.xlane.xlu0 %3936  ;;  %v4156_v3 = vsub.f32 %v7762_v21, %v7927_v20 }
 0x55c   : > { %v4179_v19 = vadd.f32 1e-05, %v4131_v11  ;;  %v4132_v54 = vmax.f32 %v4108_v42, 0.0  ;;  %v7945_v10 = vmul.f32 0.0078125, %v3937_v33  ;;  %v4085_v7 = vmul.f32 %v7940_v55, %v7940_v55 }
 0x55d   : > { %v4285_v59 = vadd.f32 %v7837_v25, %v4254_v12  ;;  %v4255_v61 = vmul.f32 %v7833_v49, %v4224_v22  ;;  %v4031_v28 = vpop.xlane.xlu1 %4030 }
 0x55e   : > { %5920 = vrsqrt.f32 %v4179_v19  ;;  %v4180_v4 = vadd.f32 1e-05, %v4132_v54  ;;  %v4061_v13 = vmul.f32 0.0078125, %v4031_v28  ;;  %v4086_v9 = vmul.f32 %v7945_v10, %v7945_v10 }
 0x55f   : > { %4309 = vst [vmem:[%s6688_s3 + $0x58] sm:$0xff] %v4285_v59  ;;  %v4286_v16 = vadd.f32 %v7837_v25, %v4255_v61  ;;  %v4033_v24 = vpop.xlane.xlu0 %4032 }
 0x560   : > { %v5917_v37 = vpop.eup %5916  ;;  %5922 = vrsqrt.f32 %v4180_v4  ;;  %v4109_v40 = vsub.f32 %v4061_v13, %v4085_v7  ;;  %v4062_v41 = vmul.f32 0.0078125, %v4033_v24 }
 0x561   : > { %4310 = vst [vmem:[%s6688_s3 + $0x60] sm:$0xff] %v4286_v16  ;;  %v4225_v38 = vmul.f32 %v5917_v37, %v4153_v34  ;;  %v3939_v0 = vpop.xlane.xlu1 %3938  ;;  %v4157_v16 = vsub.f32 %v7773_v32, %v7940_v55 }
 0x562   : > { %v5919_v23 = vpop.eup %5918  ;;  %v4133_v36 = vmax.f32 %v4109_v40, 0.0  ;;  %v4110_v58 = vsub.f32 %v4062_v41, %v4086_v9  ;;  %v7958_v6 = vmul.f32 0.0078125, %v3939_v0  ;;  %v4158_v41 = vsub.f32 %v7778_v1, %v7945_v10 }
 0x563   : > { %v4256_v57 = vmul.f32 %v7833_v49, %v4225_v38  ;;  %v4226_v46 = vmul.f32 %v5919_v23, %v4154_v26  ;;  %v3941_v18 = vpop.xlane.xlu0 %3940 }
 0x564   : > { %v4181_v35 = vadd.f32 1e-05, %v4133_v36  ;;  %v4134_v39 = vmax.f32 %v4110_v58, 0.0  ;;  %v7963_v17 = vmul.f32 0.0078125, %v3941_v18  ;;  %v4087_v62 = vmul.f32 %v7958_v6, %v7958_v6 }
 0x565   : > { %v4287_v44 = vadd.f32 %v7837_v25, %v4256_v57  ;;  %v4257_v30 = vmul.f32 %v7833_v49, %v4226_v46  ;;  %v4035_v63 = vpop.xlane.xlu1 %4034 }
 0x566   : > { %5924 = vrsqrt.f32 %v4181_v35  ;;  %v4182_v50 = vadd.f32 1e-05, %v4134_v39  ;;  %v4063_v31 = vmul.f32 0.0078125, %v4035_v63  ;;  %v4088_v14 = vmul.f32 %v7963_v17, %v7963_v17 }
 0x567   : > { %4311 = vst [vmem:[%s6688_s3 + $0x68] sm:$0xff] %v4287_v44  ;;  %v4288_v8 = vadd.f32 %v7837_v25, %v4257_v30  ;;  %v4037_v45 = vpop.xlane.xlu0 %4036  ;;  %v4159_v63 = vsub.f32 %v7789_v60, %v7958_v6 }
 0x568   : > { %v5921_v5 = vpop.eup %5920  ;;  %5926 = vrsqrt.f32 %v4182_v50  ;;  %v4111_v48 = vsub.f32 %v4063_v31, %v4087_v62  ;;  %v4064_v2 = vmul.f32 0.0078125, %v4037_v45  ;;  %v4160_v31 = vsub.f32 %v7794_v15, %v7963_v17 }
 0x569   : > { %4312 = vst [vmem:[%s6688_s3 + $0x70] sm:$0xff] %v4288_v8  ;;  %v4227_v51 = vmul.f32 %v5921_v5, %v4155_v43  ;;  %v3943_v56 = vpop.xlane.xlu1 %3942 }
 0x56a   : > { %v5923_v11 = vpop.eup %5922  ;;  %v4135_v42 = vmax.f32 %v4111_v48, 0.0  ;;  %v4112_v12 = vsub.f32 %v4064_v2, %v4088_v14  ;;  %v7976_v22 = vmul.f32 0.0078125, %v3943_v56 }
 0x56b   : > { %v4258_v29 = vmul.f32 %v7833_v49, %v4227_v51  ;;  %v4228_v52 = vmul.f32 %v5923_v11, %v4156_v3  ;;  %v3945_v33 = vpop.xlane.xlu0 %3944 }
 0x56c   : > { %v4183_v19 = vadd.f32 1e-05, %v4135_v42  ;;  %v4136_v54 = vmax.f32 %v4112_v12, 0.0  ;;  %v7981_v21 = vmul.f32 0.0078125, %v3945_v33  ;;  %v4089_v4 = vmul.f32 %v7976_v22, %v7976_v22 }
 0x56d   : > { %v4289_v59 = vadd.f32 %v7837_v25, %v4258_v29  ;;  %v4259_v61 = vmul.f32 %v7833_v49, %v4228_v52  ;;  %v4039_v20 = vpop.xlane.xlu1 %4038  ;;  %v4161_v15 = vsub.f32 %v7805_v27, %v7976_v22 }
 0x56e   : > { %5928 = vrsqrt.f32 %v4183_v19  ;;  %v4184_v28 = vadd.f32 1e-05, %v4136_v54  ;;  %v4065_v7 = vmul.f32 0.0078125, %v4039_v20  ;;  %v4090_v37 = vmul.f32 %v7981_v21, %v7981_v21 }
 0x56f   : > { %4313 = vst [vmem:[%s6688_s3 + $0x78] sm:$0xff] %v4289_v59  ;;  %v4290_v13 = vadd.f32 %v7837_v25, %v4259_v61  ;;  %v4041_v34 = vpop.xlane.xlu0 %4040  ;;  %v4162_v3 = vsub.f32 %v7810_v53, %v7981_v21 }
 0x570   : > { %v5925_v24 = vpop.eup %5924  ;;  %5930 = vrsqrt.f32 %v4184_v28  ;;  %v4113_v9 = vsub.f32 %v4065_v7, %v4089_v4  ;;  %v4066_v40 = vmul.f32 0.0078125, %v4041_v34 }
 0x571   : > { %4314 = vst [vmem:[%s6688_s3 + $0x80] sm:$0xff] %v4290_v13  ;;  %v4229_v26 = vmul.f32 %v5925_v24, %v4157_v16  ;;  %v3947_v38 = vpop.xlane.xlu1 %3946 }
 0x572   : > { %v5927_v0 = vpop.eup %5926  ;;  %v4137_v23 = vmax.f32 %v4113_v9, 0.0  ;;  %v4114_v36 = vsub.f32 %v4066_v40, %v4090_v37  ;;  %v3971_v58 = vmul.f32 0.0078125, %v3947_v38 }
 0x573   : > { %v4260_v32 = vmul.f32 %v7833_v49, %v4229_v26  ;;  %v4230_v55 = vmul.f32 %v5927_v0, %v4158_v41 }
 0x574   : > { %v4185_v57 = vadd.f32 1e-05, %v4137_v23  ;;  %v4138_v46 = vmax.f32 %v4114_v36, 0.0  ;;  %v4091_v10 = vmul.f32 %v3971_v58, %v3971_v58  ;;  %v4163_v53 = vsub.f32 %v7819_v47, %v3971_v58 }
 0x575   : > { %v4291_v18 = vadd.f32 %v7837_v25, %v4260_v32  ;;  %v4261_v35 = vmul.f32 %v7833_v49, %v4230_v55  ;;  %v4043_v39 = vpop.xlane.xlu1 %4042 }
 0x576   : > { %5932 = vrsqrt.f32 %v4185_v57  ;;  %v4186_v1 = vadd.f32 1e-05, %v4138_v46  ;;  %v4067_v44 = vmul.f32 0.0078125, %v4043_v39 }
 0x577   : > { %4315 = vst [vmem:[%s6688_s3 + $0x88] sm:$0xff] %v4291_v18  ;;  %v4292_v30 = vadd.f32 %v7837_v25, %v4261_v35 }
 0x578   : > { %v5929_v50 = vpop.eup %5928  ;;  %5934 = vrsqrt.f32 %v4186_v1  ;;  %v4115_v62 = vsub.f32 %v4067_v44, %v4091_v10 }
 0x579   : > { %4316 = vst [vmem:[%s6688_s3 + $0x90] sm:$0xff] %v4292_v30  ;;  %v4231_v8 = vmul.f32 %v5929_v50, %v4159_v63 }
 0x57a   : > { %v5931_v43 = vpop.eup %5930  ;;  %v4139_v45 = vmax.f32 %v4115_v62, 0.0 }
 0x57b   : > { %v4262_v5 = vmul.f32 %v7833_v49, %v4231_v8  ;;  %v4232_v14 = vmul.f32 %v5931_v43, %v4160_v31 }
 0x57c   : > { %v4187_v48 = vadd.f32 1e-05, %v4139_v45 }
 0x57d   : > { %v4293_v2 = vadd.f32 %v7837_v25, %v4262_v5  ;;  %v4263_v60 = vmul.f32 %v7833_v49, %v4232_v14 }
 0x57e   : > { %5936 = vrsqrt.f32 %v4187_v48 }
 0x57f   : > { %4317 = vst [vmem:[%s6688_s3 + $0x98] sm:$0xff] %v4293_v2  ;;  %v4294_v6 = vadd.f32 %v7837_v25, %v4263_v60 }
 0x580   : > { %v5933_v17 = vpop.eup %5932 }
 0x581   : > { %4318 = vst [vmem:[%s6688_s3 + $0xa0] sm:$0xff] %v4294_v6  ;;  %v4233_v51 = vmul.f32 %v5933_v17, %v4161_v15 }
 0x582   : > { %v5935_v56 = vpop.eup %5934 }
 0x583   : > { %v4264_v11 = vmul.f32 %v7833_v49, %v4233_v51  ;;  %v4234_v42 = vmul.f32 %v5935_v56, %v4162_v3 }
 0x585   : > { %v4295_v12 = vadd.f32 %v7837_v25, %v4264_v11  ;;  %v4265_v27 = vmul.f32 %v7833_v49, %v4234_v42 }
 0x587   : > { %4319 = vst [vmem:[%s6688_s3 + $0xa8] sm:$0xff] %v4295_v12  ;;  %v4296_v22 = vadd.f32 %v7837_v25, %v4265_v27 }
 0x588   : > { %v5937_v29 = vpop.eup %5936 }
 0x589   : > { %4320 = vst [vmem:[%s6688_s3 + $0xb0] sm:$0xff] %v4296_v22  ;;  %v4235_v52 = vmul.f32 %v5937_v29, %v4163_v53 }
 0x58b   : > { %v4266_v33 = vmul.f32 %v7833_v49, %v4235_v52 }
 0x58d   : > { %v4297_v19 = vadd.f32 %v7837_v25, %v4266_v33 }
 0x58f   : > { %4321 = vst [vmem:[%s6688_s3 + $0xb8] sm:$0xff] %v4297_v19 }
 0x590   : > { %6219 = shalt.err (!%p6216_p12)
}
 0x591   : > { %s6220_s16 = scalar_lea.hbm %s8028_s17, 3072  ;;  %s6224_s18 = scalar_lea.hbm %s8095_s7, 12288 }
 0x592   : > { %p6221_p4 = scmp.ne.s32.totalorder %s8028_s17, %s6220_s16  ;;  %p6225_p7 = scmp.lt.u32.totalorder %s8028_s17, %s8095_s7 }
 0x593   : > { %p6226_p9 = scmp.lt.u32.totalorder %s6224_s18, %s6220_s16  ;;  %p6228_p10 = scmp.lt.u32.totalorder %s6220_s16, %s8028_s17 }
 0x594   : > { %p6222_p5 = pnand %p6221_p4, %p8161_p11 }
 0x595   : > { %p6227_p1 = por %p6226_p9, %p6225_p7 }
 0x596   : > { %p6223_p6 = pneg %p6222_p5 }
 0x597   : > { %p6229_p13 = por %p6228_p10, %p6227_p1 }
 0x599   : > { %p6230_p2 = pnand %p6229_p13, %p6223_p6 }
 0x59b   : > { %6233 = shalt.err (!%p6230_p2)
}
 0x59c   : > { %s6334_s20 = smov 128   ;;  %s6335_s4 = smov 8  }
 0x59d   : > { %5772 = dma.vmem_to_hbm [thread:$0]  (%p8161_p11), %s8030_s28, 3072, %s8028_s17, %s8036_s13, %s6334_s20, %s6334_s20, %s6335_s4  }
 0x59e PF: > { %s8162_s3 = sld [smem:[#allocation33_spill]]  ;;  %p5811_p3 = scmp.ge.s32.totalorder %s6318_s8, 2 }
 0x59f   : > { %s4353_s19 = sand.u32 1, %s6290_s24  }
 0x5a0   : > { %s4354_s22 = scalar_lea.sflag [#allocation6], %s4353_s19 }
 0x5a4   : > { %p8163_p0 = scmp.ne.s32.totalorder %s8162_s3, 0 }
 0x5a6   : > { %p5794_p8 = pnand %p5811_p3, %p8163_p0 }
 0x5a8   : > { %6285 = dma.done.wait (!%p5794_p8), %s4354_s22, 3072  }
 0x5a9   : > { %6287 = vsyncadd (!%p5794_p8), %s4354_s22, 4294964224  ;;  %s24_s8 = sadd.s32 1, %s6318_s8   ;;  %s8164_s26 = sld [smem:[#allocation28_spill]] }
 0x5aa   : > { %p21_p12 = scmp.ge.s32.totalorder %s24_s8, 6   ;;  %s8165_s27 = sld [smem:[#allocation34_spill]] }
 0x5ab   : > { %s8166_s10 = sld [smem:[#allocation29_spill]]  ;;  %s8167_s28 = sld [smem:[#allocation30_spill]] }
 0x5ac   : > { %s8168_s29 = sld [smem:[#allocation31_spill]]  ;;  %s8169_s30 = sld [smem:[#allocation32_spill]] }
 0x5ad   : > { %s8170_s24 = smov %s6294_s25  ;;  %23 = sbr.rel (!%p21_p12) target bundleno = 14 (0xe), region = 126 }
 0x5af   : > { %s8171_s25 = smov %s8164_s26 }
 0x5b0   : > { %s8172_s26 = smov %s8165_s27 }
 0x5b1   : > { %s8173_s27 = smov %s8166_s10 }
 0x5b4   :  { %4359 = vsyncpa [#allocation5], 1 }
 0x5b5   :  { %4361 = vsyncpa [#allocation5 + $0x1], 1 }
 0x5b6   :  { %4362 = vsyncpa [#allocation8], 1 }
 0x5b7   :  { %4363 = vsyncpa [#allocation11], 1 }
 0x5b8   :  { %4364 = vsyncpa [#allocation14], 1 }
 0x5b9   :  { %4365 = vsyncpa [#allocation6], 1 }
 0x5ba   :  { %4367 = vsyncpa [#allocation6 + $0x1], 1 }
 0x5bb   :  { %4368 = vsyncmov [#allocation3] }
 0x5be   :  { %s4369_s15 = vpop.sfrf %4368 }
 0x5bf   :  { %p4524_p11 = scmp.ne.s32.totalorder %s4369_s15, 0 }
 0x5c1   :  { %4373 = shalt.err (%p4524_p11)  }
 0x5c2   :  { %4375 = vsyncmov [#allocation3 + $0x1] }
 0x5c5   :  { %s4376_s17 = vpop.sfrf %4375 }
 0x5c6   :  { %p4525_p4 = scmp.ne.s32.totalorder %s4376_s17, 0 }
 0x5c8   :  { %4380 = shalt.err (%p4525_p4)  }

</bundles_post_ra>
